<compile_context>
chip_gen: v7x
topology: tpu7x:2x2x1
jax: 0.10.0
libtpu: 0.0.40
codegen_flags: <defaults>
</compile_context>

<pallas_src>
import jax
import jax.numpy as jnp
from jax.experimental import pallas as pl
from jax.experimental.pallas import tpu as pltpu

IMG_SHAPE = (1, 28, 28)
IMG_FLAT = 1 * 28 * 28          # 784
IMG_FLAT_PAD = 896              # 7 * 128, lane-aligned output width
LATENT = 100
LATENT_PAD = 128                # lane-aligned contraction dim for layer 1
HIDDEN = (128, 256, 512, 1024)
BN_EPS = 0.8
LRELU_SLOPE = 0.2


def _leaky_relu(x):
    # slope < 1  =>  max(x, slope*x) == LeakyReLU(x)
    return jnp.maximum(x, LRELU_SLOPE * x)


def _matmul(x, w_ref):
    # bf16 operands into the MXU, f32 accumulation.
    return jnp.dot(x.astype(jnp.bfloat16), w_ref[...],
                   preferred_element_type=jnp.float32)


def generator_kernel(
    z_ref,
    w1_ref, b1_ref,
    w2_ref, g2_ref, be2_ref,
    w3_ref, g3_ref, be3_ref,
    w4_ref, g4_ref, be4_ref,
    w5_ref, b5_ref,
    out_ref,
):
    # Whole problem resident in VMEM (~3.3 MiB bf16 weights + small acts);
    # single grid step so BatchNorm uses whole-batch statistics.
    x = z_ref[...]

    # block(100->128, normalize=False); padded latent rows of w1 are zero.
    h = _leaky_relu(_matmul(x, w1_ref) + b1_ref[...])

    def bn_block(h, w_ref, g_ref, be_ref):
        # Linear bias is omitted on purpose: training-mode BatchNorm subtracts
        # the batch mean, which cancels any per-feature constant exactly, so
        # skipping the bias is mathematically identical to the reference.
        y = _matmul(h, w_ref)
        # BatchNorm1d, training mode: batch mean / biased variance, eps=0.8.
        # One-pass variance: E[y^2] - E[y]^2 (eps=0.8 dominates any
        # cancellation error).
        mean = jnp.mean(y, axis=0, keepdims=True)
        var = jnp.mean(y * y, axis=0, keepdims=True) - mean * mean
        scale = g_ref[...] * jax.lax.rsqrt(var + BN_EPS)   # (1, F)
        shift = be_ref[...] - mean * scale                 # (1, F)
        return _leaky_relu(y * scale + shift)              # one FMA / element

    h = bn_block(h, w2_ref, g2_ref, be2_ref)   # 128 -> 256
    h = bn_block(h, w3_ref, g3_ref, be3_ref)   # 256 -> 512
    h = bn_block(h, w4_ref, g4_ref, be4_ref)   # 512 -> 1024

    # Linear(1024, 784 padded to 896) -> Tanh; padded columns come out as
    # tanh(0) = 0 and are sliced off in the wrapper.
    y = _matmul(h, w5_ref) + b5_ref[...]
    out_ref[...] = jnp.tanh(y)


def generator_forward(z, params):
    """z: (B, 100) float32. Returns img: (B, 1, 28, 28) float32."""
    B = z.shape[0]
    # Zero-pad the latent dim to 128 lanes (matching zero rows in w1).
    z_pad = jnp.pad(z, ((0, 0), (0, LATENT_PAD - LATENT)))
    args = (
        z_pad,
        params["w1"], params["b1"],
        params["w2"], params["g2"], params["be2"],
        params["w3"], params["g3"], params["be3"],
        params["w4"], params["g4"], params["be4"],
        params["w5"], params["b5"],
    )
    vmem_spec = pl.BlockSpec(memory_space=pltpu.MemorySpace.VMEM)
    out = pl.pallas_call(
        generator_kernel,
        out_shape=jax.ShapeDtypeStruct((B, IMG_FLAT_PAD), jnp.float32),
        in_specs=[vmem_spec] * len(args),
        out_specs=vmem_spec,
        compiler_params=pltpu.CompilerParams(vmem_limit_bytes=32 << 20),
    )(*args)
    # Drop the zero-padded columns, then reshape to NCHW.
    return out[:, :IMG_FLAT].reshape(B, *IMG_SHAPE)


def init_params(key):
    """Deterministic init mimicking PyTorch Linear default
    (U[-1/sqrt(in), 1/sqrt(in)]). Weights stored as (in_feat, out_feat) in
    bf16; w1 zero-padded to 128 input rows, w5/b5 zero-padded to 896 output
    columns. b2/b3/b4 are created for parameter parity with the PyTorch
    module but are unused at forward time (cancelled by training-mode BN)."""
    dims = [LATENT, *HIDDEN, IMG_FLAT]  # 100,128,256,512,1024,784
    params = {}
    keys = jax.random.split(key, 2 * (len(dims) - 1))
    for i in range(len(dims) - 1):
        fan_in, fan_out = dims[i], dims[i + 1]
        bound = 1.0 / (fan_in ** 0.5)
        w = jax.random.uniform(keys[2 * i], (fan_in, fan_out),
                               minval=-bound, maxval=bound, dtype=jnp.float32)
        b = jax.random.uniform(keys[2 * i + 1], (1, fan_out),
                               minval=-bound, maxval=bound, dtype=jnp.float32)
        if i == 0:
            # Pad contraction dim 100 -> 128 with zero rows.
            w = jnp.pad(w, ((0, LATENT_PAD - LATENT), (0, 0)))
        if i == len(dims) - 2:
            # Pad output dim 784 -> 896 with zero columns.
            w = jnp.pad(w, ((0, 0), (0, IMG_FLAT_PAD - IMG_FLAT)))
            b = jnp.pad(b, ((0, 0), (0, IMG_FLAT_PAD - IMG_FLAT)))
        params[f"w{i + 1}"] = w.astype(jnp.bfloat16)   # bf16 storage: 2x less DMA
        params[f"b{i + 1}"] = b                        # biases stay f32 (tiny)
    # BatchNorm affine params for layers 2,3,4 (gamma=1, beta=0, PyTorch init).
    for i, feat in [(2, 256), (3, 512), (4, 1024)]:
        params[f"g{i}"] = jnp.ones((1, feat), jnp.float32)
        params[f"be{i}"] = jnp.zeros((1, feat), jnp.float32)
    return params


if __name__ == "__main__":
    key = jax.random.PRNGKey(0)
    k_params, k_z = jax.random.split(key)
    params = init_params(k_params)

    B = 8
    z = jax.random.normal(k_z, (B, LATENT), dtype=jnp.float32)

    img = generator_forward(z, params)
    img = jax.block_until_ready(img)

    assert img.shape == (B, 1, 28, 28), img.shape
    assert img.dtype == jnp.float32
    assert bool(jnp.all(jnp.isfinite(img)))
    print("KERNEL_OK")
</pallas_src>

<mosaic_0001>
module attributes {stable_mosaic.version = 11 : i64} {
  func.func @generator_kernel(%arg0: memref<8x128xf32, #tpu.memory_space<vmem>>, %arg1: memref<128x128xbf16, #tpu.memory_space<vmem>>, %arg2: memref<1x128xf32, #tpu.memory_space<vmem>>, %arg3: memref<128x256xbf16, #tpu.memory_space<vmem>>, %arg4: memref<1x256xf32, #tpu.memory_space<vmem>>, %arg5: memref<1x256xf32, #tpu.memory_space<vmem>>, %arg6: memref<256x512xbf16, #tpu.memory_space<vmem>>, %arg7: memref<1x512xf32, #tpu.memory_space<vmem>>, %arg8: memref<1x512xf32, #tpu.memory_space<vmem>>, %arg9: memref<512x1024xbf16, #tpu.memory_space<vmem>>, %arg10: memref<1x1024xf32, #tpu.memory_space<vmem>>, %arg11: memref<1x1024xf32, #tpu.memory_space<vmem>>, %arg12: memref<1024x896xbf16, #tpu.memory_space<vmem>>, %arg13: memref<1x896xf32, #tpu.memory_space<vmem>>, %arg14: memref<8x896xf32, #tpu.memory_space<vmem>>) attributes {dimension_semantics = [], scalar_prefetch = 0 : i64, scratch_operands = 0 : i64, tpu.core_type = #tpu.core_type<tc>} {
    %c0 = arith.constant 0 : index
    %c0_0 = arith.constant 0 : index
    %0 = vector.load %arg0[%c0, %c0_0] : memref<8x128xf32, #tpu.memory_space<vmem>>, vector<8x128xf32>
    %1 = arith.truncf %0 : vector<8x128xf32> to vector<8x128xbf16>
    %c0_1 = arith.constant 0 : index
    %c0_2 = arith.constant 0 : index
    %2 = vector.load %arg1[%c0_1, %c0_2] : memref<128x128xbf16, #tpu.memory_space<vmem>>, vector<128x128xbf16>
    %cst = arith.constant dense<0.000000e+00> : vector<8x128xf32>
    %3 = tpu.matmul %1, %2, %cst {dimension_numbers = #tpu.dot_dimension_numbers<[1], [0], [0], [1], [0, 0, 1, 1], [], []>} : vector<8x128xbf16>, vector<128x128xbf16>, vector<8x128xf32> -> vector<8x128xf32>
    %c0_3 = arith.constant 0 : index
    %c0_4 = arith.constant 0 : index
    %4 = vector.load %arg2[%c0_3, %c0_4] : memref<1x128xf32, #tpu.memory_space<vmem>>, vector<1x128xf32>
    %5 = vector.broadcast %4 : vector<1x128xf32> to vector<8x128xf32>
    %6 = arith.addf %3, %5 : vector<8x128xf32>
    %cst_5 = arith.constant 2.000000e-01 : f32
    %7 = vector.broadcast %cst_5 : f32 to vector<8x128xf32>
    %8 = arith.mulf %7, %6 : vector<8x128xf32>
    %9 = arith.maximumf %6, %8 : vector<8x128xf32>
    %10 = arith.truncf %9 : vector<8x128xf32> to vector<8x128xbf16>
    %c0_6 = arith.constant 0 : index
    %c0_7 = arith.constant 0 : index
    %11 = vector.load %arg3[%c0_6, %c0_7] : memref<128x256xbf16, #tpu.memory_space<vmem>>, vector<128x256xbf16>
    %cst_8 = arith.constant dense<0.000000e+00> : vector<8x256xf32>
    %12 = tpu.matmul %10, %11, %cst_8 {dimension_numbers = #tpu.dot_dimension_numbers<[1], [0], [0], [1], [0, 0, 1, 1], [], []>} : vector<8x128xbf16>, vector<128x256xbf16>, vector<8x256xf32> -> vector<8x256xf32>
    %cst_9 = arith.constant dense<0.000000e+00> : vector<256xf32>
    %13 = vector.multi_reduction <add>, %12, %cst_9 [0] : vector<8x256xf32> to vector<256xf32>
    %14 = vector.shape_cast %13 : vector<256xf32> to vector<1x256xf32>
    %cst_10 = arith.constant 8.000000e+00 : f32
    %15 = vector.broadcast %cst_10 : f32 to vector<1x256xf32>
    %16 = arith.divf %14, %15 : vector<1x256xf32>
    %17 = arith.mulf %12, %12 : vector<8x256xf32>
    %cst_11 = arith.constant dense<0.000000e+00> : vector<256xf32>
    %18 = vector.multi_reduction <add>, %17, %cst_11 [0] : vector<8x256xf32> to vector<256xf32>
    %19 = vector.shape_cast %18 : vector<256xf32> to vector<1x256xf32>
    %cst_12 = arith.constant 8.000000e+00 : f32
    %20 = vector.broadcast %cst_12 : f32 to vector<1x256xf32>
    %21 = arith.divf %19, %20 : vector<1x256xf32>
    %22 = arith.mulf %16, %16 : vector<1x256xf32>
    %23 = arith.subf %21, %22 : vector<1x256xf32>
    %c0_13 = arith.constant 0 : index
    %c0_14 = arith.constant 0 : index
    %24 = vector.load %arg4[%c0_13, %c0_14] : memref<1x256xf32, #tpu.memory_space<vmem>>, vector<1x256xf32>
    %cst_15 = arith.constant 8.000000e-01 : f32
    %25 = vector.broadcast %cst_15 : f32 to vector<1x256xf32>
    %26 = arith.addf %23, %25 : vector<1x256xf32>
    %27 = math.rsqrt %26 : vector<1x256xf32>
    %28 = arith.mulf %24, %27 : vector<1x256xf32>
    %c0_16 = arith.constant 0 : index
    %c0_17 = arith.constant 0 : index
    %29 = vector.load %arg5[%c0_16, %c0_17] : memref<1x256xf32, #tpu.memory_space<vmem>>, vector<1x256xf32>
    %30 = arith.mulf %16, %28 : vector<1x256xf32>
    %31 = arith.subf %29, %30 : vector<1x256xf32>
    %32 = vector.broadcast %28 : vector<1x256xf32> to vector<8x256xf32>
    %33 = arith.mulf %12, %32 : vector<8x256xf32>
    %34 = vector.broadcast %31 : vector<1x256xf32> to vector<8x256xf32>
    %35 = arith.addf %33, %34 : vector<8x256xf32>
    %cst_18 = arith.constant 2.000000e-01 : f32
    %36 = vector.broadcast %cst_18 : f32 to vector<8x256xf32>
    %37 = arith.mulf %36, %35 : vector<8x256xf32>
    %38 = arith.maximumf %35, %37 : vector<8x256xf32>
    %39 = arith.truncf %38 : vector<8x256xf32> to vector<8x256xbf16>
    %c0_19 = arith.constant 0 : index
    %c0_20 = arith.constant 0 : index
    %40 = vector.load %arg6[%c0_19, %c0_20] : memref<256x512xbf16, #tpu.memory_space<vmem>>, vector<256x512xbf16>
    %cst_21 = arith.constant dense<0.000000e+00> : vector<8x512xf32>
    %41 = tpu.matmul %39, %40, %cst_21 {dimension_numbers = #tpu.dot_dimension_numbers<[1], [0], [0], [1], [0, 0, 1, 1], [], []>} : vector<8x256xbf16>, vector<256x512xbf16>, vector<8x512xf32> -> vector<8x512xf32>
    %cst_22 = arith.constant dense<0.000000e+00> : vector<512xf32>
    %42 = vector.multi_reduction <add>, %41, %cst_22 [0] : vector<8x512xf32> to vector<512xf32>
    %43 = vector.shape_cast %42 : vector<512xf32> to vector<1x512xf32>
    %cst_23 = arith.constant 8.000000e+00 : f32
    %44 = vector.broadcast %cst_23 : f32 to vector<1x512xf32>
    %45 = arith.divf %43, %44 : vector<1x512xf32>
    %46 = arith.mulf %41, %41 : vector<8x512xf32>
    %cst_24 = arith.constant dense<0.000000e+00> : vector<512xf32>
    %47 = vector.multi_reduction <add>, %46, %cst_24 [0] : vector<8x512xf32> to vector<512xf32>
    %48 = vector.shape_cast %47 : vector<512xf32> to vector<1x512xf32>
    %cst_25 = arith.constant 8.000000e+00 : f32
    %49 = vector.broadcast %cst_25 : f32 to vector<1x512xf32>
    %50 = arith.divf %48, %49 : vector<1x512xf32>
    %51 = arith.mulf %45, %45 : vector<1x512xf32>
    %52 = arith.subf %50, %51 : vector<1x512xf32>
    %c0_26 = arith.constant 0 : index
    %c0_27 = arith.constant 0 : index
    %53 = vector.load %arg7[%c0_26, %c0_27] : memref<1x512xf32, #tpu.memory_space<vmem>>, vector<1x512xf32>
    %cst_28 = arith.constant 8.000000e-01 : f32
    %54 = vector.broadcast %cst_28 : f32 to vector<1x512xf32>
    %55 = arith.addf %52, %54 : vector<1x512xf32>
    %56 = math.rsqrt %55 : vector<1x512xf32>
    %57 = arith.mulf %53, %56 : vector<1x512xf32>
    %c0_29 = arith.constant 0 : index
    %c0_30 = arith.constant 0 : index
    %58 = vector.load %arg8[%c0_29, %c0_30] : memref<1x512xf32, #tpu.memory_space<vmem>>, vector<1x512xf32>
    %59 = arith.mulf %45, %57 : vector<1x512xf32>
    %60 = arith.subf %58, %59 : vector<1x512xf32>
    %61 = vector.broadcast %57 : vector<1x512xf32> to vector<8x512xf32>
    %62 = arith.mulf %41, %61 : vector<8x512xf32>
    %63 = vector.broadcast %60 : vector<1x512xf32> to vector<8x512xf32>
    %64 = arith.addf %62, %63 : vector<8x512xf32>
    %cst_31 = arith.constant 2.000000e-01 : f32
    %65 = vector.broadcast %cst_31 : f32 to vector<8x512xf32>
    %66 = arith.mulf %65, %64 : vector<8x512xf32>
    %67 = arith.maximumf %64, %66 : vector<8x512xf32>
    %68 = arith.truncf %67 : vector<8x512xf32> to vector<8x512xbf16>
    %c0_32 = arith.constant 0 : index
    %c0_33 = arith.constant 0 : index
    %69 = vector.load %arg9[%c0_32, %c0_33] : memref<512x1024xbf16, #tpu.memory_space<vmem>>, vector<512x1024xbf16>
    %cst_34 = arith.constant dense<0.000000e+00> : vector<8x1024xf32>
    %70 = tpu.matmul %68, %69, %cst_34 {dimension_numbers = #tpu.dot_dimension_numbers<[1], [0], [0], [1], [0, 0, 1, 1], [], []>} : vector<8x512xbf16>, vector<512x1024xbf16>, vector<8x1024xf32> -> vector<8x1024xf32>
    %cst_35 = arith.constant dense<0.000000e+00> : vector<1024xf32>
    %71 = vector.multi_reduction <add>, %70, %cst_35 [0] : vector<8x1024xf32> to vector<1024xf32>
    %72 = vector.shape_cast %71 : vector<1024xf32> to vector<1x1024xf32>
    %cst_36 = arith.constant 8.000000e+00 : f32
    %73 = vector.broadcast %cst_36 : f32 to vector<1x1024xf32>
    %74 = arith.divf %72, %73 : vector<1x1024xf32>
    %75 = arith.mulf %70, %70 : vector<8x1024xf32>
    %cst_37 = arith.constant dense<0.000000e+00> : vector<1024xf32>
    %76 = vector.multi_reduction <add>, %75, %cst_37 [0] : vector<8x1024xf32> to vector<1024xf32>
    %77 = vector.shape_cast %76 : vector<1024xf32> to vector<1x1024xf32>
    %cst_38 = arith.constant 8.000000e+00 : f32
    %78 = vector.broadcast %cst_38 : f32 to vector<1x1024xf32>
    %79 = arith.divf %77, %78 : vector<1x1024xf32>
    %80 = arith.mulf %74, %74 : vector<1x1024xf32>
    %81 = arith.subf %79, %80 : vector<1x1024xf32>
    %c0_39 = arith.constant 0 : index
    %c0_40 = arith.constant 0 : index
    %82 = vector.load %arg10[%c0_39, %c0_40] : memref<1x1024xf32, #tpu.memory_space<vmem>>, vector<1x1024xf32>
    %cst_41 = arith.constant 8.000000e-01 : f32
    %83 = vector.broadcast %cst_41 : f32 to vector<1x1024xf32>
    %84 = arith.addf %81, %83 : vector<1x1024xf32>
    %85 = math.rsqrt %84 : vector<1x1024xf32>
    %86 = arith.mulf %82, %85 : vector<1x1024xf32>
    %c0_42 = arith.constant 0 : index
    %c0_43 = arith.constant 0 : index
    %87 = vector.load %arg11[%c0_42, %c0_43] : memref<1x1024xf32, #tpu.memory_space<vmem>>, vector<1x1024xf32>
    %88 = arith.mulf %74, %86 : vector<1x1024xf32>
    %89 = arith.subf %87, %88 : vector<1x1024xf32>
    %90 = vector.broadcast %86 : vector<1x1024xf32> to vector<8x1024xf32>
    %91 = arith.mulf %70, %90 : vector<8x1024xf32>
    %92 = vector.broadcast %89 : vector<1x1024xf32> to vector<8x1024xf32>
    %93 = arith.addf %91, %92 : vector<8x1024xf32>
    %cst_44 = arith.constant 2.000000e-01 : f32
    %94 = vector.broadcast %cst_44 : f32 to vector<8x1024xf32>
    %95 = arith.mulf %94, %93 : vector<8x1024xf32>
    %96 = arith.maximumf %93, %95 : vector<8x1024xf32>
    %97 = arith.truncf %96 : vector<8x1024xf32> to vector<8x1024xbf16>
    %c0_45 = arith.constant 0 : index
    %c0_46 = arith.constant 0 : index
    %98 = vector.load %arg12[%c0_45, %c0_46] : memref<1024x896xbf16, #tpu.memory_space<vmem>>, vector<1024x896xbf16>
    %cst_47 = arith.constant dense<0.000000e+00> : vector<8x896xf32>
    %99 = tpu.matmul %97, %98, %cst_47 {dimension_numbers = #tpu.dot_dimension_numbers<[1], [0], [0], [1], [0, 0, 1, 1], [], []>} : vector<8x1024xbf16>, vector<1024x896xbf16>, vector<8x896xf32> -> vector<8x896xf32>
    %c0_48 = arith.constant 0 : index
    %c0_49 = arith.constant 0 : index
    %100 = vector.load %arg13[%c0_48, %c0_49] : memref<1x896xf32, #tpu.memory_space<vmem>>, vector<1x896xf32>
    %101 = vector.broadcast %100 : vector<1x896xf32> to vector<8x896xf32>
    %102 = arith.addf %99, %101 : vector<8x896xf32>
    %103 = math.tanh %102 : vector<8x896xf32>
    %c0_50 = arith.constant 0 : index
    %c0_51 = arith.constant 0 : index
    %104 = vector.load %arg14[%c0_50, %c0_51] : memref<8x896xf32, #tpu.memory_space<vmem>>, vector<8x896xf32>
    tpu.vector_store %arg14[%c0_50, %c0_51], %103 {strides = array<i32>} : memref<8x896xf32, #tpu.memory_space<vmem>>, vector<8x896xf32>,
    return
  }
}

</mosaic_0001>

<bundles_post_ra>
// kernel: tpu_custom_call.1
= control target key start
LH: loop header
LB: loop body
LE: loop exit
PB: predicated region body
PF: predicated region fallthrough
CT: control target
= control target key end

     0   :  { %19 = vsyncpa [#allocation3], 0  ;;  %s9832_s0 = inlined_call_operand.hbm [shape: f32[8,128], index: 0, kind: input, shape index: {}]   ;;  %s9833_s1 = inlined_call_operand.hbm [shape: bf16[128,128], index: 1, kind: input, shape index: {}]   ;;  %s9834_s2 = inlined_call_operand.hbm [shape: f32[1,128], index: 2, kind: input, shape index: {}]   ;;  %s9835_s3 = inlined_call_operand.hbm [shape: bf16[128,256], index: 3, kind: input, shape index: {}]   ;;  %s9836_s4 = inlined_call_operand.hbm [shape: f32[1,256], index: 4, kind: input, shape index: {}]   ;;  %s9837_s5 = inlined_call_operand.hbm [shape: f32[1,256], index: 5, kind: input, shape index: {}]   ;;  %s9838_s6 = inlined_call_operand.hbm [shape: bf16[256,512], index: 6, kind: input, shape index: {}]   ;;  %s9839_s7 = inlined_call_operand.hbm [shape: f32[1,512], index: 7, kind: input, shape index: {}]   ;;  %s9840_s8 = inlined_call_operand.hbm [shape: f32[1,512], index: 8, kind: input, shape index: {}]   ;;  %s9841_s9 = inlined_call_operand.hbm [shape: bf16[512,1024], index: 9, kind: input, shape index: {}]   ;;  %s9842_s10 = inlined_call_operand.hbm [shape: f32[1,1024], index: 10, kind: input, shape index: {}]   ;;  %s9843_s11 = inlined_call_operand.hbm [shape: f32[1,1024], index: 11, kind: input, shape index: {}]   ;;  %s9844_s12 = inlined_call_operand.hbm [shape: bf16[1024,896], index: 12, kind: input, shape index: {}]   ;;  %s9845_s13 = inlined_call_operand.hbm [shape: f32[1,896], index: 13, kind: input, shape index: {}]   ;;  %s9846_s14 = inlined_call_operand.hbm [shape: f32[8,896], index: 14, kind: output, shape index: {}]  }
   0x1   :  { %20 = vsyncpa [#allocation6], 0 }
   0x2   :  { %21 = vsyncpa [#allocation9], 0 }
   0x3   :  { %22 = vsyncpa [#allocation12], 0 }
   0x4   :  { %23 = vsyncpa [#allocation15], 0 }
   0x5   :  { %24 = vsyncpa [#allocation18], 0 }
   0x6   :  { %25 = vsyncpa [#allocation21], 0 }
   0x7   :  { %26 = vsyncpa [#allocation24], 0 }
   0x8   :  { %27 = vsyncpa [#allocation4], 0  ;;  %s9219_s29 = smov [#allocation5]   ;;  %s8871_s17 = scalar_lea.hbm %s9833_s1, 1024 }
   0x9   :  { %s43_s30 = sshll.u32 %s9219_s29, 4  ;;  %p8872_p0 = scmp.ne.s32.totalorder %s9833_s1, %s8871_s17  ;;  %s44_s30 = int_to_ptr.vmem [resolvable:$true] %s43_s30 }
   0xa   :  { %p8875_p1 = scmp.lt.u32.totalorder %s8871_s17, %s9833_s1 }
   0xc   :  { %p8877_p2 = pnand %p8875_p1, %p8872_p0 }
   0xe   :  { %8880 = shalt.err (!%p8877_p2)
}
   0xf   :  { %s8881_s22 = scalar_lea.vmem %s44_s30, 1024  ;;  %p8886_p4 = scmp.lt.s32.totalorder %s44_s30, %s44_s30 }
  0x10   :  { %p8882_p3 = scmp.ne.s32.totalorder %s44_s30, %s8881_s22  ;;  %p8887_p5 = scmp.lt.s32.totalorder %s8881_s22, %s8881_s22 }
  0x12   :  { %p8888_p6 = por %p8887_p5, %p8886_p4 }
  0x14   :  { %p8889_p7 = pnand %p8888_p6, %p8882_p3 }
  0x16   :  { %8892 = shalt.err (!%p8889_p7)
}
  0x17   :  { %s9220_s23 = smov 64   ;;  %s9221_s24 = smov 4  }
  0x18   :  { %49 = dma.hbm_to_vmem [thread:$0]  %s9833_s1, 1024, %s44_s30, [#allocation6], %s9220_s23, %s9220_s23, %s9221_s24  }
  0x19   :  { %s9222_s27 = smov [#allocation8]   ;;  %s8893_s16 = scalar_lea.hbm %s9835_s3, 2048 }
  0x1a   :  { %s65_s28 = sshll.u32 %s9222_s27, 4  ;;  %p8894_p8 = scmp.ne.s32.totalorder %s9835_s3, %s8893_s16  ;;  %s66_s28 = int_to_ptr.vmem [resolvable:$true] %s65_s28 }
  0x1b   :  { %p8897_p9 = scmp.lt.u32.totalorder %s8893_s16, %s9835_s3 }
  0x1d   :  { %p8899_p10 = pnand %p8897_p9, %p8894_p8 }
  0x1f   :  { %8902 = shalt.err (!%p8899_p10)
}
  0x20   :  { %s8903_s21 = scalar_lea.vmem %s66_s28, 2048  ;;  %p8908_p12 = scmp.lt.s32.totalorder %s66_s28, %s66_s28 }
  0x21   :  { %p8904_p11 = scmp.ne.s32.totalorder %s66_s28, %s8903_s21  ;;  %p8909_p13 = scmp.lt.s32.totalorder %s8903_s21, %s8903_s21 }
  0x23   :  { %p8910_p0 = por %p8909_p13, %p8908_p12 }
  0x25   :  { %p8911_p1 = pnand %p8910_p0, %p8904_p11 }
  0x27   :  { %8914 = shalt.err (!%p8911_p1)
}
  0x28   :  { %s9223_s1 = smov 128   ;;  %s9224_s30 = smov 8  }
  0x29   :  { %71 = dma.hbm_to_vmem [thread:$0]  %s9835_s3, 2048, %s66_s28, [#allocation9], %s9223_s1, %s9223_s1, %s9224_s30  }
  0x2a   :  { %s9225_s24 = smov [#allocation11]   ;;  %s9226_s26 = smov [#allocation14]  }
  0x2b   :  { %s88_s25 = sshll.u32 %s9225_s24, 4  ;;  %s110_s27 = sshll.u32 %s9226_s26, 4  ;;  %s89_s25 = int_to_ptr.vmem [resolvable:$true] %s88_s25  ;;  %s111_s27 = int_to_ptr.vmem [resolvable:$true] %s110_s27 }
  0x2c   :  { %s8915_s16 = scalar_lea.hbm %s9837_s5, 32 }
  0x2d   :  { %p8916_p2 = scmp.ne.s32.totalorder %s9837_s5, %s8915_s16  ;;  %p8919_p3 = scmp.lt.u32.totalorder %s8915_s16, %s9837_s5 }
  0x2f   :  { %p8921_p4 = pnand %p8919_p3, %p8916_p2 }
  0x31   :  { %8924 = shalt.err (!%p8921_p4)
}
  0x32   :  { %s8925_s3 = scalar_lea.vmem %s89_s25, 32  ;;  %p8930_p6 = scmp.lt.s32.totalorder %s89_s25, %s89_s25 }
  0x33   :  { %p8926_p5 = scmp.ne.s32.totalorder %s89_s25, %s8925_s3  ;;  %p8931_p7 = scmp.lt.s32.totalorder %s8925_s3, %s8925_s3 }
  0x35   :  { %p8932_p8 = por %p8931_p7, %p8930_p6 }
  0x37   :  { %p8933_p9 = pnand %p8932_p8, %p8926_p5 }
  0x39   :  { %8936 = shalt.err (!%p8933_p9)
}
  0x3a   :  { %91 = dma.hbm_to_vmem [thread:$0]  %s9837_s5, 32, %s89_s25, [#allocation12]  }
  0x3b   :  { %s8937_s22 = scalar_lea.hbm %s9839_s7, 64 }
  0x3c   :  { %p8938_p10 = scmp.ne.s32.totalorder %s9839_s7, %s8937_s22  ;;  %p8941_p11 = scmp.lt.u32.totalorder %s8937_s22, %s9839_s7 }
  0x3e   :  { %p8943_p12 = pnand %p8941_p11, %p8938_p10 }
  0x40   :  { %8946 = shalt.err (!%p8943_p12)
}
  0x41   :  { %s8947_s15 = scalar_lea.vmem %s111_s27, 64  ;;  %p8952_p0 = scmp.lt.s32.totalorder %s111_s27, %s111_s27 }
  0x42   :  { %p8948_p13 = scmp.ne.s32.totalorder %s111_s27, %s8947_s15  ;;  %p8953_p1 = scmp.lt.s32.totalorder %s8947_s15, %s8947_s15 }
  0x44   :  { %p8954_p2 = por %p8953_p1, %p8952_p0 }
  0x46   :  { %p8955_p3 = pnand %p8954_p2, %p8948_p13 }
  0x48   :  { %8958 = shalt.err (!%p8955_p3)
}
  0x49   :  { %113 = dma.hbm_to_vmem [thread:$0]  %s9839_s7, 64, %s111_s27, [#allocation15]  }
  0x4a   :  { %s9227_s16 = smov [#allocation17]   ;;  %s8959_s20 = scalar_lea.hbm %s9841_s9, 32768 }
  0x4b   :  { %s129_s17 = sshll.u32 %s9227_s16, 4  ;;  %p8960_p4 = scmp.ne.s32.totalorder %s9841_s9, %s8959_s20  ;;  %s130_s17 = int_to_ptr.vmem [resolvable:$true] %s129_s17 }
  0x4c   :  { %p8963_p5 = scmp.lt.u32.totalorder %s8959_s20, %s9841_s9 }
  0x4e   :  { %p8965_p6 = pnand %p8963_p5, %p8960_p4 }
  0x50   :  { %8968 = shalt.err (!%p8965_p6)
}
  0x51   :  { %s8969_s30 = scalar_lea.vmem %s130_s17, 32768  ;;  %p8974_p8 = scmp.lt.s32.totalorder %s130_s17, %s130_s17 }
  0x52   :  { %p8970_p7 = scmp.ne.s32.totalorder %s130_s17, %s8969_s30  ;;  %p8975_p9 = scmp.lt.s32.totalorder %s8969_s30, %s8969_s30 }
  0x54   :  { %p8976_p10 = por %p8975_p9, %p8974_p8 }
  0x56   :  { %p8977_p11 = pnand %p8976_p10, %p8970_p7 }
  0x58   :  { %8980 = shalt.err (!%p8977_p11)
}
  0x59   :  { %s9228_s7 = smov 512   ;;  %s9229_s27 = smov 32  }
  0x5a   :  { %135 = dma.hbm_to_vmem [thread:$0]  %s9841_s9, 32768, %s130_s17, [#allocation18], %s9228_s7, %s9228_s7, %s9229_s27  }
  0x5b   :  { %s9230_s24 = smov [#allocation20]   ;;  %s9231_s29 = smov [#allocation2]  }
  0x5c   :  { %s152_s26 = sshll.u32 %s9230_s24, 4  ;;  %s34_s15 = sshll.u32 %s9231_s29, 4  ;;  %s153_s26 = int_to_ptr.vmem [resolvable:$true] %s152_s26  ;;  %s35_s15 = int_to_ptr.vmem [resolvable:$true] %s34_s15 }
  0x5d   :  { %s8981_s16 = scalar_lea.hbm %s9843_s11, 128 }
  0x5e   :  { %p8982_p12 = scmp.ne.s32.totalorder %s9843_s11, %s8981_s16  ;;  %p8985_p13 = scmp.lt.u32.totalorder %s8981_s16, %s9843_s11 }
  0x60   :  { %p8987_p0 = pnand %p8985_p13, %p8982_p12 }
  0x62   :  { %8990 = shalt.err (!%p8987_p0)
}
  0x63   :  { %s8991_s9 = scalar_lea.vmem %s153_s26, 128  ;;  %p8996_p2 = scmp.lt.s32.totalorder %s153_s26, %s153_s26 }
  0x64   :  { %p8992_p1 = scmp.ne.s32.totalorder %s153_s26, %s8991_s9  ;;  %p8997_p3 = scmp.lt.s32.totalorder %s8991_s9, %s8991_s9 }
  0x66   :  { %p8998_p4 = por %p8997_p3, %p8996_p2 }
  0x68   :  { %p8999_p5 = pnand %p8998_p4, %p8992_p1 }
  0x6a   :  { %9002 = shalt.err (!%p8999_p5)
}
  0x6b   :  { %155 = dma.hbm_to_vmem [thread:$0]  %s9843_s11, 128, %s153_s26, [#allocation21]  }
  0x6c   :  { %s9003_s30 = scalar_lea.hbm %s9832_s0, 128 }
  0x6d   :  { %p9004_p6 = scmp.ne.s32.totalorder %s9832_s0, %s9003_s30  ;;  %p9007_p7 = scmp.lt.u32.totalorder %s9003_s30, %s9832_s0 }
  0x6f   :  { %p9009_p8 = pnand %p9007_p7, %p9004_p6 }
  0x71   :  { %9012 = shalt.err (!%p9009_p8)
}
  0x72   :  { %s9013_s24 = scalar_lea.vmem %s35_s15, 128  ;;  %p9018_p10 = scmp.lt.s32.totalorder %s35_s15, %s35_s15 }
  0x73   :  { %p9014_p9 = scmp.ne.s32.totalorder %s35_s15, %s9013_s24  ;;  %p9019_p11 = scmp.lt.s32.totalorder %s9013_s24, %s9013_s24 }
  0x75   :  { %p9020_p12 = por %p9019_p11, %p9018_p10 }
  0x77   :  { %p9021_p13 = pnand %p9020_p12, %p9014_p9 }
  0x79   :  { %9024 = shalt.err (!%p9021_p13)
}
  0x7a   :  { %37 = dma.hbm_to_vmem [thread:$0]  %s9832_s0, 128, %s35_s15, [#allocation3]  }
  0x7b   :  { %s9232_s29 = smov [#allocation7]   ;;  %s9233_s25 = smov [#allocation10]  }
  0x7c   :  { %s56_s5 = sshll.u32 %s9232_s29, 4  ;;  %s78_s16 = sshll.u32 %s9233_s25, 4  ;;  %s57_s5 = int_to_ptr.vmem [resolvable:$true] %s56_s5  ;;  %s79_s16 = int_to_ptr.vmem [resolvable:$true] %s78_s16 }
  0x7d   :  { %s9025_s20 = scalar_lea.hbm %s9834_s2, 16 }
  0x7e   :  { %p9026_p0 = scmp.ne.s32.totalorder %s9834_s2, %s9025_s20  ;;  %p9029_p1 = scmp.lt.u32.totalorder %s9025_s20, %s9834_s2 }
  0x80   :  { %p9031_p2 = pnand %p9029_p1, %p9026_p0 }
  0x82   :  { %9034 = shalt.err (!%p9031_p2)
}
  0x83   :  { %s9035_s0 = scalar_lea.vmem %s57_s5, 16  ;;  %s9039_s15 = scalar_lea.vmem %s57_s5, 32 }
  0x84   :  { %p9036_p3 = scmp.ne.s32.totalorder %s57_s5, %s9035_s0  ;;  %p9040_p4 = scmp.lt.s32.totalorder %s57_s5, %s57_s5 }
  0x85   :  { %p9041_p5 = scmp.lt.s32.totalorder %s9039_s15, %s9035_s0 }
  0x87   :  { %p9042_p6 = por %p9041_p5, %p9040_p4 }
  0x89   :  { %p9043_p7 = pnand %p9042_p6, %p9036_p3 }
  0x8b   :  { %9046 = shalt.err (!%p9043_p7)
}
  0x8c   :  { %59 = dma.hbm_to_vmem [thread:$0]  %s9834_s2, 16, %s57_s5, [#allocation6]  }
  0x8d   :  { %s9047_s27 = scalar_lea.hbm %s9836_s4, 32 }
  0x8e   :  { %p9048_p8 = scmp.ne.s32.totalorder %s9836_s4, %s9047_s27  ;;  %p9051_p9 = scmp.lt.u32.totalorder %s9047_s27, %s9836_s4 }
  0x90   :  { %p9053_p10 = pnand %p9051_p9, %p9048_p8 }
  0x92   :  { %9056 = shalt.err (!%p9053_p10)
}
  0x93   :  { %s9057_s26 = scalar_lea.vmem %s79_s16, 32  ;;  %p9062_p12 = scmp.lt.s32.totalorder %s79_s16, %s79_s16 }
  0x94   :  { %p9058_p11 = scmp.ne.s32.totalorder %s79_s16, %s9057_s26  ;;  %p9063_p13 = scmp.lt.s32.totalorder %s9057_s26, %s9057_s26 }
  0x96   :  { %p9064_p0 = por %p9063_p13, %p9062_p12 }
  0x98   :  { %p9065_p1 = pnand %p9064_p0, %p9058_p11 }
  0x9a   :  { %9068 = shalt.err (!%p9065_p1)
}
  0x9b   :  { %81 = dma.hbm_to_vmem [thread:$0]  %s9836_s4, 32, %s79_s16, [#allocation9]  }
  0x9c   :  { %s9234_s5 = smov [#allocation13]   ;;  %s9069_s20 = scalar_lea.hbm %s9838_s6, 8192 }
  0x9d   :  { %s97_s25 = sshll.u32 %s9234_s5, 4  ;;  %p9070_p2 = scmp.ne.s32.totalorder %s9838_s6, %s9069_s20  ;;  %s98_s25 = int_to_ptr.vmem [resolvable:$true] %s97_s25 }
  0x9e   :  { %p9073_p3 = scmp.lt.u32.totalorder %s9069_s20, %s9838_s6 }
  0xa0   :  { %p9075_p4 = pnand %p9073_p3, %p9070_p2 }
  0xa2   :  { %9078 = shalt.err (!%p9075_p4)
}
  0xa3   :  { %s9079_s0 = scalar_lea.vmem %s98_s25, 8192  ;;  %p9084_p6 = scmp.lt.s32.totalorder %s98_s25, %s98_s25 }
  0xa4   :  { %p9080_p5 = scmp.ne.s32.totalorder %s98_s25, %s9079_s0  ;;  %p9085_p7 = scmp.lt.s32.totalorder %s9079_s0, %s9079_s0 }
  0xa6   :  { %p9086_p8 = por %p9085_p7, %p9084_p6 }
  0xa8   :  { %p9087_p9 = pnand %p9086_p8, %p9080_p5 }
  0xaa   :  { %9090 = shalt.err (!%p9087_p9)
}
  0xab   :  { %s9235_s4 = smov 256   ;;  %s9236_s16 = smov 16  }
  0xac   :  { %103 = dma.hbm_to_vmem [thread:$0]  %s9838_s6, 8192, %s98_s25, [#allocation12], %s9235_s4, %s9235_s4, %s9236_s16  }
  0xad   :  { %s9237_s1 = smov [#allocation16]   ;;  %s9238_s7 = smov [#allocation19]  }
  0xae   :  { %s120_s30 = sshll.u32 %s9237_s1, 4  ;;  %s142_s27 = sshll.u32 %s9238_s7, 4  ;;  %s121_s30 = int_to_ptr.vmem [resolvable:$true] %s120_s30  ;;  %s143_s27 = int_to_ptr.vmem [resolvable:$true] %s142_s27 }
  0xaf   :  { %s9091_s24 = scalar_lea.hbm %s9840_s8, 64 }
  0xb0   :  { %p9092_p10 = scmp.ne.s32.totalorder %s9840_s8, %s9091_s24  ;;  %p9095_p11 = scmp.lt.u32.totalorder %s9091_s24, %s9840_s8 }
  0xb2   :  { %p9097_p12 = pnand %p9095_p11, %p9092_p10 }
  0xb4   :  { %9100 = shalt.err (!%p9097_p12)
}
  0xb5   :  { %s9101_s6 = scalar_lea.vmem %s121_s30, 64  ;;  %p9106_p0 = scmp.lt.s32.totalorder %s121_s30, %s121_s30 }
  0xb6   :  { %p9102_p13 = scmp.ne.s32.totalorder %s121_s30, %s9101_s6  ;;  %p9107_p1 = scmp.lt.s32.totalorder %s9101_s6, %s9101_s6 }
  0xb8   :  { %p9108_p2 = por %p9107_p1, %p9106_p0 }
  0xba   :  { %p9109_p3 = pnand %p9108_p2, %p9102_p13 }
  0xbc   :  { %9112 = shalt.err (!%p9109_p3)
}
  0xbd   :  { %123 = dma.hbm_to_vmem [thread:$0]  %s9840_s8, 64, %s121_s30, [#allocation15]  }
  0xbe   :  { %s9113_s20 = scalar_lea.hbm %s9842_s10, 128 }
  0xbf   :  { %p9114_p4 = scmp.ne.s32.totalorder %s9842_s10, %s9113_s20  ;;  %p9117_p5 = scmp.lt.u32.totalorder %s9113_s20, %s9842_s10 }
  0xc1   :  { %p9119_p6 = pnand %p9117_p5, %p9114_p4 }
  0xc3   :  { %9122 = shalt.err (!%p9119_p6)
}
  0xc4   :  { %s9123_s0 = scalar_lea.vmem %s143_s27, 128  ;;  %p9128_p8 = scmp.lt.s32.totalorder %s143_s27, %s143_s27 }
  0xc5   :  { %p9124_p7 = scmp.ne.s32.totalorder %s143_s27, %s9123_s0  ;;  %p9129_p9 = scmp.lt.s32.totalorder %s9123_s0, %s9123_s0 }
  0xc7   :  { %p9130_p10 = por %p9129_p9, %p9128_p8 }
  0xc9   :  { %p9131_p11 = pnand %p9130_p10, %p9124_p7 }
  0xcb   :  { %9134 = shalt.err (!%p9131_p11)
}
  0xcc   :  { %145 = dma.hbm_to_vmem [thread:$0]  %s9842_s10, 128, %s143_s27, [#allocation18]  }
  0xcd   :  { %s9239_s16 = smov [#allocation22]   ;;  %s9135_s30 = scalar_lea.hbm %s9844_s12, 57344 }
  0xce   :  { %s161_s15 = sshll.u32 %s9239_s16, 4  ;;  %p9136_p12 = scmp.ne.s32.totalorder %s9844_s12, %s9135_s30  ;;  %s162_s15 = int_to_ptr.vmem [resolvable:$true] %s161_s15 }
  0xcf   :  { %p9139_p13 = scmp.lt.u32.totalorder %s9135_s30, %s9844_s12 }
  0xd1   :  { %p9141_p0 = pnand %p9139_p13, %p9136_p12 }
  0xd3   :  { %9144 = shalt.err (!%p9141_p0)
}
  0xd4   :  { %s9145_s11 = scalar_lea.vmem %s162_s15, 57344  ;;  %p9150_p2 = scmp.lt.s32.totalorder %s162_s15, %s162_s15 }
  0xd5   :  { %p9146_p1 = scmp.ne.s32.totalorder %s162_s15, %s9145_s11  ;;  %p9151_p3 = scmp.lt.s32.totalorder %s9145_s11, %s9145_s11 }
  0xd7   :  { %p9152_p4 = por %p9151_p3, %p9150_p2 }
  0xd9   :  { %p9153_p5 = pnand %p9152_p4, %p9146_p1 }
  0xdb   :  { %9156 = shalt.err (!%p9153_p5)
}
  0xdc   :  { %s9240_s10 = smov 448   ;;  %s9241_s27 = smov 28  }
  0xdd   :  { %167 = dma.hbm_to_vmem [thread:$0]  %s9844_s12, 57344, %s162_s15, [#allocation21], %s9240_s10, %s9240_s10, %s9241_s27  }
  0xde   :  { %s9242_s29 = smov [#allocation23]   ;;  %s9157_s18 = scalar_lea.hbm %s9845_s13, 112 }
  0xdf   :  { %s174_s6 = sshll.u32 %s9242_s29, 4  ;;  %p9158_p6 = scmp.ne.s32.totalorder %s9845_s13, %s9157_s18  ;;  %s175_s6 = int_to_ptr.vmem [resolvable:$true] %s174_s6 }
  0xe0   :  { %p9161_p7 = scmp.lt.u32.totalorder %s9157_s18, %s9845_s13 }
  0xe2   :  { %p9163_p8 = pnand %p9161_p7, %p9158_p6 }
  0xe4   :  { %9166 = shalt.err (!%p9163_p8)
}
  0xe5   :  { %s9167_s17 = scalar_lea.vmem %s175_s6, 112  ;;  %s9171_s12 = scalar_lea.vmem %s175_s6, 128 }
  0xe6   :  { %p9168_p9 = scmp.ne.s32.totalorder %s175_s6, %s9167_s17  ;;  %p9172_p10 = scmp.lt.s32.totalorder %s175_s6, %s175_s6 }
  0xe7   :  { %p9173_p11 = scmp.lt.s32.totalorder %s9171_s12, %s9167_s17 }
  0xe9   :  { %p9174_p12 = por %p9173_p11, %p9172_p10 }
  0xeb   :  { %p9175_p13 = pnand %p9174_p12, %p9168_p9 }
  0xed   :  { %9178 = shalt.err (!%p9175_p13)
}
  0xee   :  { %177 = dma.hbm_to_vmem [thread:$0]  %s9845_s13, 112, %s175_s6, [#allocation24]  }
  0xef   :  { %9201 = dma.done.wait [#allocation3], 128  }
  0xf0   :  { %9202 = vsyncadd [#allocation3], 4294967168 }
  0xf1   :  { %9203 = dma.done.wait [#allocation6], 1040  }
  0xf2   :  { %9204 = vsyncadd [#allocation6], 4294966256 }
  0xf3   :  { %9205 = dma.done.wait [#allocation9], 2080  }
  0xf4   :  { %9206 = vsyncadd [#allocation9], 4294965216 }
  0xf5   :  { %9207 = dma.done.wait [#allocation12], 8224  }
  0xf6   :  { %9208 = vsyncadd [#allocation12], 4294959072 }
  0xf7   :  { %9209 = dma.done.wait [#allocation15], 128  }
  0xf8   :  { %9210 = vsyncadd [#allocation15], 4294967168 }
  0xf9   :  { %9211 = dma.done.wait [#allocation18], 32896  }
  0xfa   :  { %9212 = vsyncadd [#allocation18], 4294934400 }
  0xfb   :  { %9213 = dma.done.wait [#allocation21], 57472  }
  0xfc   :  { %9214 = vsyncadd [#allocation21], 4294909824 }
  0xfd   :  { %9215 = dma.done.wait [#allocation24], 112  }
  0xfe   :  { %9216 = vsyncadd [#allocation24], 4294967184  ;;  %v9243_v0 = vmov 0.0   ;;  %vm9244_vm0 = vmmov 0   ;;  %v8061_v1 = vld [vmem:[#allocation5] sm:$0xff]   ;;  %v8062_v2 = vld [vmem:[#allocation5 + $0x8] sm:$0xff]  }
  0xff   :  { %7954 = vmatprep.subr.bf16.mxu0 %v9243_v0  ;;  %7970 = vmatprep.mubr.msk.bf16.mxu0 %vm9244_vm0, %v9243_v0  ;;  %v8063_v3 = vld [vmem:[#allocation5 + $0x10] sm:$0xff]   ;;  %v8071_v5 = vld [vmem:[#allocation8] ss:$8 sps:$4 sm:$0xff]   ;;  %v8064_v6 = vld [vmem:[#allocation5 + $0x18] sm:$0xff]   ;;  %v9245_v27 = vmov 0   ;;  %s9247_s13 = smov [#allocation25]  }
 0x100   :  { %7955 = vmatpush3.bf16.msra.mxu0 %v8061_v1  ;;  %v8069_v4 = vld [vmem:[#allocation8 + $0x4] ss:$8 sps:$4 sm:$0xff]   ;;  %v8072_v7 = vld [vmem:[#allocation8 + $0x14] ss:$8 sps:$4 sm:$0xff]   ;;  %v8074_v8 = vld [vmem:[#allocation8 + $0x10] ss:$8 sps:$4 sm:$0xff]   ;;  %465 = vmatprep.mubr.bf16.mxu1 %v9245_v27 }
 0x101   :  { %7956 = vmatprep.subr.bf16.mxu0 %v9243_v0  ;;  %433 = vmatprep.subr.bf16.mxu1 %v8069_v4  ;;  %v8075_v9 = vld [vmem:[#allocation8 + $0x24] ss:$8 sps:$4 sm:$0xff]   ;;  %v8077_v12 = vld [vmem:[#allocation8 + $0x20] ss:$8 sps:$4 sm:$0xff]   ;;  %v8078_v13 = vld [vmem:[#allocation8 + $0x34] ss:$8 sps:$4 sm:$0xff]  }
 0x102   :  { %434 = vmatpush1.bf16.msra.mxu1 %v8071_v5  ;;  %v8065_v10 = vld [vmem:[#allocation5 + $0x20] sm:$0xff]   ;;  %v8066_v11 = vld [vmem:[#allocation5 + $0x28] sm:$0xff]   ;;  %v8080_v14 = vld [vmem:[#allocation8 + $0x30] ss:$8 sps:$4 sm:$0xff]   ;;  %s7048_s8 = sshll.u32 %s9247_s13, 4  ;;  %s7049_s8 = int_to_ptr.vmem [resolvable:$true] %s7048_s8 }
 0x103   :  { %435 = vmatprep.subr.bf16.mxu1 %v8072_v7  ;;  %v8081_v15 = vld [vmem:[#allocation8 + $0x44] ss:$8 sps:$4 sm:$0xff]   ;;  %v8083_v17 = vld [vmem:[#allocation8 + $0x40] ss:$8 sps:$4 sm:$0xff]   ;;  %v8084_v18 = vld [vmem:[#allocation8 + $0x54] ss:$8 sps:$4 sm:$0xff]   ;;  %p9184_p1 = scmp.lt.s32.totalorder %s7049_s8, %s7049_s8 }
 0x104   :  { %7957 = vmatpush3.bf16.msra.mxu0 %v8062_v2  ;;  %v8067_v16 = vld [vmem:[#allocation5 + $0x30] sm:$0xff]   ;;  %v8068_v19 = vld [vmem:[#allocation5 + $0x38] sm:$0xff]   ;;  %v8089_v24 = vld [vmem:[#allocation8 + $0x60] ss:$8 sps:$4 sm:$0xff]   ;;  %s9179_s4 = scalar_lea.vmem %s7049_s8, 896 }
 0x105   :  { %7958 = vmatprep.subr.bf16.mxu0 %v9243_v0  ;;  %v221_v20 = vld [vmem:[#allocation2] sm:$0xff]  ;;  %v8087_v23 = vld [vmem:[#allocation8 + $0x64] ss:$8 sps:$4 sm:$0xff]   ;;  %v7064_v29 = vld [vmem:[#allocation7] ss:$0 sm:$0xff]  ;;  %p9180_p0 = scmp.ne.s32.totalorder %s7049_s8, %s9179_s4  ;;  %p9185_p2 = scmp.lt.s32.totalorder %s9179_s4, %s9179_s4 }
 0x106   :  { %436 = vmatpush1.bf16.msra.mxu1 %v8074_v8  ;;  %v8086_v21 = vld [vmem:[#allocation8 + $0x50] ss:$8 sps:$4 sm:$0xff]   ;;  %v222_v22 = vpack.c.bf16 %v221_v20, %v221_v20  ;;  %v8090_v25 = vld [vmem:[#allocation8 + $0x74] ss:$8 sps:$4 sm:$0xff]  }
 0x107   :  { %437 = vmatprep.subr.bf16.mxu1 %v8075_v9  ;;  %v8092_v26 = vld [vmem:[#allocation8 + $0x70] ss:$8 sps:$4 sm:$0xff]   ;;  %v8093_v37 = vld [vmem:[#allocation13] ss:$16 sps:$4 sm:$0xff]   ;;  %p9186_p3 = por %p9185_p2, %p9184_p1 }
 0x108   :  { %7959 = vmatpush3.bf16.msra.mxu0 %v8063_v3  ;;  %v8095_v28 = vld [vmem:[#allocation13 + $0x4] ss:$16 sps:$4 sm:$0xff]   ;;  %v8096_v40 = vld [vmem:[#allocation13 + $0x20] ss:$16 sps:$4 sm:$0xff]   ;;  %v8143_v5 = vld [vmem:[#allocation13 + $0xc] ss:$16 sps:$4 sm:$0xff]  }
 0x109   :  { %7960 = vmatprep.subr.bf16.mxu0 %v9243_v0  ;;  %v8098_v39 = vld [vmem:[#allocation13 + $0x24] ss:$16 sps:$4 sm:$0xff]   ;;  %v8099_v42 = vld [vmem:[#allocation13 + $0x40] ss:$16 sps:$4 sm:$0xff]   ;;  %p9187_p4 = pnand %p9186_p3, %p9180_p0 }
 0x10a   :  { %438 = vmatpush1.bf16.msra.mxu1 %v8077_v12  ;;  %v8101_v41 = vld [vmem:[#allocation13 + $0x44] ss:$16 sps:$4 sm:$0xff]   ;;  %v8102_v44 = vld [vmem:[#allocation13 + $0x60] ss:$16 sps:$4 sm:$0xff]  }
 0x10b   :  { %439 = vmatprep.subr.bf16.mxu1 %v8078_v13  ;;  %v8104_v43 = vld [vmem:[#allocation13 + $0x64] ss:$16 sps:$4 sm:$0xff]   ;;  %v8105_v46 = vld [vmem:[#allocation13 + $0x80] ss:$16 sps:$4 sm:$0xff]  }
 0x10c   :  { %7961 = vmatpush3.bf16.msra.mxu0 %v8064_v6  ;;  %v8107_v45 = vld [vmem:[#allocation13 + $0x84] ss:$16 sps:$4 sm:$0xff]   ;;  %v8108_v48 = vld [vmem:[#allocation13 + $0xa0] ss:$16 sps:$4 sm:$0xff]  }
 0x10d   :  { %7962 = vmatprep.subr.bf16.mxu0 %v9243_v0  ;;  %v8110_v47 = vld [vmem:[#allocation13 + $0xa4] ss:$16 sps:$4 sm:$0xff]   ;;  %v8111_v50 = vld [vmem:[#allocation13 + $0xc0] ss:$16 sps:$4 sm:$0xff]  }
 0x10e   :  { %440 = vmatpush1.bf16.msra.mxu1 %v8080_v14  ;;  %v8113_v49 = vld [vmem:[#allocation13 + $0xc4] ss:$16 sps:$4 sm:$0xff]   ;;  %v8114_v52 = vld [vmem:[#allocation13 + $0xe0] ss:$16 sps:$4 sm:$0xff]  }
 0x10f   :  { %441 = vmatprep.subr.bf16.mxu1 %v8081_v15  ;;  %v8116_v51 = vld [vmem:[#allocation13 + $0xe4] ss:$16 sps:$4 sm:$0xff]   ;;  %v8117_v54 = vld [vmem:[#allocation13 + $0x100] ss:$16 sps:$4 sm:$0xff]  }
 0x110   :  { %7963 = vmatpush3.bf16.msra.mxu0 %v8065_v10  ;;  %v8119_v53 = vld [vmem:[#allocation13 + $0x104] ss:$16 sps:$4 sm:$0xff]   ;;  %v8120_v56 = vld [vmem:[#allocation13 + $0x120] ss:$16 sps:$4 sm:$0xff]  }
 0x111   :  { %7964 = vmatprep.subr.bf16.mxu0 %v9243_v0  ;;  %v8122_v55 = vld [vmem:[#allocation13 + $0x124] ss:$16 sps:$4 sm:$0xff]   ;;  %v8123_v58 = vld [vmem:[#allocation13 + $0x140] ss:$16 sps:$4 sm:$0xff]  }
 0x112   :  { %442 = vmatpush1.bf16.msra.mxu1 %v8083_v17  ;;  %v8125_v57 = vld [vmem:[#allocation13 + $0x144] ss:$16 sps:$4 sm:$0xff]   ;;  %v8126_v60 = vld [vmem:[#allocation13 + $0x160] ss:$16 sps:$4 sm:$0xff]  }
 0x113   :  { %443 = vmatprep.subr.bf16.mxu1 %v8084_v18  ;;  %v8128_v59 = vld [vmem:[#allocation13 + $0x164] ss:$16 sps:$4 sm:$0xff]   ;;  %v8129_v62 = vld [vmem:[#allocation13 + $0x180] ss:$16 sps:$4 sm:$0xff]  }
 0x114   :  { %7965 = vmatpush3.bf16.msra.mxu0 %v8066_v11  ;;  %v8131_v61 = vld [vmem:[#allocation13 + $0x184] ss:$16 sps:$4 sm:$0xff]   ;;  %v8135_v2 = vld [vmem:[#allocation13 + $0x1c0] ss:$16 sps:$4 sm:$0xff]  }
 0x115   :  { %7966 = vmatprep.subr.bf16.mxu0 %v9243_v0  ;;  %v8134_v63 = vld [vmem:[#allocation13 + $0x1a4] ss:$16 sps:$4 sm:$0xff]   ;;  %v8138_v4 = vld [vmem:[#allocation13 + $0x1e0] ss:$16 sps:$4 sm:$0xff]  }
 0x116   :  { %444 = vmatpush1.bf16.msra.mxu1 %v8086_v21  ;;  %v8137_v1 = vld [vmem:[#allocation13 + $0x1c4] ss:$16 sps:$4 sm:$0xff]  }
 0x117   :  { %445 = vmatprep.subr.bf16.mxu1 %v8087_v23  ;;  %v8140_v3 = vld [vmem:[#allocation13 + $0x1e4] ss:$16 sps:$4 sm:$0xff]  }
 0x118   :  { %7967 = vmatpush3.bf16.msra.mxu0 %v8067_v16 }
 0x119   :  { %7968 = vmatprep.subr.bf16.mxu0 %v9243_v0  ;;  %v8132_v0 = vld [vmem:[#allocation13 + $0x1a0] ss:$16 sps:$4 sm:$0xff]  }
 0x11a   :  { %446 = vmatpush1.bf16.msra.mxu1 %v8089_v24 }
 0x11b   :  { %447 = vmatprep.subr.bf16.mxu1 %v8090_v25 }
 0x11c   :  { %7969 = vmatpush3.bf16.msra.mxu0 %v8068_v19 }
 0x11e   :  { %448 = vmatpush1.bf16.msra.mxu1 %v8092_v26 }
 0x11f   :  { %7971 = vmatmul.mubr.bf16.vlgmr.msra.gmra.mrb[0].mxu0 %v222_v22  ;;  %971 = vmatprep.subr.bf16.mxu1 %v8095_v28 }
 0x1f2   :  { %v328_v30 = vpop.f32.mrb[0].mxu0 }
 0x1f3   :  { %v329_v31 = vadd.f32 %v7064_v29, %v328_v30  ;;  %v7972_v32 = vpop.f32.mrb[1].mxu0 }
 0x1f4   :  { %v331_v33 = vpop.f32.mrb[2].mxu0 }
 0x1f5   :  { %v334_v34 = vmul.f32 0.2, %v329_v31  ;;  %v7973_v35 = vpop.f32.mrb[3].mxu0 }
 0x1f7   :  { %v335_v36 = vmax.f32 %v329_v31, %v334_v34 }
 0x1f9   :  { %v336_v38 = vpack.c.bf16 %v335_v36, %v335_v36 }
 0x1fb   :  { %466 = vmatmul.mubr.bf16.vlgmr.msra.gmra.mrb[0].mxu1 %v336_v38 }
 0x1fc   :  { %972 = vmatpush1.bf16.msra.mxu1 %v8093_v37 }
 0x1fd   :  { %973 = vmatprep.subr.bf16.mxu1 %v8098_v39 }
 0x200   :  { %974 = vmatpush1.bf16.msra.mxu1 %v8096_v40 }
 0x201   :  { %975 = vmatprep.subr.bf16.mxu1 %v8101_v41 }
 0x204   :  { %976 = vmatpush1.bf16.msra.mxu1 %v8099_v42 }
 0x205   :  { %977 = vmatprep.subr.bf16.mxu1 %v8104_v43 }
 0x208   :  { %978 = vmatpush1.bf16.msra.mxu1 %v8102_v44 }
 0x209   :  { %979 = vmatprep.subr.bf16.mxu1 %v8107_v45 }
 0x20c   :  { %980 = vmatpush1.bf16.msra.mxu1 %v8105_v46  ;;  %v9246_v46 = vmov 1966171168  }
 0x20d   :  { %981 = vmatprep.subr.bf16.mxu1 %v8110_v47  ;;  %v518_v47 = vunpack.c.l.s4 %v9246_v46  ;;  %v8183_v46 = vld [vmem:[#allocation13 + $0x1c8] ss:$16 sps:$4 sm:$0xff]  }
 0x210   :  { %982 = vmatpush1.bf16.msra.mxu1 %v8108_v48  ;;  %v520_v48 = vlaneseq }
 0x211   :  { %983 = vmatprep.subr.bf16.mxu1 %v8113_v49  ;;  %v519_v49 = vunpack.c.0.s8 %v518_v47  ;;  %v8188_v47 = vld [vmem:[#allocation13 + $0x1ec] ss:$16 sps:$4 sm:$0xff]  }
 0x214   :  { %984 = vmatpush1.bf16.msra.mxu1 %v8111_v50  ;;  %v9491_v50 = vshrl.u32 %v520_v48, 7  ;;  %v8186_v48 = vld [vmem:[#allocation13 + $0x1e8] ss:$16 sps:$4 sm:$0xff]  }
 0x215   :  { %985 = vmatprep.subr.bf16.mxu1 %v8116_v51 }
 0x218   :  { %986 = vmatpush1.bf16.msra.mxu1 %v8114_v52  ;;  %v9494_v52 = vsub.s32 %v519_v49, %v9491_v50  ;;  %v1257_v49 = vld [vmem:[#allocation17] sm:$0xff] }
 0x219   :  { %987 = vmatprep.subr.bf16.mxu1 %v8119_v53 }
 0x21c   :  { %988 = vmatpush1.bf16.msra.mxu1 %v8117_v54 }
 0x21d   :  { %989 = vmatprep.subr.bf16.mxu1 %v8122_v55 }
 0x220   :  { %990 = vmatpush1.bf16.msra.mxu1 %v8120_v56  ;;  %v509_v56 = vld [vmem:[#allocation10] sm:$0x3] }
 0x221   :  { %991 = vmatprep.subr.bf16.mxu1 %v8125_v57 }
 0x224   :  { %992 = vmatpush1.bf16.msra.mxu1 %v8123_v58  ;;  %v9499_v58 = vsub.s32 0, %v9491_v50 }
 0x225   :  { %993 = vmatprep.subr.bf16.mxu1 %v8128_v59  ;;  %v9502_v59 = vsub.s32 1, %v9491_v50 }
 0x228   :  { %994 = vmatpush1.bf16.msra.mxu1 %v8126_v60 }
 0x229   :  { %995 = vmatprep.subr.bf16.mxu1 %v8131_v61 }
 0x22c   :  { %996 = vmatpush1.bf16.msra.mxu1 %v8129_v62 }
 0x22d   :  { %997 = vmatprep.subr.bf16.mxu1 %v8134_v63 }
 0x230   :  { %998 = vmatpush1.bf16.msra.mxu1 %v8132_v0 }
 0x231   :  { %999 = vmatprep.subr.bf16.mxu1 %v8137_v1 }
 0x234   :  { %1000 = vmatpush1.bf16.msra.mxu1 %v8135_v2 }
 0x235   :  { %1001 = vmatprep.subr.bf16.mxu1 %v8140_v3 }
 0x238   :  { %1002 = vmatpush1.bf16.msra.mxu1 %v8138_v4 }
 0x239   :  { %1012 = vmatprep.subr.bf16.mxu1 %v8143_v5  ;;  %v533_v5 = vld [vmem:[#allocation11] sm:$0x3] }
 0x2ce   :  { %v467_v6 = vpop.f32.mrb[0].mxu1 }
 0x2cf   :  { %v474_v7 = vrot.slane %v467_v6, 4  ;;  %v489_v8 = vmul.f32 %v467_v6, %v467_v6  ;;  %v469_v9 = vpop.f32.mrb[1].mxu1 }
 0x2d0   :  { %v480_v10 = vrot.slane %v469_v9, 4  ;;  %v490_v11 = vmul.f32 %v469_v9, %v469_v9  ;;  %v471_v12 = vpop.f32.mrb[2].mxu1 }
 0x2d1   :  { %v475_v13 = vadd.f32 %v474_v7, %v467_v6  ;;  %v491_v14 = vrot.slane %v489_v8, 4  ;;  %v472_v15 = vpop.f32.mrb[3].mxu1 }
 0x2d2   :  { %v481_v16 = vadd.f32 %v480_v10, %v469_v9  ;;  %v497_v17 = vrot.slane %v490_v11, 4 }
 0x2d3   :  { %v476_v18 = vrot.slane %v475_v13, 2  ;;  %v492_v19 = vadd.f32 %v491_v14, %v489_v8 }
 0x2d4   :  { %v482_v20 = vrot.slane %v481_v16, 2  ;;  %v498_v21 = vadd.f32 %v497_v17, %v490_v11 }
 0x2d5   :  { %v477_v22 = vadd.f32 %v476_v18, %v475_v13  ;;  %v493_v23 = vrot.slane %v492_v19, 2 }
 0x2d6   :  { %v483_v24 = vadd.f32 %v482_v20, %v481_v16  ;;  %v499_v25 = vrot.slane %v498_v21, 2  ;;  %v8144_v20 = vld [vmem:[#allocation13 + $0x28] ss:$16 sps:$4 sm:$0xff]  }
 0x2d7   :  { %v478_v26 = vrot.slane %v477_v22, 1  ;;  %v494_v27 = vadd.f32 %v493_v23, %v492_v19  ;;  %v8146_v19 = vld [vmem:[#allocation13 + $0x2c] ss:$16 sps:$4 sm:$0xff]  }
 0x2d8   :  { %v484_v28 = vrot.slane %v483_v24, 1  ;;  %v500_v29 = vadd.f32 %v499_v25, %v498_v21  ;;  %v8149_v21 = vld [vmem:[#allocation13 + $0x4c] ss:$16 sps:$4 sm:$0xff]  }
 0x2d9   :  { %v479_v30 = vadd.f32 %v478_v26, %v477_v22  ;;  %v495_v31 = vrot.slane %v494_v27, 1  ;;  %v8147_v22 = vld [vmem:[#allocation13 + $0x48] ss:$16 sps:$4 sm:$0xff]   ;;  %v8152_v23 = vld [vmem:[#allocation13 + $0x6c] ss:$16 sps:$4 sm:$0xff]  }
 0x2da   :  { %v485_v32 = vadd.f32 %v484_v28, %v483_v24  ;;  %v501_v33 = vrot.slane %v500_v29, 1  ;;  %v8150_v24 = vld [vmem:[#allocation13 + $0x68] ss:$16 sps:$4 sm:$0xff]   ;;  %v8155_v25 = vld [vmem:[#allocation13 + $0x8c] ss:$16 sps:$4 sm:$0xff]  }
 0x2db   :  { %v487_v34 = vmul.f32 0.125, %v479_v30  ;;  %v496_v35 = vadd.f32 %v495_v31, %v494_v27  ;;  %v8153_v26 = vld [vmem:[#allocation13 + $0x88] ss:$16 sps:$4 sm:$0xff]   ;;  %v8158_v27 = vld [vmem:[#allocation13 + $0xac] ss:$16 sps:$4 sm:$0xff]  }
 0x2dc   :  { %v488_v36 = vmul.f32 0.125, %v485_v32  ;;  %v502_v37 = vadd.f32 %v501_v33, %v500_v29  ;;  %v8156_v28 = vld [vmem:[#allocation13 + $0xa8] ss:$16 sps:$4 sm:$0xff]   ;;  %v8161_v29 = vld [vmem:[#allocation13 + $0xcc] ss:$16 sps:$4 sm:$0xff]  }
 0x2dd   :  { %v503_v38 = vmul.f32 0.125, %v496_v35  ;;  %v505_v39 = vmul.f32 %v487_v34, %v487_v34  ;;  %v8159_v30 = vld [vmem:[#allocation13 + $0xc8] ss:$16 sps:$4 sm:$0xff]   ;;  %v8164_v31 = vld [vmem:[#allocation13 + $0xec] ss:$16 sps:$4 sm:$0xff]  }
 0x2de   :  { %v504_v40 = vmul.f32 0.125, %v502_v37  ;;  %v506_v41 = vmul.f32 %v488_v36, %v488_v36  ;;  %v8162_v32 = vld [vmem:[#allocation13 + $0xe8] ss:$16 sps:$4 sm:$0xff]   ;;  %v8167_v33 = vld [vmem:[#allocation13 + $0x10c] ss:$16 sps:$4 sm:$0xff]  }
 0x2df   :  { %v507_v42 = vsub.f32 %v503_v38, %v505_v39  ;;  %v8170_v35 = vld [vmem:[#allocation13 + $0x12c] ss:$16 sps:$4 sm:$0xff]   ;;  %v8171_v38 = vld [vmem:[#allocation13 + $0x148] ss:$16 sps:$4 sm:$0xff]  }
 0x2e0   :  { %v508_v43 = vsub.f32 %v504_v40, %v506_v41  ;;  %v8173_v37 = vld [vmem:[#allocation13 + $0x14c] ss:$16 sps:$4 sm:$0xff]   ;;  %v8174_v40 = vld [vmem:[#allocation13 + $0x168] ss:$16 sps:$4 sm:$0xff]  }
 0x2e1   :  { %v510_v44 = vadd.f32 0.8, %v507_v42  ;;  %v8176_v39 = vld [vmem:[#allocation13 + $0x16c] ss:$16 sps:$4 sm:$0xff]   ;;  %v8177_v42 = vld [vmem:[#allocation13 + $0x188] ss:$16 sps:$4 sm:$0xff]  }
 0x2e2   :  { %v511_v45 = vadd.f32 0.8, %v508_v43  ;;  %v8179_v41 = vld [vmem:[#allocation13 + $0x18c] ss:$16 sps:$4 sm:$0xff]  }
 0x2e3   :  { %8829 = vrsqrt.f32 %v510_v44  ;;  %v8182_v43 = vld [vmem:[#allocation13 + $0x1ac] ss:$16 sps:$4 sm:$0xff]   ;;  %v8180_v44 = vld [vmem:[#allocation13 + $0x1a8] ss:$16 sps:$4 sm:$0xff]  }
 0x2e4   :  { %8831 = vrsqrt.f32 %v511_v45  ;;  %v8185_v45 = vld [vmem:[#allocation13 + $0x1cc] ss:$16 sps:$4 sm:$0xff]  }
 0x2ed   :  { %v8830_v51 = vpop.eup %8829 }
 0x2ee   :  { %v8832_v53 = vpop.eup %8831 }
 0x2ef   :  { %v516_v54 = vcombine.low %v8830_v51, %v8832_v53  ;;  %v1261_v51 = vld [vmem:[#allocation17 + $0x20] sm:$0xff]  ;;  %v1258_v53 = vld [vmem:[#allocation17 + $0x8] sm:$0xff] }
 0x2f1   :  { %v523_v55 = vrot.slane %v516_v54, %v9494_v52  ;;  %v7154_v54 = vcombine.high %v1257_v49, %v1261_v51 }
 0x2f3   :  { %v530_v57 = vrot.slane %v523_v55, %v9494_v52  ;;  %v1262_v55 = vld [vmem:[#allocation17 + $0x28] sm:$0xff]  ;;  %2793 = vmatprep.subr.bf16.mxu0 %v7154_v54 }
 0x2f5   :  { %v532_v60 = vmul.f32 %v530_v57, %v509_v56  ;;  %v7153_v56 = vcombine.low %v1257_v49, %v1261_v51  ;;  %v7155_v57 = vcombine.low %v1258_v53, %v1262_v55  ;;  %v1318_v49 = vld [vmem:[#allocation17 + $0x1e8] sm:$0xff] }
 0x2f7   :  { %v538_v61 = vrot.slane %v532_v60, %v9499_v58  ;;  %v542_v62 = vrot.slane %v532_v60, %v9502_v59  ;;  %v7156_v60 = vcombine.high %v1258_v53, %v1262_v55  ;;  %2794 = vmatpush1.bf16.msra.mxu0 %v7153_v56  ;;  %v1321_v55 = vld [vmem:[#allocation17 + $0x200] sm:$0xff] }
 0x2f8   :  { %v1325_v56 = vld [vmem:[#allocation17 + $0x220] sm:$0xff] }
 0x2f9   :  { %v545_v63 = vmul.f32 %v538_v61, %v487_v34  ;;  %v546_v0 = vmul.f32 %v542_v62, %v488_v36  ;;  %v567_v1 = vmul.f32 %v542_v62, %v469_v9  ;;  %v566_v2 = vmul.f32 %v538_v61, %v467_v6  ;;  %v8141_v9 = vld [vmem:[#allocation13 + $0x8] ss:$16 sps:$4 sm:$0xff]  }
 0x2fa   :  { %v8165_v34 = vld [vmem:[#allocation13 + $0x108] ss:$16 sps:$4 sm:$0xff]  }
 0x2fb   :  { %v549_v3 = vcombine.low %v545_v63, %v546_v0  ;;  %v8168_v36 = vld [vmem:[#allocation13 + $0x128] ss:$16 sps:$4 sm:$0xff]   ;;  %v1266_v63 = vld [vmem:[#allocation17 + $0x48] sm:$0xff] }
 0x2fc   :  { %v1265_v61 = vld [vmem:[#allocation17 + $0x40] sm:$0xff] }
 0x2fd   :  { %v556_v4 = vrot.slane %v549_v3, %v9494_v52  ;;  %v1269_v62 = vld [vmem:[#allocation17 + $0x60] sm:$0xff] }
 0x2fe   :  { %v7162_v0 = vcombine.high %v1265_v61, %v1269_v62 }
 0x2ff   :  { %v563_v7 = vrot.slane %v556_v4, %v9494_v52 }
 0x300   :  { %2795 = vmatprep.subr.bf16.mxu0 %v7162_v0 }
 0x301   :  { %v565_v8 = vsub.f32 %v533_v5, %v563_v7  ;;  %v1273_v5 = vld [vmem:[#allocation17 + $0x80] sm:$0xff] }
 0x302   :  { %v1277_v7 = vld [vmem:[#allocation17 + $0xa0] sm:$0xff] }
 0x303   :  { %v576_v10 = vrot.slane %v565_v8, %v9502_v59  ;;  %v572_v11 = vrot.slane %v565_v8, %v9499_v58  ;;  %v1274_v8 = vld [vmem:[#allocation17 + $0x88] sm:$0xff] }
 0x305   :  { %v580_v12 = vadd.f32 %v576_v10, %v567_v1  ;;  %v579_v13 = vadd.f32 %v572_v11, %v566_v2  ;;  %v1270_v1 = vld [vmem:[#allocation17 + $0x68] sm:$0xff]  ;;  %v7161_v2 = vcombine.low %v1265_v61, %v1269_v62  ;;  %v7170_v10 = vcombine.high %v1273_v5, %v1277_v7 }
 0x306   :  { %v7163_v3 = vcombine.low %v1266_v63, %v1270_v1  ;;  %v7164_v4 = vcombine.high %v1266_v63, %v1270_v1  ;;  %v1278_v11 = vld [vmem:[#allocation17 + $0xa8] sm:$0xff]  ;;  %v7217_v62 = vcombine.low %v1321_v55, %v1325_v56  ;;  %v1329_v1 = vld [vmem:[#allocation17 + $0x240] sm:$0xff] }
 0x307   :  { %v582_v14 = vmul.f32 0.2, %v580_v12  ;;  %v581_v15 = vmul.f32 0.2, %v579_v13  ;;  %2796 = vmatpush1.bf16.msra.mxu0 %v7161_v2  ;;  %v1326_v61 = vld [vmem:[#allocation17 + $0x228] sm:$0xff]  ;;  %v1333_v2 = vld [vmem:[#allocation17 + $0x260] sm:$0xff] }
 0x308   :  { %2797 = vmatprep.subr.bf16.mxu0 %v7170_v10 }
 0x309   :  { %v584_v16 = vmax.f32 %v580_v12, %v582_v14  ;;  %v583_v17 = vmax.f32 %v579_v13, %v581_v15  ;;  %v7169_v12 = vcombine.low %v1273_v5, %v1277_v7  ;;  %v7171_v13 = vcombine.low %v1274_v8, %v1278_v11  ;;  %v1281_v15 = vld [vmem:[#allocation17 + $0xc0] sm:$0xff]  ;;  %v1334_v5 = vld [vmem:[#allocation17 + $0x268] sm:$0xff] }
 0x30a   :  { %v7172_v14 = vcombine.high %v1274_v8, %v1278_v11  ;;  %v7225_v7 = vcombine.low %v1329_v1, %v1333_v2  ;;  %v1337_v11 = vld [vmem:[#allocation17 + $0x280] sm:$0xff] }
 0x30b   :  { %v586_v18 = vpack.c.bf16 %v584_v16, %v584_v16  ;;  %v9510_v6 = vpack.c.bf16 %v583_v17, %v583_v17  ;;  %2798 = vmatpush1.bf16.msra.mxu0 %v7169_v12  ;;  %v1285_v16 = vld [vmem:[#allocation17 + $0xe0] sm:$0xff]  ;;  %v1282_v17 = vld [vmem:[#allocation17 + $0xc8] sm:$0xff] }
 0x30c   :  { %v1341_v12 = vld [vmem:[#allocation17 + $0x2a0] sm:$0xff] }
 0x30d   :  { %1003 = vmatprep.mubr.bf16.mxu1 %v586_v18 }
 0x30e   :  { %1004 = vmatmul.mubr.bf16.vlgmr.msra.gmra.mrb[4].mxu1 %v9510_v6 }
 0x30f   :  { %1013 = vmatpush1.bf16.msra.mxu1 %v8141_v9  ;;  %1044 = vmatprep.mubr.bf16.mxu1 %v586_v18  ;;  %v7178_v18 = vcombine.high %v1281_v15, %v1285_v16  ;;  %v1286_v9 = vld [vmem:[#allocation17 + $0xe8] sm:$0xff] }
 0x310   :  { %1014 = vmatprep.subr.bf16.mxu1 %v8146_v19  ;;  %v7179_v19 = vcombine.low %v1282_v17, %v1286_v9 }
 0x311   :  { %2799 = vmatprep.subr.bf16.mxu0 %v7178_v18 }
 0x313   :  { %1015 = vmatpush1.bf16.msra.mxu1 %v8144_v20  ;;  %v7180_v20 = vcombine.high %v1282_v17, %v1286_v9  ;;  %v1345_v9 = vld [vmem:[#allocation17 + $0x2c0] sm:$0xff] }
 0x314   :  { %1016 = vmatprep.subr.bf16.mxu1 %v8149_v21  ;;  %v1289_v21 = vld [vmem:[#allocation17 + $0x100] sm:$0xff] }
 0x317   :  { %1017 = vmatpush1.bf16.msra.mxu1 %v8147_v22  ;;  %v1293_v22 = vld [vmem:[#allocation17 + $0x120] sm:$0xff] }
 0x318   :  { %1018 = vmatprep.subr.bf16.mxu1 %v8152_v23  ;;  %v1290_v23 = vld [vmem:[#allocation17 + $0x108] sm:$0xff] }
 0x31b   :  { %1019 = vmatpush1.bf16.msra.mxu1 %v8150_v24  ;;  %v7186_v24 = vcombine.high %v1289_v21, %v1293_v22 }
 0x31c   :  { %1020 = vmatprep.subr.bf16.mxu1 %v8155_v25  ;;  %v1294_v25 = vld [vmem:[#allocation17 + $0x128] sm:$0xff] }
 0x31f   :  { %1021 = vmatpush1.bf16.msra.mxu1 %v8153_v26  ;;  %v7185_v26 = vcombine.low %v1289_v21, %v1293_v22  ;;  %v1350_v21 = vld [vmem:[#allocation17 + $0x2e8] sm:$0xff] }
 0x320   :  { %1022 = vmatprep.subr.bf16.mxu1 %v8158_v27  ;;  %v7187_v27 = vcombine.low %v1290_v23, %v1294_v25 }
 0x323   :  { %1023 = vmatpush1.bf16.msra.mxu1 %v8156_v28  ;;  %v7188_v28 = vcombine.high %v1290_v23, %v1294_v25  ;;  %v1353_v25 = vld [vmem:[#allocation17 + $0x300] sm:$0xff] }
 0x324   :  { %1024 = vmatprep.subr.bf16.mxu1 %v8161_v29  ;;  %v1297_v29 = vld [vmem:[#allocation17 + $0x140] sm:$0xff] }
 0x327   :  { %1025 = vmatpush1.bf16.msra.mxu1 %v8159_v30  ;;  %v1301_v30 = vld [vmem:[#allocation17 + $0x160] sm:$0xff] }
 0x328   :  { %1026 = vmatprep.subr.bf16.mxu1 %v8164_v31  ;;  %v7194_v31 = vcombine.high %v1297_v29, %v1301_v30 }
 0x32b   :  { %1027 = vmatpush1.bf16.msra.mxu1 %v8162_v32  ;;  %v1298_v32 = vld [vmem:[#allocation17 + $0x148] sm:$0xff] }
 0x32c   :  { %1028 = vmatprep.subr.bf16.mxu1 %v8167_v33  ;;  %v1302_v33 = vld [vmem:[#allocation17 + $0x168] sm:$0xff] }
 0x32f   :  { %1029 = vmatpush1.bf16.msra.mxu1 %v8165_v34  ;;  %v7193_v34 = vcombine.low %v1297_v29, %v1301_v30  ;;  %v1358_v29 = vld [vmem:[#allocation17 + $0x328] sm:$0xff] }
 0x330   :  { %1030 = vmatprep.subr.bf16.mxu1 %v8170_v35  ;;  %v7195_v35 = vcombine.low %v1298_v32, %v1302_v33 }
 0x333   :  { %1031 = vmatpush1.bf16.msra.mxu1 %v8168_v36  ;;  %v7196_v36 = vcombine.high %v1298_v32, %v1302_v33  ;;  %v1361_v33 = vld [vmem:[#allocation17 + $0x340] sm:$0xff] }
 0x334   :  { %1032 = vmatprep.subr.bf16.mxu1 %v8173_v37  ;;  %v1305_v37 = vld [vmem:[#allocation17 + $0x180] sm:$0xff] }
 0x337   :  { %1033 = vmatpush1.bf16.msra.mxu1 %v8171_v38  ;;  %v1309_v38 = vld [vmem:[#allocation17 + $0x1a0] sm:$0xff] }
 0x338   :  { %1034 = vmatprep.subr.bf16.mxu1 %v8176_v39  ;;  %v1306_v39 = vld [vmem:[#allocation17 + $0x188] sm:$0xff] }
 0x33b   :  { %1035 = vmatpush1.bf16.msra.mxu1 %v8174_v40  ;;  %v7202_v40 = vcombine.high %v1305_v37, %v1309_v38 }
 0x33c   :  { %1036 = vmatprep.subr.bf16.mxu1 %v8179_v41  ;;  %v1310_v41 = vld [vmem:[#allocation17 + $0x1a8] sm:$0xff] }
 0x33f   :  { %1037 = vmatpush1.bf16.msra.mxu1 %v8177_v42  ;;  %v7201_v42 = vcombine.low %v1305_v37, %v1309_v38  ;;  %v1366_v37 = vld [vmem:[#allocation17 + $0x368] sm:$0xff] }
 0x340   :  { %1038 = vmatprep.subr.bf16.mxu1 %v8182_v43  ;;  %v7203_v43 = vcombine.low %v1306_v39, %v1310_v41 }
 0x343   :  { %1039 = vmatpush1.bf16.msra.mxu1 %v8180_v44  ;;  %v7204_v44 = vcombine.high %v1306_v39, %v1310_v41  ;;  %v1369_v41 = vld [vmem:[#allocation17 + $0x380] sm:$0xff] }
 0x344   :  { %1040 = vmatprep.subr.bf16.mxu1 %v8185_v45  ;;  %v1313_v45 = vld [vmem:[#allocation17 + $0x1c0] sm:$0xff] }
 0x347   :  { %1041 = vmatpush1.bf16.msra.mxu1 %v8183_v46  ;;  %v1317_v46 = vld [vmem:[#allocation17 + $0x1e0] sm:$0xff] }
 0x348   :  { %1042 = vmatprep.subr.bf16.mxu1 %v8188_v47  ;;  %v1314_v47 = vld [vmem:[#allocation17 + $0x1c8] sm:$0xff]  ;;  %v7209_v51 = vcombine.low %v1313_v45, %v1317_v46 }
 0x349   :  { %v7211_v53 = vcombine.low %v1314_v47, %v1318_v49  ;;  %v7212_v54 = vcombine.high %v1314_v47, %v1318_v49  ;;  %v1377_v49 = vld [vmem:[#allocation17 + $0x3c0] sm:$0xff] }
 0x34b   :  { %1043 = vmatpush1.bf16.msra.mxu1 %v8186_v48  ;;  %v7210_v48 = vcombine.high %v1313_v45, %v1317_v46  ;;  %v1374_v45 = vld [vmem:[#allocation17 + $0x3a8] sm:$0xff] }
 0x34c   :  { %2875 = vmatprep.subr.bf16.mxu1 %v7156_v60  ;;  %v7218_v60 = vcombine.high %v1321_v55, %v1325_v56  ;;  %v1382_v56 = vld [vmem:[#allocation17 + $0x3e8] sm:$0xff] }
 0x34e   :  { %1045 = vmatmul.mubr.bf16.vlgmr.msra.gmra.mrb[8].mxu1 %v9510_v6  ;;  %v7177_v6 = vcombine.low %v1281_v15, %v1285_v16  ;;  %v1342_v15 = vld [vmem:[#allocation17 + $0x2a8] sm:$0xff]  ;;  %v7233_v16 = vcombine.low %v1337_v11, %v1341_v12 }
 0x34f   :  { %2876 = vmatpush1.bf16.msra.mxu1 %v7155_v57  ;;  %v1322_v57 = vld [vmem:[#allocation17 + $0x208] sm:$0xff] }
 0x350   :  { %2877 = vmatprep.subr.bf16.mxu1 %v7164_v4  ;;  %2800 = vmatpush1.bf16.msra.mxu0 %v7177_v6  ;;  %v7219_v63 = vcombine.low %v1322_v57, %v1326_v61  ;;  %v7220_v0 = vcombine.high %v1322_v57, %v1326_v61  ;;  %v7226_v4 = vcombine.high %v1329_v1, %v1333_v2  ;;  %v1349_v6 = vld [vmem:[#allocation17 + $0x2e0] sm:$0xff] }
 0x351   :  { %2801 = vmatprep.subr.bf16.mxu0 %v7186_v24  ;;  %v7241_v22 = vcombine.low %v1345_v9, %v1349_v6  ;;  %v9521_v1 = vld [vmem:[#allocation17 + $0x400] sm:$0xff] }
 0x352   :  { %v9523_v2 = vld [vmem:[#allocation17 + $0x420] sm:$0xff] }
 0x353   :  { %2878 = vmatpush1.bf16.msra.mxu1 %v7163_v3  ;;  %v1330_v3 = vld [vmem:[#allocation17 + $0x248] sm:$0xff] }
 0x354   :  { %2879 = vmatprep.subr.bf16.mxu1 %v7172_v14  ;;  %2802 = vmatpush1.bf16.msra.mxu0 %v7185_v26  ;;  %v7227_v8 = vcombine.low %v1330_v3, %v1334_v5  ;;  %v7228_v10 = vcombine.high %v1330_v3, %v1334_v5  ;;  %v1338_v14 = vld [vmem:[#allocation17 + $0x288] sm:$0xff]  ;;  %v1357_v26 = vld [vmem:[#allocation17 + $0x320] sm:$0xff] }
 0x355   :  { %2803 = vmatprep.subr.bf16.mxu0 %v7194_v31  ;;  %v7235_v17 = vcombine.low %v1338_v14, %v1342_v15  ;;  %v7236_v18 = vcombine.high %v1338_v14, %v1342_v15  ;;  %v7249_v30 = vcombine.low %v1353_v25, %v1357_v26  ;;  %v9525_v3 = vld [vmem:[#allocation17 + $0x408] sm:$0xff]  ;;  %v7281_v14 = vcombine.low %v9521_v1, %v9523_v2 }
 0x357   :  { %2880 = vmatpush1.bf16.msra.mxu1 %v7171_v13  ;;  %v7234_v13 = vcombine.high %v1337_v11, %v1341_v12 }
 0x358   :  { %2881 = vmatprep.subr.bf16.mxu1 %v7180_v20  ;;  %2804 = vmatpush1.bf16.msra.mxu0 %v7193_v34  ;;  %v7242_v20 = vcombine.high %v1345_v9, %v1349_v6  ;;  %v1365_v34 = vld [vmem:[#allocation17 + $0x360] sm:$0xff] }
 0x359   :  { %2805 = vmatprep.subr.bf16.mxu0 %v7202_v40  ;;  %v7257_v38 = vcombine.low %v1361_v33, %v1365_v34 }
 0x35b   :  { %2882 = vmatpush1.bf16.msra.mxu1 %v7179_v19  ;;  %v1346_v19 = vld [vmem:[#allocation17 + $0x2c8] sm:$0xff] }
 0x35c   :  { %2883 = vmatprep.subr.bf16.mxu1 %v7188_v28  ;;  %2806 = vmatpush1.bf16.msra.mxu0 %v7201_v42  ;;  %v7243_v23 = vcombine.low %v1346_v19, %v1350_v21  ;;  %v7244_v24 = vcombine.high %v1346_v19, %v1350_v21  ;;  %v7250_v28 = vcombine.high %v1353_v25, %v1357_v26  ;;  %v1373_v42 = vld [vmem:[#allocation17 + $0x3a0] sm:$0xff] }
 0x35d   :  { %2807 = vmatprep.subr.bf16.mxu0 %v7210_v48  ;;  %v7265_v46 = vcombine.low %v1369_v41, %v1373_v42 }
 0x35f   :  { %2884 = vmatpush1.bf16.msra.mxu1 %v7187_v27  ;;  %v1354_v27 = vld [vmem:[#allocation17 + $0x308] sm:$0xff] }
 0x360   :  { %2885 = vmatprep.subr.bf16.mxu1 %v7196_v36  ;;  %2808 = vmatpush1.bf16.msra.mxu0 %v7209_v51  ;;  %v7251_v31 = vcombine.low %v1354_v27, %v1358_v29  ;;  %v7252_v32 = vcombine.high %v1354_v27, %v1358_v29  ;;  %v7258_v36 = vcombine.high %v1361_v33, %v1365_v34  ;;  %v1381_v51 = vld [vmem:[#allocation17 + $0x3e0] sm:$0xff] }
 0x361   :  { %2809 = vmatprep.subr.bf16.mxu0 %v7218_v60  ;;  %v7274_v55 = vcombine.high %v1377_v49, %v1381_v51 }
 0x363   :  { %2886 = vmatpush1.bf16.msra.mxu1 %v7195_v35  ;;  %v1362_v35 = vld [vmem:[#allocation17 + $0x348] sm:$0xff] }
 0x364   :  { %2887 = vmatprep.subr.bf16.mxu1 %v7204_v44  ;;  %2810 = vmatpush1.bf16.msra.mxu0 %v7217_v62  ;;  %v7259_v39 = vcombine.low %v1362_v35, %v1366_v37  ;;  %v7260_v40 = vcombine.high %v1362_v35, %v1366_v37  ;;  %v7266_v44 = vcombine.high %v1369_v41, %v1373_v42 }
 0x365   :  { %2811 = vmatprep.subr.bf16.mxu0 %v7226_v4 }
 0x367   :  { %2888 = vmatpush1.bf16.msra.mxu1 %v7203_v43  ;;  %v1370_v43 = vld [vmem:[#allocation17 + $0x388] sm:$0xff] }
 0x368   :  { %2889 = vmatprep.subr.bf16.mxu1 %v7212_v54  ;;  %2812 = vmatpush1.bf16.msra.mxu0 %v7225_v7  ;;  %v7267_v47 = vcombine.low %v1370_v43, %v1374_v45  ;;  %v7268_v48 = vcombine.high %v1370_v43, %v1374_v45  ;;  %v7273_v54 = vcombine.low %v1377_v49, %v1381_v51 }
 0x369   :  { %2813 = vmatprep.subr.bf16.mxu0 %v7234_v13 }
 0x36b   :  { %2890 = vmatpush1.bf16.msra.mxu1 %v7211_v53  ;;  %v1378_v53 = vld [vmem:[#allocation17 + $0x3c8] sm:$0xff] }
 0x36c   :  { %2891 = vmatprep.subr.bf16.mxu1 %v7220_v0  ;;  %2814 = vmatpush1.bf16.msra.mxu0 %v7233_v16  ;;  %v7275_v57 = vcombine.low %v1378_v53, %v1382_v56  ;;  %v7276_v60 = vcombine.high %v1378_v53, %v1382_v56 }
 0x36d   :  { %2815 = vmatprep.subr.bf16.mxu0 %v7242_v20 }
 0x36f   :  { %2892 = vmatpush1.bf16.msra.mxu1 %v7219_v63 }
 0x370   :  { %2893 = vmatprep.subr.bf16.mxu1 %v7228_v10  ;;  %2816 = vmatpush1.bf16.msra.mxu0 %v7241_v22  ;;  %v9532_v10 = vld [vmem:[#allocation17 + $0x428] sm:$0xff] }
 0x371   :  { %2817 = vmatprep.subr.bf16.mxu0 %v7250_v28  ;;  %v7283_v15 = vcombine.low %v9525_v3, %v9532_v10 }
 0x373   :  { %2894 = vmatpush1.bf16.msra.mxu1 %v7227_v8  ;;  %v7282_v8 = vcombine.high %v9521_v1, %v9523_v2 }
 0x374   :  { %2895 = vmatprep.subr.bf16.mxu1 %v7236_v18  ;;  %2818 = vmatpush1.bf16.msra.mxu0 %v7249_v30  ;;  %v7284_v18 = vcombine.high %v9525_v3, %v9532_v10 }
 0x375   :  { %2819 = vmatprep.subr.bf16.mxu0 %v7258_v36 }
 0x377   :  { %2896 = vmatpush1.bf16.msra.mxu1 %v7235_v17 }
 0x378   :  { %2897 = vmatprep.subr.bf16.mxu1 %v7244_v24  ;;  %2820 = vmatpush1.bf16.msra.mxu0 %v7257_v38 }
 0x379   :  { %2821 = vmatprep.subr.bf16.mxu0 %v7266_v44 }
 0x37b   :  { %2898 = vmatpush1.bf16.msra.mxu1 %v7243_v23 }
 0x37c   :  { %2899 = vmatprep.subr.bf16.mxu1 %v7252_v32  ;;  %2822 = vmatpush1.bf16.msra.mxu0 %v7265_v46 }
 0x37d   :  { %2823 = vmatprep.subr.bf16.mxu0 %v7274_v55 }
 0x37f   :  { %2900 = vmatpush1.bf16.msra.mxu1 %v7251_v31 }
 0x380   :  { %2901 = vmatprep.subr.bf16.mxu1 %v7260_v40  ;;  %2824 = vmatpush1.bf16.msra.mxu0 %v7273_v54 }
 0x381   :  { %2834 = vmatprep.subr.bf16.mxu0 %v7282_v8 }
 0x383   :  { %2902 = vmatpush1.bf16.msra.mxu1 %v7259_v39 }
 0x384   :  { %2903 = vmatprep.subr.bf16.mxu1 %v7268_v48 }
 0x387   :  { %2904 = vmatpush1.bf16.msra.mxu1 %v7267_v47 }
 0x388   :  { %2905 = vmatprep.subr.bf16.mxu1 %v7276_v60 }
 0x38b   :  { %2906 = vmatpush1.bf16.msra.mxu1 %v7275_v57 }
 0x38c   :  { %2916 = vmatprep.subr.bf16.mxu1 %v7284_v18 }
 0x3e1   :  { %v9514_v61 = vpop.f32.mrb[4].mxu1 }
 0x3e2   :  { %v1053_v62 = vrot.slane %v9514_v61, 4  ;;  %v1081_v63 = vmul.f32 %v9514_v61, %v9514_v61  ;;  %v9519_v0 = vpop.f32.mrb[5].mxu1 }
 0x3e3   :  { %v1059_v4 = vrot.slane %v9519_v0, 4  ;;  %v1082_v5 = vmul.f32 %v9519_v0, %v9519_v0  ;;  %v1009_v7 = vpop.f32.mrb[6].mxu1 }
 0x3e4   :  { %v1054_v11 = vadd.f32 %v1053_v62, %v9514_v61  ;;  %v1085_v12 = vrot.slane %v1081_v63, 4  ;;  %v1010_v13 = vpop.f32.mrb[7].mxu1 }
 0x3e5   :  { %v1060_v16 = vadd.f32 %v1059_v4, %v9519_v0  ;;  %v1091_v17 = vrot.slane %v1082_v5, 4 }
 0x3e6   :  { %v1055_v9 = vrot.slane %v1054_v11, 2  ;;  %v1086_v6 = vadd.f32 %v1085_v12, %v1081_v63 }
 0x3e7   :  { %v1061_v19 = vrot.slane %v1060_v16, 2  ;;  %v1092_v20 = vadd.f32 %v1091_v17, %v1082_v5 }
 0x3e8   :  { %v1056_v21 = vadd.f32 %v1055_v9, %v1054_v11  ;;  %v1087_v22 = vrot.slane %v1086_v6, 2 }
 0x3e9   :  { %v1062_v23 = vadd.f32 %v1061_v19, %v1060_v16  ;;  %v1093_v24 = vrot.slane %v1092_v20, 2 }
 0x3ea   :  { %v1057_v25 = vrot.slane %v1056_v21, 1  ;;  %v1088_v26 = vadd.f32 %v1087_v22, %v1086_v6 }
 0x3eb   :  { %v1063_v27 = vrot.slane %v1062_v23, 1  ;;  %v1094_v28 = vadd.f32 %v1093_v24, %v1092_v20 }
 0x3ec   :  { %v1058_v29 = vadd.f32 %v1057_v25, %v1056_v21  ;;  %v1089_v30 = vrot.slane %v1088_v26, 1 }
 0x3ed   :  { %v1064_v31 = vadd.f32 %v1063_v27, %v1062_v23  ;;  %v1095_v32 = vrot.slane %v1094_v28, 1 }
 0x3ee   :  { %v9542_v33 = vmul.f32 0.125, %v1058_v29  ;;  %v1090_v34 = vadd.f32 %v1089_v30, %v1088_v26 }
 0x3ef   :  { %v9544_v35 = vmul.f32 0.125, %v1064_v31  ;;  %v1096_v36 = vadd.f32 %v1095_v32, %v1094_v28 }
 0x3f0   :  { %v1109_v37 = vmul.f32 0.125, %v1090_v34  ;;  %v1113_v38 = vmul.f32 %v9542_v33, %v9542_v33 }
 0x3f1   :  { %v1110_v39 = vmul.f32 0.125, %v1096_v36  ;;  %v1114_v40 = vmul.f32 %v9544_v35, %v9544_v35 }
 0x3f2   :  { %v1117_v41 = vsub.f32 %v1109_v37, %v1113_v38 }
 0x3f3   :  { %v1118_v42 = vsub.f32 %v1110_v39, %v1114_v40 }
 0x3f4   :  { %v1122_v43 = vadd.f32 0.8, %v1117_v41 }
 0x3f5   :  { %v1123_v44 = vadd.f32 0.8, %v1118_v42 }
 0x3f6   :  { %8833 = vrsqrt.f32 %v1122_v43 }
 0x3f7   :  { %8835 = vrsqrt.f32 %v1123_v44  ;;  %v1121_v44 = vld [vmem:[#allocation14] sm:$0xf] }
 0x400   :  { %v8834_v45 = vpop.eup %8833 }
 0x401   :  { %v8836_v46 = vpop.eup %8835 }
 0x402   :  { %v1134_v47 = vcombine.low %v8834_v45, %v8836_v46  ;;  %v9560_v46 = vsub.s32 2, %v9491_v50 }
 0x404   :  { %v1142_v41 = vrot.slane %v1134_v47, %v9494_v52 }
 0x421   :  { %v9550_v48 = vpop.f32.mrb[8].mxu1 }
 0x422   :  { %v1065_v49 = vrot.slane %v9550_v48, 4  ;;  %v1083_v51 = vmul.f32 %v9550_v48, %v9550_v48  ;;  %v1048_v53 = vpop.f32.mrb[9].mxu1 }
 0x423   :  { %v1071_v54 = vrot.slane %v1048_v53, 4  ;;  %v1084_v55 = vmul.f32 %v1048_v53, %v1048_v53  ;;  %v1050_v56 = vpop.f32.mrb[10].mxu1 }
 0x424   :  { %v1066_v57 = vadd.f32 %v1065_v49, %v9550_v48  ;;  %v1097_v60 = vrot.slane %v1083_v51, 4  ;;  %v1051_v62 = vpop.f32.mrb[11].mxu1  ;;  %v9563_v49 = vsub.s32 3, %v9491_v50 }
 0x425   :  { %v1072_v63 = vadd.f32 %v1071_v54, %v1048_v53  ;;  %v1103_v4 = vrot.slane %v1084_v55, 4 }
 0x426   :  { %v1067_v5 = vrot.slane %v1066_v57, 2  ;;  %v1098_v7 = vadd.f32 %v1097_v60, %v1083_v51 }
 0x427   :  { %v1073_v8 = vrot.slane %v1072_v63, 2  ;;  %v1104_v11 = vadd.f32 %v1103_v4, %v1084_v55 }
 0x428   :  { %v1068_v12 = vadd.f32 %v1067_v5, %v1066_v57  ;;  %v1099_v13 = vrot.slane %v1098_v7, 2 }
 0x429   :  { %v1074_v16 = vadd.f32 %v1073_v8, %v1072_v63  ;;  %v1105_v17 = vrot.slane %v1104_v11, 2 }
 0x42a   :  { %v1069_v18 = vrot.slane %v1068_v12, 1  ;;  %v1100_v9 = vadd.f32 %v1099_v13, %v1098_v7 }
 0x42b   :  { %v1075_v6 = vrot.slane %v1074_v16, 1  ;;  %v1106_v19 = vadd.f32 %v1105_v17, %v1104_v11 }
 0x42c   :  { %v1070_v20 = vadd.f32 %v1069_v18, %v1068_v12  ;;  %v1101_v21 = vrot.slane %v1100_v9, 1  ;;  %v1160_v18 = vld [vmem:[#allocation16] sm:$0xf] }
 0x42d   :  { %v1076_v22 = vadd.f32 %v1075_v6, %v1074_v16  ;;  %v1107_v23 = vrot.slane %v1106_v19, 1 }
 0x42e   :  { %v1079_v24 = vmul.f32 0.125, %v1070_v20  ;;  %v1102_v25 = vadd.f32 %v1101_v21, %v1100_v9 }
 0x42f   :  { %v1080_v26 = vmul.f32 0.125, %v1076_v22  ;;  %v1108_v27 = vadd.f32 %v1107_v23, %v1106_v19 }
 0x430   :  { %v1111_v28 = vmul.f32 0.125, %v1102_v25  ;;  %v1115_v29 = vmul.f32 %v1079_v24, %v1079_v24 }
 0x431   :  { %v1112_v30 = vmul.f32 0.125, %v1108_v27  ;;  %v1116_v31 = vmul.f32 %v1080_v26, %v1080_v26 }
 0x432   :  { %v1119_v32 = vsub.f32 %v1111_v28, %v1115_v29  ;;  %v1397_v28 = vld [vmem:[#allocation17 + $0x460] sm:$0xff]  ;;  %v1394_v29 = vld [vmem:[#allocation17 + $0x448] sm:$0xff] }
 0x433   :  { %v1120_v34 = vsub.f32 %v1112_v30, %v1116_v31  ;;  %v1398_v30 = vld [vmem:[#allocation17 + $0x468] sm:$0xff] }
 0x434   :  { %v1124_v36 = vadd.f32 0.8, %v1119_v32 }
 0x435   :  { %v1125_v37 = vadd.f32 0.8, %v1120_v34  ;;  %v1401_v34 = vld [vmem:[#allocation17 + $0x480] sm:$0xff] }
 0x436   :  { %8837 = vrsqrt.f32 %v1124_v36 }
 0x437   :  { %8839 = vrsqrt.f32 %v1125_v37  ;;  %v7292_v37 = vcombine.high %v1394_v29, %v1398_v30 }
 0x440   :  { %v8838_v38 = vpop.eup %8837 }
 0x441   :  { %v8840_v39 = vpop.eup %8839 }
 0x442   :  { %v1135_v40 = vcombine.low %v8838_v38, %v8840_v39  ;;  %v1405_v38 = vld [vmem:[#allocation17 + $0x4a0] sm:$0xff]  ;;  %v1402_v39 = vld [vmem:[#allocation17 + $0x488] sm:$0xff] }
 0x443   :  { %v7297_v1 = vcombine.low %v1401_v34, %v1405_v38 }
 0x444   :  { %v1149_v42 = vrot.slane %v1135_v40, %v9494_v52  ;;  %v1406_v40 = vld [vmem:[#allocation17 + $0x4a8] sm:$0xff] }
 0x445   :  { %v7299_v2 = vcombine.low %v1402_v39, %v1406_v40 }
 0x446   :  { %v1150_v43 = vcombine.low %v1142_v41, %v1149_v42 }
 0x448   :  { %v1157_v45 = vrot.slane %v1150_v43, %v9494_v52  ;;  %v7291_v43 = vcombine.low %v1394_v29, %v1398_v30  ;;  %v1450_v29 = vld [vmem:[#allocation17 + $0x608] sm:$0xff] }
 0x449   :  { %v1454_v30 = vld [vmem:[#allocation17 + $0x628] sm:$0xff] }
 0x44a   :  { %v1159_v51 = vmul.f32 %v1157_v45, %v1121_v44  ;;  %v7298_v44 = vcombine.high %v1401_v34, %v1405_v38  ;;  %v7300_v45 = vcombine.high %v1402_v39, %v1406_v40  ;;  %v7348_v38 = vcombine.high %v1450_v29, %v1454_v30  ;;  %v1457_v39 = vld [vmem:[#allocation17 + $0x640] sm:$0xff] }
 0x44b   :  { %v1461_v40 = vld [vmem:[#allocation17 + $0x660] sm:$0xff] }
 0x44c   :  { %v1165_v54 = vrot.slane %v1159_v51, %v9499_v58  ;;  %v1169_v55 = vrot.slane %v1159_v51, %v9502_v59  ;;  %v1173_v56 = vrot.slane %v1159_v51, %v9560_v46  ;;  %v1177_v47 = vrot.slane %v1159_v51, %v9563_v49  ;;  %v1409_v51 = vld [vmem:[#allocation17 + $0x4c0] sm:$0xff] }
 0x44e   :  { %v1182_v57 = vmul.f32 %v1165_v54, %v9542_v33  ;;  %v1183_v60 = vmul.f32 %v1169_v55, %v9544_v35  ;;  %v1184_v62 = vmul.f32 %v1173_v56, %v1079_v24  ;;  %v1185_v63 = vmul.f32 %v1177_v47, %v1080_v26  ;;  %v1393_v26 = vld [vmem:[#allocation17 + $0x440] sm:$0xff] }
 0x44f   :  { %v1219_v4 = vmul.f32 %v1177_v47, %v1048_v53  ;;  %v1217_v5 = vmul.f32 %v1169_v55, %v9519_v0  ;;  %v1216_v7 = vmul.f32 %v1165_v54, %v9514_v61  ;;  %v1218_v8 = vmul.f32 %v1173_v56, %v9550_v48  ;;  %v1413_v54 = vld [vmem:[#allocation17 + $0x4e0] sm:$0xff]  ;;  %v1410_v55 = vld [vmem:[#allocation17 + $0x4c8] sm:$0xff] }
 0x450   :  { %v1190_v11 = vcombine.low %v1182_v57, %v1183_v60  ;;  %v1191_v12 = vcombine.low %v1184_v62, %v1185_v63  ;;  %v7290_v36 = vcombine.high %v1393_v26, %v1397_v28  ;;  %v7289_v42 = vcombine.low %v1393_v26, %v1397_v28  ;;  %v1414_v56 = vld [vmem:[#allocation17 + $0x4e8] sm:$0xff]  ;;  %v1453_v28 = vld [vmem:[#allocation17 + $0x620] sm:$0xff] }
 0x451   :  { %v7306_v3 = vcombine.high %v1409_v51, %v1413_v54  ;;  %v7308_v10 = vcombine.high %v1410_v55, %v1414_v56  ;;  %v1418_v47 = vld [vmem:[#allocation17 + $0x508] sm:$0xff]  ;;  %v7305_v60 = vcombine.low %v1409_v51, %v1413_v54  ;;  %v7307_v62 = vcombine.low %v1410_v55, %v1414_v56  ;;  %v1465_v55 = vld [vmem:[#allocation17 + $0x680] sm:$0xff] }
 0x452   :  { %v1198_v13 = vrot.slane %v1190_v11, %v9494_v52  ;;  %v1205_v16 = vrot.slane %v1191_v12, %v9494_v52  ;;  %v1422_v57 = vld [vmem:[#allocation17 + $0x528] sm:$0xff]  ;;  %v7354_v51 = vcombine.high %v1457_v39, %v1461_v40  ;;  %v1469_v56 = vld [vmem:[#allocation17 + $0x6a0] sm:$0xff] }
 0x453   :  { %v1430_v11 = vld [vmem:[#allocation17 + $0x568] sm:$0xff] }
 0x454   :  { %v1206_v17 = vcombine.low %v1198_v13, %v1205_v16  ;;  %v7315_v13 = vcombine.low %v1418_v47, %v1422_v57 }
 0x456   :  { %v1213_v33 = vrot.slane %v1206_v17, %v9494_v52 }
 0x458   :  { %v1215_v35 = vsub.f32 %v1160_v18, %v1213_v33  ;;  %v1433_v18 = vld [vmem:[#allocation17 + $0x580] sm:$0xff] }
 0x459   :  { %v1437_v33 = vld [vmem:[#allocation17 + $0x5a0] sm:$0xff] }
 0x45a   :  { %v1236_v9 = vrot.slane %v1215_v35, %v9563_v49  ;;  %v1228_v53 = vrot.slane %v1215_v35, %v9502_v59  ;;  %v1224_v0 = vrot.slane %v1215_v35, %v9499_v58  ;;  %v1232_v61 = vrot.slane %v1215_v35, %v9560_v46  ;;  %v1434_v35 = vld [vmem:[#allocation17 + $0x588] sm:$0xff] }
 0x45c   :  { %v1244_v48 = vadd.f32 %v1236_v9, %v1219_v4  ;;  %v1242_v6 = vadd.f32 %v1228_v53, %v1217_v5  ;;  %v1241_v19 = vadd.f32 %v1224_v0, %v1216_v7  ;;  %v9581_v20 = vadd.f32 %v1232_v61, %v1218_v8  ;;  %v1425_v5 = vld [vmem:[#allocation17 + $0x540] sm:$0xff]  ;;  %v1426_v8 = vld [vmem:[#allocation17 + $0x548] sm:$0xff] }
 0x45d   :  { %v7316_v4 = vcombine.high %v1418_v47, %v1422_v57  ;;  %v1429_v7 = vld [vmem:[#allocation17 + $0x560] sm:$0xff]  ;;  %v7324_v17 = vcombine.high %v1426_v8, %v1430_v11  ;;  %v1438_v9 = vld [vmem:[#allocation17 + $0x5a8] sm:$0xff]  ;;  %v7323_v0 = vcombine.low %v1426_v8, %v1430_v11  ;;  %v7330_v61 = vcombine.high %v1433_v18, %v1437_v33 }
 0x45e   :  { %v1248_v21 = vmul.f32 0.2, %v1244_v48  ;;  %v1246_v22 = vmul.f32 0.2, %v1242_v6  ;;  %v1245_v23 = vmul.f32 0.2, %v1241_v19  ;;  %v7322_v16 = vcombine.high %v1425_v5, %v1429_v7 }
 0x45f   :  { %v7321_v53 = vcombine.low %v1425_v5, %v1429_v7  ;;  %v1473_v47 = vld [vmem:[#allocation17 + $0x6c0] sm:$0xff] }
 0x460   :  { %v1250_v24 = vmax.f32 %v1242_v6, %v1246_v22  ;;  %v1249_v25 = vmax.f32 %v1241_v19, %v1245_v23  ;;  %v1252_v27 = vmax.f32 %v1244_v48, %v1248_v21  ;;  %v7332_v48 = vcombine.high %v1434_v35, %v1438_v9  ;;  %v1441_v6 = vld [vmem:[#allocation17 + $0x5c0] sm:$0xff]  ;;  %v1442_v21 = vld [vmem:[#allocation17 + $0x5c8] sm:$0xff] }
 0x461   :  { %v1445_v19 = vld [vmem:[#allocation17 + $0x5e0] sm:$0xff]  ;;  %v1446_v22 = vld [vmem:[#allocation17 + $0x5e8] sm:$0xff]  ;;  %v7329_v23 = vcombine.low %v1433_v18, %v1437_v33 }
 0x462   :  { %v9583_v31 = vpack.c.bf16 %v1250_v24, %v1250_v24  ;;  %v9585_v32 = vpack.c.bf16 %v1249_v25, %v1249_v25  ;;  %v9591_v41 = vpack.c.bf16 %v1252_v27, %v1252_v27  ;;  %v7331_v24 = vcombine.low %v1434_v35, %v1438_v9  ;;  %v1449_v27 = vld [vmem:[#allocation17 + $0x600] sm:$0xff] }
 0x463   :  { %v7338_v25 = vcombine.high %v1441_v6, %v1445_v19  ;;  %v7340_v26 = vcombine.high %v1442_v21, %v1446_v22  ;;  %v7337_v34 = vcombine.low %v1441_v6, %v1445_v19  ;;  %v1477_v57 = vld [vmem:[#allocation17 + $0x6e0] sm:$0xff] }
 0x464   :  { %2825 = vmatprep.mubr.bf16.mxu0 %v9583_v31  ;;  %2907 = vmatprep.mubr.bf16.mxu1 %v9583_v31  ;;  %v7370_v5 = vcombine.high %v1473_v47, %v1477_v57  ;;  %v1481_v8 = vld [vmem:[#allocation17 + $0x700] sm:$0xff] }
 0x465   :  { %2826 = vmatmul.mubr.bf16.vlgmr.msra.gmra.mrb[4].mxu0 %v9585_v32  ;;  %2908 = vmatmul.mubr.bf16.vlgmr.msra.gmra.mrb[12].mxu1 %v9585_v32  ;;  %v1485_v11 = vld [vmem:[#allocation17 + $0x720] sm:$0xff] }
 0x466   :  { %2835 = vmatpush1.bf16.msra.mxu0 %v7281_v14  ;;  %2917 = vmatpush1.bf16.msra.mxu1 %v7283_v15  ;;  %v1417_v14 = vld [vmem:[#allocation17 + $0x500] sm:$0xff]  ;;  %v7378_v18 = vcombine.high %v1481_v8, %v1485_v11 }
 0x467   :  { %2866 = vmatprep.mubr.bf16.mxu0 %v9591_v41  ;;  %2948 = vmatprep.mubr.bf16.mxu1 %v9591_v41  ;;  %v1421_v15 = vld [vmem:[#allocation17 + $0x520] sm:$0xff] }
 0x468   :  { %2836 = vmatprep.subr.bf16.mxu0 %v7290_v36  ;;  %2918 = vmatprep.subr.bf16.mxu1 %v7292_v37  ;;  %v7314_v63 = vcombine.high %v1417_v14, %v1421_v15  ;;  %v7313_v12 = vcombine.low %v1417_v14, %v1421_v15  ;;  %v7339_v36 = vcombine.low %v1442_v21, %v1446_v22  ;;  %v1489_v35 = vld [vmem:[#allocation17 + $0x740] sm:$0xff] }
 0x469   :  { %v7346_v37 = vcombine.high %v1449_v27, %v1453_v28  ;;  %v7362_v14 = vcombine.high %v1465_v55, %v1469_v56  ;;  %v1493_v9 = vld [vmem:[#allocation17 + $0x760] sm:$0xff] }
 0x46a   :  { %2837 = vmatpush1.bf16.msra.mxu0 %v7289_v42  ;;  %2919 = vmatpush1.bf16.msra.mxu1 %v7291_v43  ;;  %v1458_v42 = vld [vmem:[#allocation17 + $0x648] sm:$0xff]  ;;  %v7386_v6 = vcombine.high %v1489_v35, %v1493_v9  ;;  %v1497_v21 = vld [vmem:[#allocation17 + $0x780] sm:$0xff] }
 0x46b   :  { %2838 = vmatprep.subr.bf16.mxu0 %v7298_v44  ;;  %2920 = vmatprep.subr.bf16.mxu1 %v7300_v45  ;;  %v1462_v43 = vld [vmem:[#allocation17 + $0x668] sm:$0xff]  ;;  %v7345_v44 = vcombine.low %v1449_v27, %v1453_v28  ;;  %v7347_v45 = vcombine.low %v1450_v29, %v1454_v30  ;;  %v1501_v22 = vld [vmem:[#allocation17 + $0x7a0] sm:$0xff] }
 0x46c   :  { %v7356_v54 = vcombine.high %v1458_v42, %v1462_v43  ;;  %v7394_v27 = vcombine.high %v1497_v21, %v1501_v22  ;;  %v1505_v29 = vld [vmem:[#allocation17 + $0x7c0] sm:$0xff] }
 0x46d   :  { %v1509_v30 = vld [vmem:[#allocation17 + $0x7e0] sm:$0xff] }
 0x46e   :  { %2839 = vmatpush1.bf16.msra.mxu0 %v7297_v1  ;;  %2921 = vmatpush1.bf16.msra.mxu1 %v7299_v2  ;;  %v1466_v1 = vld [vmem:[#allocation17 + $0x688] sm:$0xff] }
 0x46f   :  { %2840 = vmatprep.subr.bf16.mxu0 %v7306_v3  ;;  %2922 = vmatprep.subr.bf16.mxu1 %v7308_v10  ;;  %v1470_v2 = vld [vmem:[#allocation17 + $0x6a8] sm:$0xff]  ;;  %v7353_v3 = vcombine.low %v1457_v39, %v1461_v40  ;;  %v7355_v10 = vcombine.low %v1458_v42, %v1462_v43  ;;  %v7402_v39 = vcombine.high %v1505_v29, %v1509_v30  ;;  %v1247_v42 = vmul.f32 0.2, %v9581_v20  ;;  %v1259_v43 = vld [vmem:[#allocation17 + $0x10] sm:$0xff] }
 0x470   :  { %v7364_v15 = vcombine.high %v1466_v1, %v1470_v2 }
 0x472   :  { %2841 = vmatpush1.bf16.msra.mxu0 %v7305_v60  ;;  %2923 = vmatpush1.bf16.msra.mxu1 %v7307_v62  ;;  %v1474_v60 = vld [vmem:[#allocation17 + $0x6c8] sm:$0xff] }
 0x473   :  { %2842 = vmatprep.subr.bf16.mxu0 %v7314_v63  ;;  %2924 = vmatprep.subr.bf16.mxu1 %v7316_v4  ;;  %v1478_v62 = vld [vmem:[#allocation17 + $0x6e8] sm:$0xff]  ;;  %v7361_v63 = vcombine.low %v1465_v55, %v1469_v56  ;;  %v7363_v4 = vcombine.low %v1466_v1, %v1470_v2  ;;  %v1251_v56 = vmax.f32 %v9581_v20, %v1247_v42  ;;  %v1276_v20 = vld [vmem:[#allocation17 + $0x98] sm:$0xff] }
 0x474   :  { %v7372_v7 = vcombine.high %v1474_v60, %v1478_v62 }
 0x476   :  { %2843 = vmatpush1.bf16.msra.mxu0 %v7313_v12  ;;  %2925 = vmatpush1.bf16.msra.mxu1 %v7315_v13  ;;  %v1482_v12 = vld [vmem:[#allocation17 + $0x708] sm:$0xff] }
 0x477   :  { %2844 = vmatprep.subr.bf16.mxu0 %v7322_v16  ;;  %2926 = vmatprep.subr.bf16.mxu1 %v7324_v17  ;;  %v1486_v13 = vld [vmem:[#allocation17 + $0x728] sm:$0xff]  ;;  %v7369_v16 = vcombine.low %v1473_v47, %v1477_v57  ;;  %v7371_v17 = vcombine.low %v1474_v60, %v1478_v62  ;;  %v9603_v57 = vpack.c.bf16 %v1251_v56, %v1251_v56 }
 0x478   :  { %v7380_v33 = vcombine.high %v1482_v12, %v1486_v13 }
 0x47a   :  { %2845 = vmatpush1.bf16.msra.mxu0 %v7321_v53  ;;  %2927 = vmatpush1.bf16.msra.mxu1 %v7323_v0  ;;  %v1490_v53 = vld [vmem:[#allocation17 + $0x748] sm:$0xff] }
 0x47b   :  { %2846 = vmatprep.subr.bf16.mxu0 %v7330_v61  ;;  %2928 = vmatprep.subr.bf16.mxu1 %v7332_v48  ;;  %v1494_v0 = vld [vmem:[#allocation17 + $0x768] sm:$0xff]  ;;  %v7377_v61 = vcombine.low %v1481_v8, %v1485_v11  ;;  %v7379_v48 = vcombine.low %v1482_v12, %v1486_v13 }
 0x47c   :  { %v7388_v19 = vcombine.high %v1490_v53, %v1494_v0 }
 0x47e   :  { %2847 = vmatpush1.bf16.msra.mxu0 %v7329_v23  ;;  %2929 = vmatpush1.bf16.msra.mxu1 %v7331_v24  ;;  %v1498_v23 = vld [vmem:[#allocation17 + $0x788] sm:$0xff] }
 0x47f   :  { %2848 = vmatprep.subr.bf16.mxu0 %v7338_v25  ;;  %2930 = vmatprep.subr.bf16.mxu1 %v7340_v26  ;;  %v1502_v24 = vld [vmem:[#allocation17 + $0x7a8] sm:$0xff]  ;;  %v7385_v25 = vcombine.low %v1489_v35, %v1493_v9  ;;  %v7387_v26 = vcombine.low %v1490_v53, %v1494_v0 }
 0x480   :  { %v7396_v28 = vcombine.high %v1498_v23, %v1502_v24 }
 0x482   :  { %2849 = vmatpush1.bf16.msra.mxu0 %v7337_v34  ;;  %2931 = vmatpush1.bf16.msra.mxu1 %v7339_v36  ;;  %v1506_v34 = vld [vmem:[#allocation17 + $0x7c8] sm:$0xff] }
 0x483   :  { %2850 = vmatprep.subr.bf16.mxu0 %v7346_v37  ;;  %2932 = vmatprep.subr.bf16.mxu1 %v7348_v38  ;;  %v1510_v36 = vld [vmem:[#allocation17 + $0x7e8] sm:$0xff]  ;;  %v7393_v37 = vcombine.low %v1497_v21, %v1501_v22  ;;  %v7395_v38 = vcombine.low %v1498_v23, %v1502_v24  ;;  %v1299_v24 = vld [vmem:[#allocation17 + $0x150] sm:$0xff] }
 0x484   :  { %v7404_v40 = vcombine.high %v1506_v34, %v1510_v36  ;;  %v7403_v55 = vcombine.low %v1506_v34, %v1510_v36  ;;  %v1307_v36 = vld [vmem:[#allocation17 + $0x190] sm:$0xff] }
 0x486   :  { %2851 = vmatpush1.bf16.msra.mxu0 %v7345_v44  ;;  %2933 = vmatpush1.bf16.msra.mxu1 %v7347_v45  ;;  %v1263_v44 = vld [vmem:[#allocation17 + $0x30] sm:$0xff]  ;;  %v1260_v45 = vld [vmem:[#allocation17 + $0x18] sm:$0xff] }
 0x487   :  { %2852 = vmatprep.subr.bf16.mxu0 %v7354_v51  ;;  %2934 = vmatprep.subr.bf16.mxu1 %v7356_v54  ;;  %v1264_v51 = vld [vmem:[#allocation17 + $0x38] sm:$0xff]  ;;  %v7401_v54 = vcombine.low %v1505_v29, %v1509_v30  ;;  %v7158_v1 = vcombine.high %v1259_v43, %v1263_v44  ;;  %v7157_v47 = vcombine.low %v1259_v43, %v1263_v44 }
 0x488   :  { %v7160_v2 = vcombine.high %v1260_v45, %v1264_v51  ;;  %v7159_v60 = vcombine.low %v1260_v45, %v1264_v51  ;;  %v1315_v45 = vld [vmem:[#allocation17 + $0x1d0] sm:$0xff] }
 0x489   :  { %v1319_v51 = vld [vmem:[#allocation17 + $0x1f0] sm:$0xff] }
 0x48a   :  { %2853 = vmatpush1.bf16.msra.mxu0 %v7353_v3  ;;  %2935 = vmatpush1.bf16.msra.mxu1 %v7355_v10  ;;  %v1267_v3 = vld [vmem:[#allocation17 + $0x50] sm:$0xff] }
 0x48b   :  { %2854 = vmatprep.subr.bf16.mxu0 %v7362_v14  ;;  %2936 = vmatprep.subr.bf16.mxu1 %v7364_v15  ;;  %v1271_v10 = vld [vmem:[#allocation17 + $0x70] sm:$0xff]  ;;  %v1268_v14 = vld [vmem:[#allocation17 + $0x58] sm:$0xff] }
 0x48c   :  { %v1272_v15 = vld [vmem:[#allocation17 + $0x78] sm:$0xff]  ;;  %v7166_v62 = vcombine.high %v1267_v3, %v1271_v10  ;;  %v7165_v8 = vcombine.low %v1267_v3, %v1271_v10  ;;  %v1323_v10 = vld [vmem:[#allocation17 + $0x210] sm:$0xff] }
 0x48d   :  { %v7167_v11 = vcombine.low %v1268_v14, %v1272_v15 }
 0x48e   :  { %2855 = vmatpush1.bf16.msra.mxu0 %v7361_v63  ;;  %2937 = vmatpush1.bf16.msra.mxu1 %v7363_v4  ;;  %v7168_v63 = vcombine.high %v1268_v14, %v1272_v15  ;;  %v1275_v4 = vld [vmem:[#allocation17 + $0x90] sm:$0xff]  ;;  %v1324_v15 = vld [vmem:[#allocation17 + $0x218] sm:$0xff] }
 0x48f   :  { %2856 = vmatprep.subr.bf16.mxu0 %v7370_v5  ;;  %2938 = vmatprep.subr.bf16.mxu1 %v7372_v7  ;;  %v1279_v5 = vld [vmem:[#allocation17 + $0xb0] sm:$0xff]  ;;  %v1280_v7 = vld [vmem:[#allocation17 + $0xb8] sm:$0xff] }
 0x490   :  { %v7174_v12 = vcombine.high %v1275_v4, %v1279_v5  ;;  %v7176_v13 = vcombine.high %v1276_v20, %v1280_v7  ;;  %v7173_v35 = vcombine.low %v1275_v4, %v1279_v5  ;;  %v7175_v9 = vcombine.low %v1276_v20, %v1280_v7  ;;  %v1327_v14 = vld [vmem:[#allocation17 + $0x230] sm:$0xff]  ;;  %v1332_v7 = vld [vmem:[#allocation17 + $0x258] sm:$0xff] }
 0x491   :  { %v1331_v5 = vld [vmem:[#allocation17 + $0x250] sm:$0xff] }
 0x492   :  { %2857 = vmatpush1.bf16.msra.mxu0 %v7369_v16  ;;  %2939 = vmatpush1.bf16.msra.mxu1 %v7371_v17  ;;  %v1283_v16 = vld [vmem:[#allocation17 + $0xd0] sm:$0xff] }
 0x493   :  { %2858 = vmatprep.subr.bf16.mxu0 %v7378_v18  ;;  %2940 = vmatprep.subr.bf16.mxu1 %v7380_v33  ;;  %v1287_v17 = vld [vmem:[#allocation17 + $0xf0] sm:$0xff]  ;;  %v1284_v18 = vld [vmem:[#allocation17 + $0xd8] sm:$0xff] }
 0x494   :  { %v1288_v33 = vld [vmem:[#allocation17 + $0xf8] sm:$0xff]  ;;  %v7182_v53 = vcombine.high %v1283_v16, %v1287_v17  ;;  %v1335_v20 = vld [vmem:[#allocation17 + $0x270] sm:$0xff] }
 0x495   :  { %v7184_v0 = vcombine.high %v1284_v18, %v1288_v33  ;;  %v7183_v21 = vcombine.low %v1284_v18, %v1288_v33  ;;  %v1343_v18 = vld [vmem:[#allocation17 + $0x2b0] sm:$0xff]  ;;  %v1340_v33 = vld [vmem:[#allocation17 + $0x298] sm:$0xff] }
 0x496   :  { %2859 = vmatpush1.bf16.msra.mxu0 %v7377_v61  ;;  %2941 = vmatpush1.bf16.msra.mxu1 %v7379_v48  ;;  %v1291_v61 = vld [vmem:[#allocation17 + $0x110] sm:$0xff] }
 0x497   :  { %2860 = vmatprep.subr.bf16.mxu0 %v7386_v6  ;;  %2942 = vmatprep.subr.bf16.mxu1 %v7388_v19  ;;  %v1295_v48 = vld [vmem:[#allocation17 + $0x130] sm:$0xff]  ;;  %v1296_v6 = vld [vmem:[#allocation17 + $0x138] sm:$0xff]  ;;  %v7181_v19 = vcombine.low %v1283_v16, %v1287_v17 }
 0x498   :  { %v7190_v22 = vcombine.high %v1291_v61, %v1295_v48  ;;  %v1339_v17 = vld [vmem:[#allocation17 + $0x290] sm:$0xff] }
 0x49a   :  { %2861 = vmatpush1.bf16.msra.mxu0 %v7385_v25  ;;  %2943 = vmatpush1.bf16.msra.mxu1 %v7387_v26  ;;  %v1303_v25 = vld [vmem:[#allocation17 + $0x170] sm:$0xff]  ;;  %v1300_v26 = vld [vmem:[#allocation17 + $0x158] sm:$0xff] }
 0x49b   :  { %2862 = vmatprep.subr.bf16.mxu0 %v7394_v27  ;;  %2944 = vmatprep.subr.bf16.mxu1 %v7396_v28  ;;  %v1304_v27 = vld [vmem:[#allocation17 + $0x178] sm:$0xff]  ;;  %v7189_v28 = vcombine.low %v1291_v61, %v1295_v48  ;;  %v7198_v30 = vcombine.high %v1299_v24, %v1303_v25  ;;  %v1347_v48 = vld [vmem:[#allocation17 + $0x2d0] sm:$0xff] }
 0x49c   :  { %v7200_v34 = vcombine.high %v1300_v26, %v1304_v27  ;;  %v7199_v42 = vcombine.low %v1300_v26, %v1304_v27  ;;  %v1359_v26 = vld [vmem:[#allocation17 + $0x330] sm:$0xff]  ;;  %v1356_v27 = vld [vmem:[#allocation17 + $0x318] sm:$0xff] }
 0x49e   :  { %2863 = vmatpush1.bf16.msra.mxu0 %v7393_v37  ;;  %2945 = vmatpush1.bf16.msra.mxu1 %v7395_v38  ;;  %v1311_v37 = vld [vmem:[#allocation17 + $0x1b0] sm:$0xff]  ;;  %v1308_v38 = vld [vmem:[#allocation17 + $0x198] sm:$0xff] }
 0x49f   :  { %2864 = vmatprep.subr.bf16.mxu0 %v7402_v39  ;;  %2946 = vmatprep.subr.bf16.mxu1 %v7404_v40  ;;  %v1312_v39 = vld [vmem:[#allocation17 + $0x1b8] sm:$0xff]  ;;  %v7197_v40 = vcombine.low %v1299_v24, %v1303_v25  ;;  %v7206_v43 = vcombine.high %v1307_v36, %v1311_v37  ;;  %v7205_v56 = vcombine.low %v1307_v36, %v1311_v37  ;;  %v1355_v25 = vld [vmem:[#allocation17 + $0x310] sm:$0xff] }
 0x4a0   :  { %v7208_v44 = vcombine.high %v1308_v38, %v1312_v39  ;;  %v1363_v37 = vld [vmem:[#allocation17 + $0x350] sm:$0xff] }
 0x4a2   :  { %2865 = vmatpush1.bf16.msra.mxu0 %v7401_v54  ;;  %2947 = vmatpush1.bf16.msra.mxu1 %v7403_v55  ;;  %v1316_v54 = vld [vmem:[#allocation17 + $0x1d8] sm:$0xff] }
 0x4a3   :  { %2957 = vmatprep.subr.bf16.mxu0 %v7158_v1  ;;  %3039 = vmatprep.subr.bf16.mxu1 %v7160_v2  ;;  %v1320_v55 = vld [vmem:[#allocation17 + $0x1f8] sm:$0xff]  ;;  %v7207_v1 = vcombine.low %v1308_v38, %v1312_v39  ;;  %v7214_v2 = vcombine.high %v1315_v45, %v1319_v51  ;;  %v1367_v38 = vld [vmem:[#allocation17 + $0x370] sm:$0xff] }
 0x4a4   :  { %v7216_v3 = vcombine.high %v1316_v54, %v1320_v55  ;;  %v1364_v39 = vld [vmem:[#allocation17 + $0x358] sm:$0xff] }
 0x4a5   :  { %2867 = vmatmul.mubr.bf16.vlgmr.msra.gmra.mrb[4].mxu0 %v9603_v57  ;;  %2949 = vmatmul.mubr.bf16.vlgmr.msra.gmra.mrb[12].mxu1 %v9603_v57 }
 0x4a6   :  { %2958 = vmatpush1.bf16.msra.mxu0 %v7157_v47  ;;  %2989 = vmatprep.mubr.bf16.mxu0 %v9583_v31  ;;  %v1328_v47 = vld [vmem:[#allocation17 + $0x238] sm:$0xff] }
 0x4a7   :  { %3040 = vmatpush1.bf16.msra.mxu1 %v7159_v60  ;;  %3071 = vmatprep.mubr.bf16.mxu1 %v9583_v31  ;;  %v1292_v31 = vld [vmem:[#allocation17 + $0x118] sm:$0xff]  ;;  %v7213_v60 = vcombine.low %v1315_v45, %v1319_v51  ;;  %v7224_v4 = vcombine.high %v1324_v15, %v1328_v47  ;;  %v1371_v51 = vld [vmem:[#allocation17 + $0x390] sm:$0xff] }
 0x4a8   :  { %2959 = vmatprep.subr.bf16.mxu0 %v7166_v62  ;;  %3041 = vmatprep.subr.bf16.mxu1 %v7168_v63  ;;  %v7192_v23 = vcombine.high %v1292_v31, %v1296_v6  ;;  %v7191_v29 = vcombine.low %v1292_v31, %v1296_v6  ;;  %v7215_v62 = vcombine.low %v1316_v54, %v1320_v55  ;;  %v1351_v31 = vld [vmem:[#allocation17 + $0x2f0] sm:$0xff]  ;;  %v1348_v6 = vld [vmem:[#allocation17 + $0x2d8] sm:$0xff] }
 0x4a9   :  { %v7222_v63 = vcombine.high %v1323_v10, %v1327_v14  ;;  %v1375_v54 = vld [vmem:[#allocation17 + $0x3b0] sm:$0xff]  ;;  %v1372_v55 = vld [vmem:[#allocation17 + $0x398] sm:$0xff] }
 0x4aa   :  { %2960 = vmatpush1.bf16.msra.mxu0 %v7165_v8  ;;  %v1336_v8 = vld [vmem:[#allocation17 + $0x278] sm:$0xff] }
 0x4ab   :  { %3042 = vmatpush1.bf16.msra.mxu1 %v7167_v11  ;;  %2961 = vmatprep.subr.bf16.mxu0 %v7174_v12  ;;  %v7221_v11 = vcombine.low %v1323_v10, %v1327_v14  ;;  %v7223_v12 = vcombine.low %v1324_v15, %v1328_v47  ;;  %v7232_v16 = vcombine.high %v1332_v7, %v1336_v8  ;;  %v1379_v14 = vld [vmem:[#allocation17 + $0x3d0] sm:$0xff]  ;;  %v1380_v47 = vld [vmem:[#allocation17 + $0x3d8] sm:$0xff] }
 0x4ac   :  { %3043 = vmatprep.subr.bf16.mxu1 %v7176_v13  ;;  %v7230_v13 = vcombine.high %v1331_v5, %v1335_v20  ;;  %v1383_v15 = vld [vmem:[#allocation17 + $0x3f0] sm:$0xff] }
 0x4ae   :  { %2962 = vmatpush1.bf16.msra.mxu0 %v7173_v35  ;;  %v1344_v35 = vld [vmem:[#allocation17 + $0x2b8] sm:$0xff] }
 0x4af   :  { %3044 = vmatpush1.bf16.msra.mxu1 %v7175_v9  ;;  %2963 = vmatprep.subr.bf16.mxu0 %v7182_v53  ;;  %v7229_v9 = vcombine.low %v1331_v5, %v1335_v20  ;;  %v7231_v53 = vcombine.low %v1332_v7, %v1336_v8  ;;  %v7240_v61 = vcombine.high %v1340_v33, %v1344_v35  ;;  %v1387_v20 = vld [vmem:[#allocation17 + $0x410] sm:$0xff]  ;;  %v1388_v8 = vld [vmem:[#allocation17 + $0x418] sm:$0xff] }
 0x4b0   :  { %3045 = vmatprep.subr.bf16.mxu1 %v7184_v0  ;;  %v7238_v0 = vcombine.high %v1339_v17, %v1343_v18  ;;  %v1391_v7 = vld [vmem:[#allocation17 + $0x430] sm:$0xff] }
 0x4b2   :  { %2964 = vmatpush1.bf16.msra.mxu0 %v7181_v19  ;;  %v1352_v19 = vld [vmem:[#allocation17 + $0x2f8] sm:$0xff] }
 0x4b3   :  { %3046 = vmatpush1.bf16.msra.mxu1 %v7183_v21  ;;  %2965 = vmatprep.subr.bf16.mxu0 %v7190_v22  ;;  %v7237_v21 = vcombine.low %v1339_v17, %v1343_v18  ;;  %v7239_v22 = vcombine.low %v1340_v33, %v1344_v35  ;;  %v7248_v24 = vcombine.high %v1348_v6, %v1352_v19  ;;  %v1395_v18 = vld [vmem:[#allocation17 + $0x450] sm:$0xff] }
 0x4b4   :  { %3047 = vmatprep.subr.bf16.mxu1 %v7192_v23  ;;  %v7246_v23 = vcombine.high %v1347_v48, %v1351_v31  ;;  %v1399_v33 = vld [vmem:[#allocation17 + $0x470] sm:$0xff]  ;;  %v7285_v35 = vcombine.low %v1387_v20, %v1391_v7 }
 0x4b6   :  { %2966 = vmatpush1.bf16.msra.mxu0 %v7189_v28  ;;  %v1360_v28 = vld [vmem:[#allocation17 + $0x338] sm:$0xff] }
 0x4b7   :  { %3048 = vmatpush1.bf16.msra.mxu1 %v7191_v29  ;;  %2967 = vmatprep.subr.bf16.mxu0 %v7198_v30  ;;  %v7245_v29 = vcombine.low %v1347_v48, %v1351_v31  ;;  %v7247_v30 = vcombine.low %v1348_v6, %v1352_v19  ;;  %v7256_v36 = vcombine.high %v1356_v27, %v1360_v28  ;;  %v1403_v48 = vld [vmem:[#allocation17 + $0x490] sm:$0xff]  ;;  %v1404_v19 = vld [vmem:[#allocation17 + $0x498] sm:$0xff] }
 0x4b8   :  { %3049 = vmatprep.subr.bf16.mxu1 %v7200_v34  ;;  %v7254_v34 = vcombine.high %v1355_v25, %v1359_v26  ;;  %v1407_v31 = vld [vmem:[#allocation17 + $0x4b0] sm:$0xff] }
 0x4ba   :  { %2968 = vmatpush1.bf16.msra.mxu0 %v7197_v40  ;;  %v1368_v40 = vld [vmem:[#allocation17 + $0x378] sm:$0xff] }
 0x4bb   :  { %3050 = vmatpush1.bf16.msra.mxu1 %v7199_v42  ;;  %2969 = vmatprep.subr.bf16.mxu0 %v7206_v43  ;;  %v7253_v42 = vcombine.low %v1355_v25, %v1359_v26  ;;  %v7255_v43 = vcombine.low %v1356_v27, %v1360_v28  ;;  %v7264_v45 = vcombine.high %v1364_v39, %v1368_v40  ;;  %v1411_v26 = vld [vmem:[#allocation17 + $0x4d0] sm:$0xff]  ;;  %v1412_v28 = vld [vmem:[#allocation17 + $0x4d8] sm:$0xff] }
 0x4bc   :  { %3051 = vmatprep.subr.bf16.mxu1 %v7208_v44  ;;  %v7262_v44 = vcombine.high %v1363_v37, %v1367_v38  ;;  %v1415_v27 = vld [vmem:[#allocation17 + $0x4f0] sm:$0xff] }
 0x4be   :  { %2970 = vmatpush1.bf16.msra.mxu0 %v7205_v56  ;;  %v1376_v56 = vld [vmem:[#allocation17 + $0x3b8] sm:$0xff] }
 0x4bf   :  { %3052 = vmatpush1.bf16.msra.mxu1 %v7207_v1  ;;  %2971 = vmatprep.subr.bf16.mxu0 %v7214_v2  ;;  %v7261_v1 = vcombine.low %v1363_v37, %v1367_v38  ;;  %v7263_v2 = vcombine.low %v1364_v39, %v1368_v40  ;;  %v7272_v10 = vcombine.high %v1372_v55, %v1376_v56  ;;  %v1419_v37 = vld [vmem:[#allocation17 + $0x510] sm:$0xff]  ;;  %v1420_v39 = vld [vmem:[#allocation17 + $0x518] sm:$0xff] }
 0x4c0   :  { %3053 = vmatprep.subr.bf16.mxu1 %v7216_v3  ;;  %v7270_v3 = vcombine.high %v1371_v51, %v1375_v54  ;;  %v1423_v38 = vld [vmem:[#allocation17 + $0x530] sm:$0xff]  ;;  %v1424_v40 = vld [vmem:[#allocation17 + $0x538] sm:$0xff] }
 0x4c2   :  { %2972 = vmatpush1.bf16.msra.mxu0 %v7213_v60  ;;  %v1384_v60 = vld [vmem:[#allocation17 + $0x3f8] sm:$0xff] }
 0x4c3   :  { %3054 = vmatpush1.bf16.msra.mxu1 %v7215_v62  ;;  %2973 = vmatprep.subr.bf16.mxu0 %v7222_v63  ;;  %v7269_v62 = vcombine.low %v1371_v51, %v1375_v54  ;;  %v7271_v63 = vcombine.low %v1372_v55, %v1376_v56  ;;  %v7280_v5 = vcombine.high %v1380_v47, %v1384_v60  ;;  %v1431_v51 = vld [vmem:[#allocation17 + $0x570] sm:$0xff]  ;;  %v1428_v54 = vld [vmem:[#allocation17 + $0x558] sm:$0xff] }
 0x4c4   :  { %3055 = vmatprep.subr.bf16.mxu1 %v7224_v4  ;;  %v7278_v4 = vcombine.high %v1379_v14, %v1383_v15  ;;  %v1432_v55 = vld [vmem:[#allocation17 + $0x578] sm:$0xff]  ;;  %v7317_v56 = vcombine.low %v1419_v37, %v1423_v38 }
 0x4c6   :  { %2974 = vmatpush1.bf16.msra.mxu0 %v7221_v11  ;;  %v1392_v11 = vld [vmem:[#allocation17 + $0x438] sm:$0xff] }
 0x4c7   :  { %3056 = vmatpush1.bf16.msra.mxu1 %v7223_v12  ;;  %2975 = vmatprep.subr.bf16.mxu0 %v7230_v13  ;;  %v7277_v12 = vcombine.low %v1379_v14, %v1383_v15  ;;  %v7279_v13 = vcombine.low %v1380_v47, %v1384_v60  ;;  %v7288_v17 = vcombine.high %v1388_v8, %v1392_v11  ;;  %v1439_v14 = vld [vmem:[#allocation17 + $0x5b0] sm:$0xff]  ;;  %v1436_v15 = vld [vmem:[#allocation17 + $0x598] sm:$0xff] }
 0x4c8   :  { %3057 = vmatprep.subr.bf16.mxu1 %v7232_v16  ;;  %v7286_v16 = vcombine.high %v1387_v20, %v1391_v7  ;;  %v1440_v47 = vld [vmem:[#allocation17 + $0x5b8] sm:$0xff]  ;;  %v1447_v20 = vld [vmem:[#allocation17 + $0x5f0] sm:$0xff] }
 0x4c9   :  { %v1444_v7 = vld [vmem:[#allocation17 + $0x5d8] sm:$0xff] }
 0x4ca   :  { %2976 = vmatpush1.bf16.msra.mxu0 %v7229_v9  ;;  %v1396_v9 = vld [vmem:[#allocation17 + $0x458] sm:$0xff] }
 0x4cb   :  { %3058 = vmatpush1.bf16.msra.mxu1 %v7231_v53  ;;  %2977 = vmatprep.subr.bf16.mxu0 %v7238_v0  ;;  %v1400_v53 = vld [vmem:[#allocation17 + $0x478] sm:$0xff]  ;;  %v7287_v0 = vcombine.low %v1388_v8, %v1392_v11 }
 0x4cc   :  { %3059 = vmatprep.subr.bf16.mxu1 %v7240_v61  ;;  %v7294_v61 = vcombine.high %v1395_v18, %v1399_v33  ;;  %v7296_v6 = vcombine.high %v1396_v9, %v1400_v53  ;;  %v1448_v8 = vld [vmem:[#allocation17 + $0x5f8] sm:$0xff] }
 0x4ce   :  { %2978 = vmatpush1.bf16.msra.mxu0 %v7237_v21  ;;  %v1408_v21 = vld [vmem:[#allocation17 + $0x4b8] sm:$0xff] }
 0x4cf   :  { %3060 = vmatpush1.bf16.msra.mxu1 %v7239_v22  ;;  %2979 = vmatprep.subr.bf16.mxu0 %v7246_v23  ;;  %v7293_v22 = vcombine.low %v1395_v18, %v1399_v33  ;;  %v7295_v23 = vcombine.low %v1396_v9, %v1400_v53  ;;  %v7304_v25 = vcombine.high %v1404_v19, %v1408_v21  ;;  %v1455_v18 = vld [vmem:[#allocation17 + $0x630] sm:$0xff]  ;;  %v1452_v33 = vld [vmem:[#allocation17 + $0x618] sm:$0xff] }
 0x4d0   :  { %3061 = vmatprep.subr.bf16.mxu1 %v7248_v24  ;;  %v7302_v24 = vcombine.high %v1403_v48, %v1407_v31  ;;  %v7343_v53 = vcombine.low %v1444_v7, %v1448_v8 }
 0x4d2   :  { %2980 = vmatpush1.bf16.msra.mxu0 %v7245_v29  ;;  %v1416_v29 = vld [vmem:[#allocation17 + $0x4f8] sm:$0xff] }
 0x4d3   :  { %3062 = vmatpush1.bf16.msra.mxu1 %v7247_v30  ;;  %2981 = vmatprep.subr.bf16.mxu0 %v7254_v34  ;;  %v7301_v30 = vcombine.low %v1403_v48, %v1407_v31  ;;  %v7310_v34 = vcombine.high %v1411_v26, %v1415_v27  ;;  %v1459_v48 = vld [vmem:[#allocation17 + $0x650] sm:$0xff] }
 0x4d4   :  { %3063 = vmatprep.subr.bf16.mxu1 %v7256_v36  ;;  %v7312_v36 = vcombine.high %v1412_v28, %v1416_v29  ;;  %v1463_v31 = vld [vmem:[#allocation17 + $0x670] sm:$0xff] }
 0x4d6   :  { %2982 = vmatpush1.bf16.msra.mxu0 %v7253_v42  ;;  %v7311_v42 = vcombine.low %v1412_v28, %v1416_v29  ;;  %v1472_v28 = vld [vmem:[#allocation17 + $0x6b8] sm:$0xff]  ;;  %v7357_v29 = vcombine.low %v1459_v48, %v1463_v31 }
 0x4d7   :  { %3064 = vmatpush1.bf16.msra.mxu1 %v7255_v43  ;;  %2983 = vmatprep.subr.bf16.mxu0 %v7262_v44  ;;  %v7318_v43 = vcombine.high %v1419_v37, %v1423_v38  ;;  %v7320_v44 = vcombine.high %v1420_v39, %v1424_v40  ;;  %v1479_v37 = vld [vmem:[#allocation17 + $0x6f0] sm:$0xff]  ;;  %v1476_v38 = vld [vmem:[#allocation17 + $0x6d8] sm:$0xff] }
 0x4d8   :  { %3065 = vmatprep.subr.bf16.mxu1 %v7264_v45  ;;  %v1427_v45 = vld [vmem:[#allocation17 + $0x550] sm:$0xff] }
 0x4d9   :  { %v7325_v60 = vcombine.low %v1427_v45, %v1431_v51 }
 0x4da   :  { %2984 = vmatpush1.bf16.msra.mxu0 %v7261_v1  ;;  %v7319_v1 = vcombine.low %v1420_v39, %v1424_v40  ;;  %v1480_v39 = vld [vmem:[#allocation17 + $0x6f8] sm:$0xff] }
 0x4db   :  { %3066 = vmatpush1.bf16.msra.mxu1 %v7263_v2  ;;  %2985 = vmatprep.subr.bf16.mxu0 %v7270_v3  ;;  %v7326_v2 = vcombine.high %v1427_v45, %v1431_v51  ;;  %v7328_v3 = vcombine.high %v1428_v54, %v1432_v55  ;;  %v1487_v45 = vld [vmem:[#allocation17 + $0x730] sm:$0xff]  ;;  %v1484_v51 = vld [vmem:[#allocation17 + $0x718] sm:$0xff] }
 0x4dc   :  { %3067 = vmatprep.subr.bf16.mxu1 %v7272_v10  ;;  %v1435_v10 = vld [vmem:[#allocation17 + $0x590] sm:$0xff] }
 0x4dd   :  { %v7333_v11 = vcombine.low %v1435_v10, %v1439_v14 }
 0x4de   :  { %2986 = vmatpush1.bf16.msra.mxu0 %v7269_v62  ;;  %v7327_v62 = vcombine.low %v1428_v54, %v1432_v55  ;;  %v1488_v54 = vld [vmem:[#allocation17 + $0x738] sm:$0xff] }
 0x4df   :  { %3068 = vmatpush1.bf16.msra.mxu1 %v7271_v63  ;;  %2987 = vmatprep.subr.bf16.mxu0 %v7278_v4  ;;  %v7334_v63 = vcombine.high %v1435_v10, %v1439_v14  ;;  %v7336_v4 = vcombine.high %v1436_v15, %v1440_v47  ;;  %v1495_v10 = vld [vmem:[#allocation17 + $0x770] sm:$0xff]  ;;  %v1492_v14 = vld [vmem:[#allocation17 + $0x758] sm:$0xff] }
 0x4e0   :  { %3069 = vmatprep.subr.bf16.mxu1 %v7280_v5  ;;  %v1443_v5 = vld [vmem:[#allocation17 + $0x5d0] sm:$0xff] }
 0x4e1   :  { %v7341_v9 = vcombine.low %v1443_v5, %v1447_v20 }
 0x4e2   :  { %2988 = vmatpush1.bf16.msra.mxu0 %v7277_v12  ;;  %v7335_v12 = vcombine.low %v1436_v15, %v1440_v47  ;;  %v1496_v15 = vld [vmem:[#allocation17 + $0x778] sm:$0xff] }
 0x4e3   :  { %3070 = vmatpush1.bf16.msra.mxu1 %v7279_v13  ;;  %2998 = vmatprep.subr.bf16.mxu0 %v7286_v16  ;;  %v7342_v13 = vcombine.high %v1443_v5, %v1447_v20  ;;  %v7344_v16 = vcombine.high %v1444_v7, %v1448_v8  ;;  %v1503_v5 = vld [vmem:[#allocation17 + $0x7b0] sm:$0xff]  ;;  %v1500_v20 = vld [vmem:[#allocation17 + $0x798] sm:$0xff] }
 0x4e4   :  { %3080 = vmatprep.subr.bf16.mxu1 %v7288_v17  ;;  %v1451_v17 = vld [vmem:[#allocation17 + $0x610] sm:$0xff]  ;;  %v1504_v7 = vld [vmem:[#allocation17 + $0x7b8] sm:$0xff] }
 0x4e5   :  { %2990 = vmatmul.mubr.bf16.vlgmr.msra.gmra.mrb[8].mxu0 %v9585_v32 }
 0x4e6   :  { %3072 = vmatmul.mubr.bf16.vlgmr.msra.gmra.mrb[16].mxu1 %v9585_v32  ;;  %2999 = vmatpush1.bf16.msra.mxu0 %v7285_v35  ;;  %v7303_v32 = vcombine.low %v1404_v19, %v1408_v21  ;;  %v1456_v35 = vld [vmem:[#allocation17 + $0x638] sm:$0xff]  ;;  %v7349_v21 = vcombine.low %v1451_v17, %v1455_v18 }
 0x4e7   :  { %3030 = vmatprep.mubr.bf16.mxu0 %v9591_v41  ;;  %3081 = vmatpush1.bf16.msra.mxu1 %v7287_v0  ;;  %v7350_v0 = vcombine.high %v1451_v17, %v1455_v18  ;;  %v1464_v19 = vld [vmem:[#allocation17 + $0x678] sm:$0xff]  ;;  %v1511_v17 = vld [vmem:[#allocation17 + $0x7f0] sm:$0xff] }
 0x4e8   :  { %3112 = vmatprep.mubr.bf16.mxu1 %v9591_v41  ;;  %3000 = vmatprep.subr.bf16.mxu0 %v7294_v61  ;;  %v7309_v41 = vcombine.low %v1411_v26, %v1415_v27  ;;  %v7352_v61 = vcombine.high %v1452_v33, %v1456_v35  ;;  %v1471_v26 = vld [vmem:[#allocation17 + $0x6b0] sm:$0xff]  ;;  %v1468_v27 = vld [vmem:[#allocation17 + $0x698] sm:$0xff] }
 0x4e9   :  { %3082 = vmatprep.subr.bf16.mxu1 %v7296_v6  ;;  %v1460_v6 = vld [vmem:[#allocation17 + $0x658] sm:$0xff] }
 0x4ea   :  { %3001 = vmatpush1.bf16.msra.mxu0 %v7293_v22  ;;  %v7351_v22 = vcombine.low %v1452_v33, %v1456_v35  ;;  %v1508_v18 = vld [vmem:[#allocation17 + $0x7d8] sm:$0xff] }
 0x4eb   :  { %3083 = vmatpush1.bf16.msra.mxu1 %v7295_v23  ;;  %3002 = vmatprep.subr.bf16.mxu0 %v7302_v24  ;;  %v7358_v23 = vcombine.high %v1459_v48, %v1463_v31  ;;  %v7360_v24 = vcombine.high %v1460_v6, %v1464_v19  ;;  %v1512_v33 = vld [vmem:[#allocation17 + $0x7f8] sm:$0xff] }
 0x4ec   :  { %3084 = vmatprep.subr.bf16.mxu1 %v7304_v25  ;;  %v1467_v25 = vld [vmem:[#allocation17 + $0x690] sm:$0xff]  ;;  %v7407_v48 = vcombine.low %v1508_v18, %v1512_v33 }
 0x4ed   :  { %v7365_v40 = vcombine.low %v1467_v25, %v1471_v26 }
 0x4ee   :  { %3003 = vmatpush1.bf16.msra.mxu0 %v7301_v30  ;;  %v7359_v30 = vcombine.low %v1460_v6, %v1464_v19 }
 0x4ef   :  { %3085 = vmatpush1.bf16.msra.mxu1 %v7303_v32  ;;  %3004 = vmatprep.subr.bf16.mxu0 %v7310_v34  ;;  %v7366_v32 = vcombine.high %v1467_v25, %v1471_v26  ;;  %v7368_v34 = vcombine.high %v1468_v27, %v1472_v28 }
 0x4f0   :  { %3086 = vmatprep.subr.bf16.mxu1 %v7312_v36  ;;  %v1475_v36 = vld [vmem:[#allocation17 + $0x6d0] sm:$0xff] }
 0x4f1   :  { %v7373_v55 = vcombine.low %v1475_v36, %v1479_v37 }
 0x4f2   :  { %3005 = vmatpush1.bf16.msra.mxu0 %v7309_v41  ;;  %v7367_v41 = vcombine.low %v1468_v27, %v1472_v28 }
 0x4f3   :  { %3087 = vmatpush1.bf16.msra.mxu1 %v7311_v42  ;;  %3006 = vmatprep.subr.bf16.mxu0 %v7318_v43  ;;  %v7374_v42 = vcombine.high %v1475_v36, %v1479_v37  ;;  %v7376_v43 = vcombine.high %v1476_v38, %v1480_v39 }
 0x4f4   :  { %3088 = vmatprep.subr.bf16.mxu1 %v7320_v44  ;;  %v1483_v44 = vld [vmem:[#allocation17 + $0x710] sm:$0xff] }
 0x4f5   :  { %v7381_v47 = vcombine.low %v1483_v44, %v1487_v45 }
 0x4f6   :  { %3007 = vmatpush1.bf16.msra.mxu0 %v7317_v56  ;;  %v7375_v56 = vcombine.low %v1476_v38, %v1480_v39 }
 0x4f7   :  { %3089 = vmatpush1.bf16.msra.mxu1 %v7319_v1  ;;  %3008 = vmatprep.subr.bf16.mxu0 %v7326_v2  ;;  %v7382_v1 = vcombine.high %v1483_v44, %v1487_v45  ;;  %v7384_v2 = vcombine.high %v1484_v51, %v1488_v54 }
 0x4f8   :  { %3090 = vmatprep.subr.bf16.mxu1 %v7328_v3  ;;  %v1491_v3 = vld [vmem:[#allocation17 + $0x750] sm:$0xff] }
 0x4f9   :  { %v7389_v8 = vcombine.low %v1491_v3, %v1495_v10 }
 0x4fa   :  { %3009 = vmatpush1.bf16.msra.mxu0 %v7325_v60  ;;  %v7383_v60 = vcombine.low %v1484_v51, %v1488_v54 }
 0x4fb   :  { %3091 = vmatpush1.bf16.msra.mxu1 %v7327_v62  ;;  %3010 = vmatprep.subr.bf16.mxu0 %v7334_v63  ;;  %v7390_v62 = vcombine.high %v1491_v3, %v1495_v10  ;;  %v7392_v63 = vcombine.high %v1492_v14, %v1496_v15 }
 0x4fc   :  { %3092 = vmatprep.subr.bf16.mxu1 %v7336_v4  ;;  %v1499_v4 = vld [vmem:[#allocation17 + $0x790] sm:$0xff] }
 0x4fd   :  { %v7397_v35 = vcombine.low %v1499_v4, %v1503_v5 }
 0x4fe   :  { %3011 = vmatpush1.bf16.msra.mxu0 %v7333_v11  ;;  %v7391_v11 = vcombine.low %v1492_v14, %v1496_v15 }
 0x4ff   :  { %3093 = vmatpush1.bf16.msra.mxu1 %v7335_v12  ;;  %3012 = vmatprep.subr.bf16.mxu0 %v7342_v13  ;;  %v7398_v12 = vcombine.high %v1499_v4, %v1503_v5  ;;  %v7400_v13 = vcombine.high %v1500_v20, %v1504_v7 }
 0x500   :  { %3094 = vmatprep.subr.bf16.mxu1 %v7344_v16  ;;  %v1507_v16 = vld [vmem:[#allocation17 + $0x7d0] sm:$0xff] }
 0x502   :  { %3013 = vmatpush1.bf16.msra.mxu0 %v7341_v9  ;;  %v7399_v9 = vcombine.low %v1500_v20, %v1504_v7 }
 0x503   :  { %3095 = vmatpush1.bf16.msra.mxu1 %v7343_v53  ;;  %3014 = vmatprep.subr.bf16.mxu0 %v7350_v0  ;;  %v7406_v53 = vcombine.high %v1507_v16, %v1511_v17  ;;  %v7408_v0 = vcombine.high %v1508_v18, %v1512_v33  ;;  %v8189_v18 = vld [vmem:[#allocation22] ss:$28 sps:$4 sm:$0xff]   ;;  %v8192_v33 = vld [vmem:[#allocation22 + $0x8] ss:$28 sps:$4 sm:$0xff]  }
 0x504   :  { %3096 = vmatprep.subr.bf16.mxu1 %v7352_v61  ;;  %v7405_v61 = vcombine.low %v1507_v16, %v1511_v17 }
 0x506   :  { %3015 = vmatpush1.bf16.msra.mxu0 %v7349_v21 }
 0x507   :  { %3097 = vmatpush1.bf16.msra.mxu1 %v7351_v22  ;;  %3016 = vmatprep.subr.bf16.mxu0 %v7358_v23 }
 0x508   :  { %3098 = vmatprep.subr.bf16.mxu1 %v7360_v24 }
 0x50a   :  { %3017 = vmatpush1.bf16.msra.mxu0 %v7357_v29 }
 0x50b   :  { %3099 = vmatpush1.bf16.msra.mxu1 %v7359_v30  ;;  %3018 = vmatprep.subr.bf16.mxu0 %v7366_v32 }
 0x50c   :  { %3100 = vmatprep.subr.bf16.mxu1 %v7368_v34 }
 0x50e   :  { %3019 = vmatpush1.bf16.msra.mxu0 %v7365_v40 }
 0x50f   :  { %3101 = vmatpush1.bf16.msra.mxu1 %v7367_v41  ;;  %3020 = vmatprep.subr.bf16.mxu0 %v7374_v42 }
 0x510   :  { %3102 = vmatprep.subr.bf16.mxu1 %v7376_v43 }
 0x512   :  { %3021 = vmatpush1.bf16.msra.mxu0 %v7373_v55 }
 0x513   :  { %3103 = vmatpush1.bf16.msra.mxu1 %v7375_v56  ;;  %3022 = vmatprep.subr.bf16.mxu0 %v7382_v1 }
 0x514   :  { %3104 = vmatprep.subr.bf16.mxu1 %v7384_v2 }
 0x516   :  { %3023 = vmatpush1.bf16.msra.mxu0 %v7381_v47 }
 0x517   :  { %3105 = vmatpush1.bf16.msra.mxu1 %v7383_v60  ;;  %3024 = vmatprep.subr.bf16.mxu0 %v7390_v62 }
 0x518   :  { %3106 = vmatprep.subr.bf16.mxu1 %v7392_v63 }
 0x51a   :  { %3025 = vmatpush1.bf16.msra.mxu0 %v7389_v8  ;;  %v8191_v8 = vld [vmem:[#allocation22 + $0x4] ss:$28 sps:$4 sm:$0xff]  }
 0x51b   :  { %3107 = vmatpush1.bf16.msra.mxu1 %v7391_v11  ;;  %3026 = vmatprep.subr.bf16.mxu0 %v7398_v12  ;;  %v8194_v11 = vld [vmem:[#allocation22 + $0xc] ss:$28 sps:$4 sm:$0xff]  }
 0x51c   :  { %3108 = vmatprep.subr.bf16.mxu1 %v7400_v13 }
 0x51e   :  { %3027 = vmatpush1.bf16.msra.mxu0 %v7397_v35 }
 0x51f   :  { %3109 = vmatpush1.bf16.msra.mxu1 %v7399_v9  ;;  %3028 = vmatprep.subr.bf16.mxu0 %v7406_v53 }
 0x520   :  { %3110 = vmatprep.subr.bf16.mxu1 %v7408_v0 }
 0x522   :  { %3029 = vmatpush1.bf16.msra.mxu0 %v7405_v61 }
 0x523   :  { %3111 = vmatpush1.bf16.msra.mxu1 %v7407_v48  ;;  %6376 = vmatprep.subr.bf16.mxu0 %v8191_v8  ;;  %v8213_v8 = vld [vmem:[#allocation22 + $0xe0] ss:$28 sps:$4 sm:$0xff]  }
 0x524   :  { %6540 = vmatprep.subr.bf16.mxu1 %v8194_v11  ;;  %v8216_v11 = vld [vmem:[#allocation22 + $0xe8] ss:$28 sps:$4 sm:$0xff]  }
 0x525   :  { %3031 = vmatmul.mubr.bf16.vlgmr.msra.gmra.mrb[8].mxu0 %v9603_v57 }
 0x526   :  { %3113 = vmatmul.mubr.bf16.vlgmr.msra.gmra.mrb[16].mxu1 %v9603_v57  ;;  %6377 = vmatpush1.bf16.msra.mxu0 %v8189_v18 }
 0x527   :  { %6541 = vmatpush1.bf16.msra.mxu1 %v8192_v33 }
 0x578   :  { %v9615_v31 = vpop.f32.mrb[4].mxu0  ;;  %v9617_v6 = vpop.f32.mrb[12].mxu1 }
 0x579   :  { %v3121_v19 = vrot.slane %v9615_v31, 4  ;;  %v3177_v21 = vmul.f32 %v9615_v31, %v9615_v31  ;;  %v3133_v22 = vrot.slane %v9617_v6, 4  ;;  %v3179_v23 = vmul.f32 %v9617_v6, %v9617_v6  ;;  %v9625_v24 = vpop.f32.mrb[5].mxu0  ;;  %v9627_v25 = vpop.f32.mrb[13].mxu1 }
 0x57a   :  { %v3127_v57 = vrot.slane %v9625_v24, 4  ;;  %v3178_v26 = vmul.f32 %v9625_v24, %v9625_v24  ;;  %v3139_v27 = vrot.slane %v9627_v25, 4  ;;  %v3180_v28 = vmul.f32 %v9627_v25, %v9627_v25  ;;  %v2872_v29 = vpop.f32.mrb[6].mxu0  ;;  %v2954_v30 = vpop.f32.mrb[14].mxu1 }
 0x57b   :  { %v3122_v32 = vadd.f32 %v3121_v19, %v9615_v31  ;;  %v3185_v34 = vrot.slane %v3177_v21, 4  ;;  %v3134_v36 = vadd.f32 %v3133_v22, %v9617_v6  ;;  %v3197_v37 = vrot.slane %v3179_v23, 4  ;;  %v2873_v38 = vpop.f32.mrb[7].mxu0  ;;  %v2955_v39 = vpop.f32.mrb[15].mxu1 }
 0x57c   :  { %v3128_v40 = vadd.f32 %v3127_v57, %v9625_v24  ;;  %v3191_v41 = vrot.slane %v3178_v26, 4  ;;  %v3140_v42 = vadd.f32 %v3139_v27, %v9627_v25  ;;  %v3203_v43 = vrot.slane %v3180_v28, 4  ;;  %v8197_v27 = vld [vmem:[#allocation22 + $0x3c] ss:$28 sps:$4 sm:$0xff]  }
 0x57d   :  { %v3123_v44 = vrot.slane %v3122_v32, 2  ;;  %v3186_v45 = vadd.f32 %v3185_v34, %v3177_v21  ;;  %v3135_v51 = vrot.slane %v3134_v36, 2  ;;  %v3198_v54 = vadd.f32 %v3197_v37, %v3179_v23  ;;  %v8198_v37 = vld [vmem:[#allocation22 + $0x40] ss:$28 sps:$4 sm:$0xff]   ;;  %6378 = vmatprep.subr.bf16.mxu0 %v8197_v27  ;;  %v8233_v27 = vld [vmem:[#allocation22 + $0x18c] ss:$28 sps:$4 sm:$0xff]  }
 0x57e   :  { %v3129_v55 = vrot.slane %v3128_v40, 2  ;;  %v3192_v56 = vadd.f32 %v3191_v41, %v3178_v26  ;;  %v3141_v1 = vrot.slane %v3140_v42, 2  ;;  %v3204_v2 = vadd.f32 %v3203_v43, %v3180_v28  ;;  %v8200_v28 = vld [vmem:[#allocation22 + $0x44] ss:$28 sps:$4 sm:$0xff]  }
 0x57f   :  { %v3124_v3 = vadd.f32 %v3123_v44, %v3122_v32  ;;  %v3187_v10 = vrot.slane %v3186_v45, 2  ;;  %v3136_v14 = vadd.f32 %v3135_v51, %v3134_v36  ;;  %v3199_v15 = vrot.slane %v3198_v54, 2  ;;  %v8195_v36 = vld [vmem:[#allocation22 + $0x38] ss:$28 sps:$4 sm:$0xff]   ;;  %6542 = vmatprep.subr.bf16.mxu1 %v8200_v28 }
 0x580   :  { %v3130_v47 = vadd.f32 %v3129_v55, %v3128_v40  ;;  %v3193_v60 = vrot.slane %v3192_v56, 2  ;;  %v3142_v62 = vadd.f32 %v3141_v1, %v3140_v42  ;;  %v3205_v63 = vrot.slane %v3204_v2, 2  ;;  %6379 = vmatpush1.bf16.msra.mxu0 %v8195_v36  ;;  %6543 = vmatpush1.bf16.msra.mxu1 %v8198_v37  ;;  %v8203_v55 = vld [vmem:[#allocation22 + $0x74] ss:$28 sps:$4 sm:$0xff]   ;;  %v8239_v37 = vld [vmem:[#allocation22 + $0x1c4] ss:$28 sps:$4 sm:$0xff]  }
 0x581   :  { %v3125_v4 = vrot.slane %v3124_v3, 1  ;;  %v3188_v5 = vadd.f32 %v3187_v10, %v3186_v45  ;;  %v3137_v20 = vrot.slane %v3136_v14, 1  ;;  %v3200_v7 = vadd.f32 %v3199_v15, %v3198_v54  ;;  %v8204_v10 = vld [vmem:[#allocation22 + $0x78] ss:$28 sps:$4 sm:$0xff]   ;;  %6380 = vmatprep.subr.bf16.mxu0 %v8203_v55 }
 0x582   :  { %v3131_v12 = vrot.slane %v3130_v47, 1  ;;  %v3194_v13 = vadd.f32 %v3193_v60, %v3192_v56  ;;  %v3143_v16 = vrot.slane %v3142_v62, 1  ;;  %v3206_v17 = vadd.f32 %v3205_v63, %v3204_v2  ;;  %v8206_v56 = vld [vmem:[#allocation22 + $0x7c] ss:$28 sps:$4 sm:$0xff]   ;;  %v8212_v63 = vld [vmem:[#allocation22 + $0xb4] ss:$28 sps:$4 sm:$0xff]  }
 0x583   :  { %v3126_v35 = vadd.f32 %v3125_v4, %v3124_v3  ;;  %v3189_v9 = vrot.slane %v3188_v5, 1  ;;  %v3138_v53 = vadd.f32 %v3137_v20, %v3136_v14  ;;  %v3201_v0 = vrot.slane %v3200_v7, 1  ;;  %v8201_v3 = vld [vmem:[#allocation22 + $0x70] ss:$28 sps:$4 sm:$0xff]   ;;  %6544 = vmatprep.subr.bf16.mxu1 %v8206_v56  ;;  %v8207_v4 = vld [vmem:[#allocation22 + $0xa8] ss:$28 sps:$4 sm:$0xff]  }
 0x584   :  { %v3132_v61 = vadd.f32 %v3131_v12, %v3130_v47  ;;  %v3195_v48 = vrot.slane %v3194_v13, 1  ;;  %v3144_v19 = vadd.f32 %v3143_v16, %v3142_v62  ;;  %v3207_v21 = vrot.slane %v3206_v17, 1  ;;  %6381 = vmatpush1.bf16.msra.mxu0 %v8201_v3  ;;  %6545 = vmatpush1.bf16.msra.mxu1 %v8204_v10  ;;  %v8209_v62 = vld [vmem:[#allocation22 + $0xac] ss:$28 sps:$4 sm:$0xff]   ;;  %v8215_v20 = vld [vmem:[#allocation22 + $0xe4] ss:$28 sps:$4 sm:$0xff]  }
 0x585   :  { %v9639_v22 = vmul.f32 0.125, %v3126_v35  ;;  %v3190_v23 = vadd.f32 %v3189_v9, %v3188_v5  ;;  %v9641_v57 = vmul.f32 0.125, %v3138_v53  ;;  %v3202_v26 = vadd.f32 %v3201_v0, %v3200_v7  ;;  %v8210_v5 = vld [vmem:[#allocation22 + $0xb0] ss:$28 sps:$4 sm:$0xff]   ;;  %6382 = vmatprep.subr.bf16.mxu0 %v8209_v62  ;;  %6546 = vmatprep.subr.bf16.mxu1 %v8212_v63  ;;  %v8221_v12 = vld [vmem:[#allocation22 + $0x11c] ss:$28 sps:$4 sm:$0xff]  }
 0x586   :  { %v9643_v29 = vmul.f32 0.125, %v3132_v61  ;;  %v3196_v30 = vadd.f32 %v3195_v48, %v3194_v13  ;;  %v9645_v32 = vmul.f32 0.125, %v3144_v19  ;;  %v3208_v34 = vadd.f32 %v3207_v21, %v3206_v17  ;;  %v8218_v7 = vld [vmem:[#allocation22 + $0xec] ss:$28 sps:$4 sm:$0xff]   ;;  %v8224_v13 = vld [vmem:[#allocation22 + $0x124] ss:$28 sps:$4 sm:$0xff]  }
 0x587   :  { %v3233_v38 = vmul.f32 0.125, %v3190_v23  ;;  %v3241_v39 = vmul.f32 %v9639_v22, %v9639_v22  ;;  %v3235_v40 = vmul.f32 0.125, %v3202_v26  ;;  %v3243_v41 = vmul.f32 %v9641_v57, %v9641_v57  ;;  %v8219_v16 = vld [vmem:[#allocation22 + $0x118] ss:$28 sps:$4 sm:$0xff]   ;;  %v8222_v17 = vld [vmem:[#allocation22 + $0x120] ss:$28 sps:$4 sm:$0xff]  }
 0x588   :  { %v3234_v42 = vmul.f32 0.125, %v3196_v30  ;;  %v3242_v43 = vmul.f32 %v9643_v29, %v9643_v29  ;;  %v3236_v44 = vmul.f32 0.125, %v3208_v34  ;;  %v3244_v45 = vmul.f32 %v9645_v32, %v9645_v32  ;;  %6383 = vmatpush1.bf16.msra.mxu0 %v8207_v4  ;;  %6547 = vmatpush1.bf16.msra.mxu1 %v8210_v5  ;;  %v8227_v9 = vld [vmem:[#allocation22 + $0x154] ss:$28 sps:$4 sm:$0xff]   ;;  %v8230_v53 = vld [vmem:[#allocation22 + $0x15c] ss:$28 sps:$4 sm:$0xff]  }
 0x589   :  { %v3249_v51 = vsub.f32 %v3233_v38, %v3241_v39  ;;  %v3251_v54 = vsub.f32 %v3235_v40, %v3243_v41  ;;  %6384 = vmatprep.subr.bf16.mxu0 %v8215_v20  ;;  %6548 = vmatprep.subr.bf16.mxu1 %v8218_v7  ;;  %v8225_v48 = vld [vmem:[#allocation22 + $0x150] ss:$28 sps:$4 sm:$0xff]   ;;  %v8228_v19 = vld [vmem:[#allocation22 + $0x158] ss:$28 sps:$4 sm:$0xff]   ;;  %v8231_v30 = vld [vmem:[#allocation22 + $0x188] ss:$28 sps:$4 sm:$0xff]  }
 0x58a   :  { %v3250_v1 = vsub.f32 %v3234_v42, %v3242_v43  ;;  %v3252_v2 = vsub.f32 %v3236_v44, %v3244_v45  ;;  %v8236_v28 = vld [vmem:[#allocation22 + $0x194] ss:$28 sps:$4 sm:$0xff]   ;;  %v8242_v38 = vld [vmem:[#allocation22 + $0x1cc] ss:$28 sps:$4 sm:$0xff]   ;;  %v8237_v39 = vld [vmem:[#allocation22 + $0x1c0] ss:$28 sps:$4 sm:$0xff]  }
 0x58b   :  { %v3258_v14 = vadd.f32 0.8, %v3249_v51  ;;  %v3260_v15 = vadd.f32 0.8, %v3251_v54  ;;  %v8234_v34 = vld [vmem:[#allocation22 + $0x190] ss:$28 sps:$4 sm:$0xff]  }
 0x58c   :  { %v3259_v47 = vadd.f32 0.8, %v3250_v1  ;;  %v3261_v60 = vadd.f32 0.8, %v3252_v2  ;;  %6385 = vmatpush1.bf16.msra.mxu0 %v8213_v8  ;;  %6549 = vmatpush1.bf16.msra.mxu1 %v8216_v11  ;;  %v8240_v40 = vld [vmem:[#allocation22 + $0x1c8] ss:$28 sps:$4 sm:$0xff]  }
 0x58d   :  { %8841 = vrsqrt.f32 %v3258_v14  ;;  %6386 = vmatprep.subr.bf16.mxu0 %v8221_v12  ;;  %6550 = vmatprep.subr.bf16.mxu1 %v8224_v13  ;;  %v8245_v41 = vld [vmem:[#allocation22 + $0x1fc] ss:$28 sps:$4 sm:$0xff]   ;;  %v8248_v42 = vld [vmem:[#allocation22 + $0x204] ss:$28 sps:$4 sm:$0xff]   ;;  %v8251_v45 = vld [vmem:[#allocation22 + $0x234] ss:$28 sps:$4 sm:$0xff]  }
 0x58e   :  { %8843 = vrsqrt.f32 %v3260_v15  ;;  %v8243_v43 = vld [vmem:[#allocation22 + $0x1f8] ss:$28 sps:$4 sm:$0xff]   ;;  %v8246_v44 = vld [vmem:[#allocation22 + $0x200] ss:$28 sps:$4 sm:$0xff]   ;;  %v8249_v54 = vld [vmem:[#allocation22 + $0x230] ss:$28 sps:$4 sm:$0xff]  }
 0x58f   :  { %8845 = vrsqrt.f32 %v3259_v47  ;;  %v8254_v51 = vld [vmem:[#allocation22 + $0x23c] ss:$28 sps:$4 sm:$0xff]   ;;  %v8257_v56 = vld [vmem:[#allocation22 + $0x26c] ss:$28 sps:$4 sm:$0xff]   ;;  %v8260_v1 = vld [vmem:[#allocation22 + $0x274] ss:$28 sps:$4 sm:$0xff]  }
 0x590   :  { %8847 = vrsqrt.f32 %v3261_v60  ;;  %6387 = vmatpush1.bf16.msra.mxu0 %v8219_v16  ;;  %6551 = vmatpush1.bf16.msra.mxu1 %v8222_v17  ;;  %v8252_v55 = vld [vmem:[#allocation22 + $0x238] ss:$28 sps:$4 sm:$0xff]   ;;  %v8255_v2 = vld [vmem:[#allocation22 + $0x268] ss:$28 sps:$4 sm:$0xff]   ;;  %v8258_v3 = vld [vmem:[#allocation22 + $0x270] ss:$28 sps:$4 sm:$0xff]  }
 0x591   :  { %6388 = vmatprep.subr.bf16.mxu0 %v8227_v9  ;;  %6552 = vmatprep.subr.bf16.mxu1 %v8230_v53  ;;  %v8263_v10 = vld [vmem:[#allocation22 + $0x2a4] ss:$28 sps:$4 sm:$0xff]   ;;  %v8266_v14 = vld [vmem:[#allocation22 + $0x2ac] ss:$28 sps:$4 sm:$0xff]   ;;  %v8269_v60 = vld [vmem:[#allocation22 + $0x2dc] ss:$28 sps:$4 sm:$0xff]  }
 0x592   :  { %v8261_v15 = vld [vmem:[#allocation22 + $0x2a0] ss:$28 sps:$4 sm:$0xff]   ;;  %v8264_v47 = vld [vmem:[#allocation22 + $0x2a8] ss:$28 sps:$4 sm:$0xff]   ;;  %v8267_v63 = vld [vmem:[#allocation22 + $0x2d8] ss:$28 sps:$4 sm:$0xff]  }
 0x593   :  { %v8272_v62 = vld [vmem:[#allocation22 + $0x2e4] ss:$28 sps:$4 sm:$0xff]   ;;  %v8275_v5 = vld [vmem:[#allocation22 + $0x314] ss:$28 sps:$4 sm:$0xff]   ;;  %v8278_v20 = vld [vmem:[#allocation22 + $0x31c] ss:$28 sps:$4 sm:$0xff]  }
 0x594   :  { %6389 = vmatpush1.bf16.msra.mxu0 %v8225_v48  ;;  %6553 = vmatpush1.bf16.msra.mxu1 %v8228_v19  ;;  %v8270_v4 = vld [vmem:[#allocation22 + $0x2e0] ss:$28 sps:$4 sm:$0xff]   ;;  %v8273_v7 = vld [vmem:[#allocation22 + $0x310] ss:$28 sps:$4 sm:$0xff]   ;;  %v8276_v8 = vld [vmem:[#allocation22 + $0x318] ss:$28 sps:$4 sm:$0xff]  }
 0x595   :  { %6390 = vmatprep.subr.bf16.mxu0 %v8233_v27  ;;  %6554 = vmatprep.subr.bf16.mxu1 %v8236_v28  ;;  %v8279_v11 = vld [vmem:[#allocation22 + $0x348] ss:$28 sps:$4 sm:$0xff]   ;;  %v8282_v13 = vld [vmem:[#allocation22 + $0x350] ss:$28 sps:$4 sm:$0xff]  }
 0x596   :  { %v8281_v12 = vld [vmem:[#allocation22 + $0x34c] ss:$28 sps:$4 sm:$0xff]   ;;  %v8284_v16 = vld [vmem:[#allocation22 + $0x354] ss:$28 sps:$4 sm:$0xff]   ;;  %v8287_v17 = vld [vmem:[#allocation22 + $0x384] ss:$28 sps:$4 sm:$0xff]  }
 0x597   :  { %v8842_v18 = vpop.eup %8841 }
 0x598   :  { %v8844_v33 = vpop.eup %8843  ;;  %6391 = vmatpush1.bf16.msra.mxu0 %v8231_v30  ;;  %6555 = vmatpush1.bf16.msra.mxu1 %v8234_v34 }
 0x599   :  { %v8846_v35 = vpop.eup %8845  ;;  %6392 = vmatprep.subr.bf16.mxu0 %v8239_v37  ;;  %6556 = vmatprep.subr.bf16.mxu1 %v8242_v38 }
 0x59a   :  { %v8848_v0 = vpop.eup %8847  ;;  %v3282_v61 = vcombine.low %v8842_v18, %v8846_v35  ;;  %v8290_v18 = vld [vmem:[#allocation22 + $0x38c] ss:$28 sps:$4 sm:$0xff]  }
 0x59b   :  { %v3283_v21 = vcombine.low %v8844_v33, %v8848_v0 }
 0x59c   :  { %v9656_v23 = vrot.slane %v3282_v61, %v9494_v52  ;;  %6393 = vmatpush1.bf16.msra.mxu0 %v8237_v39  ;;  %6557 = vmatpush1.bf16.msra.mxu1 %v8240_v40 }
 0x59d   :  { %v9659_v26 = vrot.slane %v3283_v21, %v9494_v52  ;;  %6394 = vmatprep.subr.bf16.mxu0 %v8245_v41  ;;  %6558 = vmatprep.subr.bf16.mxu1 %v8248_v42 }
 0x59f   :  { %v3314_v36 = vcombine.low %v9656_v23, %v9659_v26 }
 0x5a0   :  { %6395 = vmatpush1.bf16.msra.mxu0 %v8243_v43  ;;  %6559 = vmatpush1.bf16.msra.mxu1 %v8246_v44 }
 0x5a1   :  { %6396 = vmatprep.subr.bf16.mxu0 %v8251_v45  ;;  %6560 = vmatprep.subr.bf16.mxu1 %v8254_v51 }
 0x5a4   :  { %6397 = vmatpush1.bf16.msra.mxu0 %v8249_v54  ;;  %6561 = vmatpush1.bf16.msra.mxu1 %v8252_v55 }
 0x5a5   :  { %6398 = vmatprep.subr.bf16.mxu0 %v8257_v56  ;;  %6562 = vmatprep.subr.bf16.mxu1 %v8260_v1 }
 0x5a8   :  { %6399 = vmatpush1.bf16.msra.mxu0 %v8255_v2  ;;  %6563 = vmatpush1.bf16.msra.mxu1 %v8258_v3 }
 0x5a9   :  { %6400 = vmatprep.subr.bf16.mxu0 %v8263_v10  ;;  %6564 = vmatprep.subr.bf16.mxu1 %v8266_v14 }
 0x5ac   :  { %6401 = vmatpush1.bf16.msra.mxu0 %v8261_v15  ;;  %6565 = vmatpush1.bf16.msra.mxu1 %v8264_v47 }
 0x5ad   :  { %6402 = vmatprep.subr.bf16.mxu0 %v8269_v60  ;;  %6566 = vmatprep.subr.bf16.mxu1 %v8272_v62 }
 0x5b0   :  { %6403 = vmatpush1.bf16.msra.mxu0 %v8267_v63  ;;  %6567 = vmatpush1.bf16.msra.mxu1 %v8270_v4 }
 0x5b1   :  { %6404 = vmatprep.subr.bf16.mxu0 %v8275_v5  ;;  %6568 = vmatprep.subr.bf16.mxu1 %v8278_v20 }
 0x5b4   :  { %6405 = vmatpush1.bf16.msra.mxu0 %v8273_v7  ;;  %6569 = vmatpush1.bf16.msra.mxu1 %v8276_v8 }
 0x5b5   :  { %6406 = vmatprep.subr.bf16.mxu0 %v8281_v12  ;;  %6570 = vmatprep.subr.bf16.mxu1 %v8284_v16 }
 0x5b8   :  { %6407 = vmatpush1.bf16.msra.mxu0 %v8279_v11  ;;  %6571 = vmatpush1.bf16.msra.mxu1 %v8282_v13 }
 0x5b9   :  { %6417 = vmatprep.subr.bf16.mxu0 %v8287_v17  ;;  %6581 = vmatprep.subr.bf16.mxu1 %v8290_v18 }
 0x5f8   :  { %v9663_v33 = vpop.f32.mrb[8].mxu0 }
 0x5f9   :  { %v3145_v35 = vrot.slane %v9663_v33, 4  ;;  %v3181_v9 = vmul.f32 %v9663_v33, %v9663_v33  ;;  %v9668_v53 = vpop.f32.mrb[16].mxu1  ;;  %v9670_v0 = vpop.f32.mrb[9].mxu0 }
 0x5fa   :  { %v3157_v61 = vrot.slane %v9668_v53, 4  ;;  %v3183_v48 = vmul.f32 %v9668_v53, %v9668_v53  ;;  %v3151_v19 = vrot.slane %v9670_v0, 4  ;;  %v3182_v21 = vmul.f32 %v9670_v0, %v9670_v0  ;;  %v9678_v27 = vpop.f32.mrb[17].mxu1  ;;  %v3036_v28 = vpop.f32.mrb[10].mxu0 }
 0x5fb   :  { %v3146_v30 = vadd.f32 %v3145_v35, %v9663_v33  ;;  %v3209_v34 = vrot.slane %v3181_v9, 4  ;;  %v3163_v37 = vrot.slane %v9678_v27, 4  ;;  %v3184_v38 = vmul.f32 %v9678_v27, %v9678_v27  ;;  %v3118_v39 = vpop.f32.mrb[18].mxu1  ;;  %v3037_v40 = vpop.f32.mrb[11].mxu0 }
 0x5fc   :  { %v3158_v41 = vadd.f32 %v3157_v61, %v9668_v53  ;;  %v3221_v42 = vrot.slane %v3183_v48, 4  ;;  %v3152_v43 = vadd.f32 %v3151_v19, %v9670_v0  ;;  %v3215_v44 = vrot.slane %v3182_v21, 4  ;;  %v3119_v45 = vpop.f32.mrb[19].mxu1 }
 0x5fd   :  { %v3147_v51 = vrot.slane %v3146_v30, 2  ;;  %v3210_v54 = vadd.f32 %v3209_v34, %v3181_v9  ;;  %v3164_v55 = vadd.f32 %v3163_v37, %v9678_v27  ;;  %v3227_v56 = vrot.slane %v3184_v38, 4 }
 0x5fe   :  { %v3159_v1 = vrot.slane %v3158_v41, 2  ;;  %v3222_v2 = vadd.f32 %v3221_v42, %v3183_v48  ;;  %v3153_v3 = vrot.slane %v3152_v43, 2  ;;  %v3216_v10 = vadd.f32 %v3215_v44, %v3182_v21 }
 0x5ff   :  { %v3148_v14 = vadd.f32 %v3147_v51, %v3146_v30  ;;  %v3211_v15 = vrot.slane %v3210_v54, 2  ;;  %v3165_v47 = vrot.slane %v3164_v55, 2  ;;  %v3228_v60 = vadd.f32 %v3227_v56, %v3184_v38 }
 0x600   :  { %v3160_v62 = vadd.f32 %v3159_v1, %v3158_v41  ;;  %v3223_v63 = vrot.slane %v3222_v2, 2  ;;  %v3154_v4 = vadd.f32 %v3153_v3, %v3152_v43  ;;  %v3217_v5 = vrot.slane %v3216_v10, 2 }
 0x601   :  { %v3149_v20 = vrot.slane %v3148_v14, 1  ;;  %v3212_v7 = vadd.f32 %v3211_v15, %v3210_v54  ;;  %v3166_v8 = vadd.f32 %v3165_v47, %v3164_v55  ;;  %v3229_v11 = vrot.slane %v3228_v60, 2 }
 0x602   :  { %v3161_v12 = vrot.slane %v3160_v62, 1  ;;  %v3224_v13 = vadd.f32 %v3223_v63, %v3222_v2  ;;  %v3155_v16 = vrot.slane %v3154_v4, 1  ;;  %v3218_v17 = vadd.f32 %v3217_v5, %v3216_v10 }
 0x603   :  { %v3150_v18 = vadd.f32 %v3149_v20, %v3148_v14  ;;  %v3213_v35 = vrot.slane %v3212_v7, 1  ;;  %v3167_v9 = vrot.slane %v3166_v8, 1  ;;  %v3230_v61 = vadd.f32 %v3229_v11, %v3228_v60 }
 0x604   :  { %v3162_v48 = vadd.f32 %v3161_v12, %v3160_v62  ;;  %v3225_v19 = vrot.slane %v3224_v13, 1  ;;  %v3156_v21 = vadd.f32 %v3155_v16, %v3154_v4  ;;  %v3219_v28 = vrot.slane %v3218_v17, 1 }
 0x605   :  { %v3173_v30 = vmul.f32 0.125, %v3150_v18  ;;  %v3214_v34 = vadd.f32 %v3213_v35, %v3212_v7  ;;  %v3168_v37 = vadd.f32 %v3167_v9, %v3166_v8  ;;  %v3231_v38 = vrot.slane %v3230_v61, 1  ;;  %v3257_v9 = vld [vmem:[#allocation19] sm:$0xff] }
 0x606   :  { %v3175_v39 = vmul.f32 0.125, %v3162_v48  ;;  %v3226_v40 = vadd.f32 %v3225_v19, %v3224_v13  ;;  %v3174_v41 = vmul.f32 0.125, %v3156_v21  ;;  %v3220_v42 = vadd.f32 %v3219_v28, %v3218_v17 }
 0x607   :  { %v3237_v43 = vmul.f32 0.125, %v3214_v34  ;;  %v3245_v44 = vmul.f32 %v3173_v30, %v3173_v30  ;;  %v3176_v45 = vmul.f32 0.125, %v3168_v37  ;;  %v3232_v51 = vadd.f32 %v3231_v38, %v3230_v61 }
 0x608   :  { %v3239_v54 = vmul.f32 0.125, %v3226_v40  ;;  %v3247_v55 = vmul.f32 %v3175_v39, %v3175_v39  ;;  %v3238_v56 = vmul.f32 0.125, %v3220_v42  ;;  %v3246_v1 = vmul.f32 %v3174_v41, %v3174_v41 }
 0x609   :  { %v3253_v2 = vsub.f32 %v3237_v43, %v3245_v44  ;;  %v3240_v3 = vmul.f32 0.125, %v3232_v51  ;;  %v3248_v10 = vmul.f32 %v3176_v45, %v3176_v45  ;;  %v3322_v18 = vrot.slane %v3314_v36, %v9494_v52 }
 0x60a   :  { %v3255_v14 = vsub.f32 %v3239_v54, %v3247_v55  ;;  %v3254_v15 = vsub.f32 %v3238_v56, %v3246_v1  ;;  %v9695_v48 = vsub.s32 4, %v9491_v50  ;;  %v9698_v19 = vsub.s32 5, %v9491_v50 }
 0x60b   :  { %v3262_v47 = vadd.f32 0.8, %v3253_v2  ;;  %v3256_v60 = vsub.f32 %v3240_v3, %v3248_v10  ;;  %v9701_v21 = vsub.s32 6, %v9491_v50  ;;  %v3365_v28 = vsub.s32 7, %v9491_v50 }
 0x60c   :  { %v3264_v62 = vadd.f32 0.8, %v3255_v14  ;;  %v3263_v63 = vadd.f32 0.8, %v3254_v15 }
 0x60d   :  { %8849 = vrsqrt.f32 %v3262_v47  ;;  %v3265_v4 = vadd.f32 0.8, %v3256_v60 }
 0x60e   :  { %8851 = vrsqrt.f32 %v3264_v62 }
 0x60f   :  { %8853 = vrsqrt.f32 %v3263_v63 }
 0x610   :  { %8855 = vrsqrt.f32 %v3265_v4  ;;  %v3333_v4 = vld [vmem:[#allocation20] sm:$0xff] }
 0x617   :  { %v8850_v5 = vpop.eup %8849 }
 0x618   :  { %v8852_v20 = vpop.eup %8851 }
 0x619   :  { %v8854_v7 = vpop.eup %8853 }
 0x61a   :  { %v8856_v8 = vpop.eup %8855  ;;  %v3284_v11 = vcombine.low %v8850_v5, %v8854_v7 }
 0x61b   :  { %v3285_v12 = vcombine.low %v8852_v20, %v8856_v8 }
 0x61c   :  { %v3306_v13 = vrot.slane %v3284_v11, %v9494_v52 }
 0x61d   :  { %v3313_v16 = vrot.slane %v3285_v12, %v9494_v52 }
 0x61f   :  { %v3315_v17 = vcombine.low %v3306_v13, %v3313_v16 }
 0x621   :  { %v3329_v35 = vrot.slane %v3315_v17, %v9494_v52 }
 0x623   :  { %v3330_v61 = vcombine.low %v3322_v18, %v3329_v35 }
 0x625   :  { %v3332_v34 = vmul.f32 %v3330_v61, %v3257_v9 }
 0x627   :  { %v3338_v37 = vrot.slane %v3332_v34, %v9499_v58  ;;  %v3342_v23 = vrot.slane %v3332_v34, %v9502_v59  ;;  %v3346_v26 = vrot.slane %v3332_v34, %v9560_v46  ;;  %v3350_v36 = vrot.slane %v3332_v34, %v9563_v49 }
 0x628   :  { %v3354_v38 = vrot.slane %v3332_v34, %v9695_v48  ;;  %v3358_v40 = vrot.slane %v3332_v34, %v9698_v19  ;;  %v3362_v42 = vrot.slane %v3332_v34, %v9701_v21  ;;  %v3366_v43 = vrot.slane %v3332_v34, %v3365_v28 }
 0x629   :  { %v3375_v44 = vmul.f32 %v3338_v37, %v9639_v22  ;;  %v3376_v50 = vmul.f32 %v3342_v23, %v9643_v29  ;;  %v3377_v51 = vmul.f32 %v3346_v26, %v9641_v57  ;;  %v3378_v54 = vmul.f32 %v3350_v36, %v9645_v32 }
 0x62a   :  { %v3379_v55 = vmul.f32 %v3354_v38, %v3173_v30  ;;  %v3380_v56 = vmul.f32 %v3358_v40, %v3174_v41  ;;  %v3381_v1 = vmul.f32 %v3362_v42, %v3175_v39  ;;  %v3382_v2 = vmul.f32 %v3366_v43, %v3176_v45 }
 0x62b   :  { %v3391_v3 = vcombine.low %v3375_v44, %v3376_v50  ;;  %v3392_v10 = vcombine.low %v3377_v51, %v3378_v54  ;;  %v3449_v14 = vmul.f32 %v3366_v43, %v9678_v27  ;;  %v3443_v15 = vmul.f32 %v3342_v23, %v9625_v24  ;;  %v8293_v44 = vld [vmem:[#allocation22 + $0x3bc] ss:$28 sps:$4 sm:$0xff]   ;;  %v8296_v50 = vld [vmem:[#allocation22 + $0x3c4] ss:$28 sps:$4 sm:$0xff]  }
 0x62c   :  { %v3393_v47 = vcombine.low %v3379_v55, %v3380_v56  ;;  %v3394_v60 = vcombine.low %v3381_v1, %v3382_v2  ;;  %v3442_v22 = vmul.f32 %v3338_v37, %v9615_v31  ;;  %v3445_v29 = vmul.f32 %v3350_v36, %v9627_v25  ;;  %v8291_v54 = vld [vmem:[#allocation22 + $0x3b8] ss:$28 sps:$4 sm:$0xff]   ;;  %v8294_v55 = vld [vmem:[#allocation22 + $0x3c0] ss:$28 sps:$4 sm:$0xff]   ;;  %v8297_v2 = vld [vmem:[#allocation22 + $0x3f0] ss:$28 sps:$4 sm:$0xff]  }
 0x62d   :  { %v3401_v57 = vrot.slane %v3391_v3, %v9494_v52  ;;  %v3408_v32 = vrot.slane %v3392_v10, %v9494_v52  ;;  %v3444_v30 = vmul.f32 %v3346_v26, %v9617_v6  ;;  %v3447_v39 = vmul.f32 %v3358_v40, %v9670_v0  ;;  %v8285_v40 = vld [vmem:[#allocation22 + $0x380] ss:$28 sps:$4 sm:$0xff]   ;;  %v8299_v56 = vld [vmem:[#allocation22 + $0x3f4] ss:$28 sps:$4 sm:$0xff]   ;;  %v8305_v10 = vld [vmem:[#allocation22 + $0x42c] ss:$28 sps:$4 sm:$0xff]  }
 0x62e   :  { %v3415_v41 = vrot.slane %v3393_v47, %v9494_v52  ;;  %v3422_v27 = vrot.slane %v3394_v60, %v9494_v52  ;;  %v3446_v24 = vmul.f32 %v3354_v38, %v9663_v33  ;;  %v3448_v45 = vmul.f32 %v3362_v42, %v9668_v53  ;;  %v8288_v42 = vld [vmem:[#allocation22 + $0x388] ss:$28 sps:$4 sm:$0xff]   ;;  %v8302_v1 = vld [vmem:[#allocation22 + $0x3fc] ss:$28 sps:$4 sm:$0xff]   ;;  %v8306_v47 = vld [vmem:[#allocation22 + $0x430] ss:$28 sps:$4 sm:$0xff]  }
 0x62f   :  { %v3423_v62 = vcombine.low %v3401_v57, %v3408_v32  ;;  %v8300_v3 = vld [vmem:[#allocation22 + $0x3f8] ss:$28 sps:$4 sm:$0xff]   ;;  %v8311_v60 = vld [vmem:[#allocation22 + $0x464] ss:$28 sps:$4 sm:$0xff]  }
 0x630   :  { %v3424_v31 = vcombine.low %v3415_v41, %v3422_v27  ;;  %v8312_v57 = vld [vmem:[#allocation22 + $0x468] ss:$28 sps:$4 sm:$0xff]   ;;  %v8317_v32 = vld [vmem:[#allocation22 + $0x49c] ss:$28 sps:$4 sm:$0xff]   ;;  %v8323_v27 = vld [vmem:[#allocation22 + $0x4d4] ss:$28 sps:$4 sm:$0xff]  }
 0x631   :  { %v3431_v25 = vrot.slane %v3423_v62, %v9494_v52  ;;  %v8318_v41 = vld [vmem:[#allocation22 + $0x4a0] ss:$28 sps:$4 sm:$0xff]   ;;  %v8324_v62 = vld [vmem:[#allocation22 + $0x4d8] ss:$28 sps:$4 sm:$0xff]  }
 0x632   :  { %v3438_v63 = vrot.slane %v3424_v31, %v9494_v52  ;;  %v8329_v31 = vld [vmem:[#allocation22 + $0x50c] ss:$28 sps:$4 sm:$0xff]  }
 0x634   :  { %v3439_v5 = vcombine.low %v3431_v25, %v3438_v63  ;;  %v8332_v25 = vld [vmem:[#allocation22 + $0x514] ss:$28 sps:$4 sm:$0xff]   ;;  %v8327_v63 = vld [vmem:[#allocation22 + $0x508] ss:$28 sps:$4 sm:$0xff]  }
 0x636   :  { %v3441_v20 = vsub.f32 %v3333_v4, %v3439_v5  ;;  %v8330_v4 = vld [vmem:[#allocation22 + $0x510] ss:$28 sps:$4 sm:$0xff]   ;;  %v8335_v5 = vld [vmem:[#allocation22 + $0x544] ss:$28 sps:$4 sm:$0xff]  }
 0x638   :  { %v3482_v6 = vrot.slane %v3441_v20, %v3365_v28  ;;  %v3458_v0 = vrot.slane %v3441_v20, %v9502_v59  ;;  %v3454_v7 = vrot.slane %v3441_v20, %v9499_v58  ;;  %v3466_v8 = vrot.slane %v3441_v20, %v9563_v49 }
 0x639   :  { %v3462_v33 = vrot.slane %v3441_v20, %v9560_v46  ;;  %v3474_v53 = vrot.slane %v3441_v20, %v9698_v19  ;;  %v3470_v11 = vrot.slane %v3441_v20, %v9695_v48  ;;  %v3478_v12 = vrot.slane %v3441_v20, %v9701_v21  ;;  %v8338_v20 = vld [vmem:[#allocation22 + $0x54c] ss:$28 sps:$4 sm:$0xff]  }
 0x63a   :  { %v9736_v13 = vadd.f32 %v3482_v6, %v3449_v14  ;;  %v3492_v52 = vadd.f32 %v3458_v0, %v3443_v15  ;;  %v3491_v16 = vadd.f32 %v3454_v7, %v3442_v22  ;;  %v3494_v17 = vadd.f32 %v3466_v8, %v3445_v29  ;;  %v8308_v14 = vld [vmem:[#allocation22 + $0x434] ss:$28 sps:$4 sm:$0xff]   ;;  %v8303_v15 = vld [vmem:[#allocation22 + $0x428] ss:$28 sps:$4 sm:$0xff]   ;;  %v8309_v29 = vld [vmem:[#allocation22 + $0x460] ss:$28 sps:$4 sm:$0xff]  }
 0x63b   :  { %v9738_v18 = vadd.f32 %v3462_v33, %v3444_v30  ;;  %v9740_v35 = vadd.f32 %v3474_v53, %v3447_v39  ;;  %v9742_v9 = vadd.f32 %v3470_v11, %v3446_v24  ;;  %v9744_v61 = vadd.f32 %v3478_v12, %v3448_v45  ;;  %v8314_v22 = vld [vmem:[#allocation22 + $0x46c] ss:$28 sps:$4 sm:$0xff]   ;;  %v8320_v30 = vld [vmem:[#allocation22 + $0x4a4] ss:$28 sps:$4 sm:$0xff]   ;;  %v8315_v39 = vld [vmem:[#allocation22 + $0x498] ss:$28 sps:$4 sm:$0xff]  }
 0x63c   :  { %v3500_v28 = vmul.f32 0.2, %v3492_v52  ;;  %v3499_v34 = vmul.f32 0.2, %v3491_v16  ;;  %v3502_v37 = vmul.f32 0.2, %v3494_v17 }
 0x63d   :  { %v8326_v24 = vld [vmem:[#allocation22 + $0x4dc] ss:$28 sps:$4 sm:$0xff]   ;;  %v8321_v45 = vld [vmem:[#allocation22 + $0x4d0] ss:$28 sps:$4 sm:$0xff]   ;;  %v8336_v0 = vld [vmem:[#allocation22 + $0x548] ss:$28 sps:$4 sm:$0xff]  }
 0x63e   :  { %v3508_v23 = vmax.f32 %v3492_v52, %v3500_v28  ;;  %v3507_v26 = vmax.f32 %v3491_v16, %v3499_v34  ;;  %v3510_v36 = vmax.f32 %v3494_v17, %v3502_v37  ;;  %v8333_v6 = vld [vmem:[#allocation22 + $0x540] ss:$28 sps:$4 sm:$0xff]   ;;  %v8339_v33 = vld [vmem:[#allocation22 + $0x578] ss:$28 sps:$4 sm:$0xff]   ;;  %v8345_v52 = vld [vmem:[#allocation22 + $0x5b0] ss:$28 sps:$4 sm:$0xff]  }
 0x63f   :  { %v8341_v7 = vld [vmem:[#allocation22 + $0x57c] ss:$28 sps:$4 sm:$0xff]   ;;  %v8344_v8 = vld [vmem:[#allocation22 + $0x584] ss:$28 sps:$4 sm:$0xff]   ;;  %v8347_v11 = vld [vmem:[#allocation22 + $0x5b4] ss:$28 sps:$4 sm:$0xff]  }
 0x640   :  { %v9746_v38 = vpack.c.bf16 %v3508_v23, %v3508_v23  ;;  %v9748_v43 = vpack.c.bf16 %v3507_v26, %v3507_v26  ;;  %v9754_v51 = vpack.c.bf16 %v3510_v36, %v3510_v36  ;;  %v8342_v53 = vld [vmem:[#allocation22 + $0x580] ss:$28 sps:$4 sm:$0xff]   ;;  %v8348_v16 = vld [vmem:[#allocation22 + $0x5b8] ss:$28 sps:$4 sm:$0xff]   ;;  %v8353_v17 = vld [vmem:[#allocation22 + $0x5ec] ss:$28 sps:$4 sm:$0xff]  }
 0x641   :  { %v8350_v12 = vld [vmem:[#allocation22 + $0x5bc] ss:$28 sps:$4 sm:$0xff]   ;;  %v8356_v28 = vld [vmem:[#allocation22 + $0x5f4] ss:$28 sps:$4 sm:$0xff]   ;;  %v8351_v34 = vld [vmem:[#allocation22 + $0x5e8] ss:$28 sps:$4 sm:$0xff]  }
 0x642   :  { %6408 = vmatprep.mubr.bf16.mxu0 %v9746_v38  ;;  %6572 = vmatprep.mubr.bf16.mxu1 %v9746_v38  ;;  %v8354_v37 = vld [vmem:[#allocation22 + $0x5f0] ss:$28 sps:$4 sm:$0xff]   ;;  %v8359_v23 = vld [vmem:[#allocation22 + $0x624] ss:$28 sps:$4 sm:$0xff]  }
 0x643   :  { %6409 = vmatmul.mubr.bf16.vlgmr.msra.gmra.mrb[12].mxu0 %v9748_v43  ;;  %6573 = vmatmul.mubr.bf16.vlgmr.msra.gmra.mrb[20].mxu1 %v9748_v43  ;;  %v8362_v26 = vld [vmem:[#allocation22 + $0x62c] ss:$28 sps:$4 sm:$0xff]   ;;  %v8357_v36 = vld [vmem:[#allocation22 + $0x620] ss:$28 sps:$4 sm:$0xff]  }
 0x644   :  { %6418 = vmatpush1.bf16.msra.mxu0 %v8285_v40  ;;  %6582 = vmatpush1.bf16.msra.mxu1 %v8288_v42  ;;  %v8360_v40 = vld [vmem:[#allocation22 + $0x628] ss:$28 sps:$4 sm:$0xff]   ;;  %v8365_v42 = vld [vmem:[#allocation22 + $0x65c] ss:$28 sps:$4 sm:$0xff]  }
 0x645   :  { %6449 = vmatprep.mubr.bf16.mxu0 %v9754_v51  ;;  %6613 = vmatprep.mubr.bf16.mxu1 %v9754_v51 }
 0x646   :  { %6419 = vmatprep.subr.bf16.mxu0 %v8293_v44  ;;  %6583 = vmatprep.subr.bf16.mxu1 %v8296_v50  ;;  %v8368_v44 = vld [vmem:[#allocation22 + $0x664] ss:$28 sps:$4 sm:$0xff]   ;;  %v8363_v50 = vld [vmem:[#allocation22 + $0x658] ss:$28 sps:$4 sm:$0xff]  }
 0x648   :  { %6420 = vmatpush1.bf16.msra.mxu0 %v8291_v54  ;;  %6584 = vmatpush1.bf16.msra.mxu1 %v8294_v55  ;;  %v8366_v54 = vld [vmem:[#allocation22 + $0x660] ss:$28 sps:$4 sm:$0xff]   ;;  %v8371_v55 = vld [vmem:[#allocation22 + $0x694] ss:$28 sps:$4 sm:$0xff]  }
 0x649   :  { %6421 = vmatprep.subr.bf16.mxu0 %v8299_v56  ;;  %6585 = vmatprep.subr.bf16.mxu1 %v8302_v1  ;;  %v8374_v56 = vld [vmem:[#allocation22 + $0x69c] ss:$28 sps:$4 sm:$0xff]   ;;  %v8369_v1 = vld [vmem:[#allocation22 + $0x690] ss:$28 sps:$4 sm:$0xff]  }
 0x64c   :  { %6422 = vmatpush1.bf16.msra.mxu0 %v8297_v2  ;;  %6586 = vmatpush1.bf16.msra.mxu1 %v8300_v3  ;;  %v8372_v2 = vld [vmem:[#allocation22 + $0x698] ss:$28 sps:$4 sm:$0xff]   ;;  %v8377_v3 = vld [vmem:[#allocation22 + $0x6cc] ss:$28 sps:$4 sm:$0xff]  }
 0x64d   :  { %6423 = vmatprep.subr.bf16.mxu0 %v8305_v10  ;;  %6587 = vmatprep.subr.bf16.mxu1 %v8308_v14  ;;  %v8380_v10 = vld [vmem:[#allocation22 + $0x6d4] ss:$28 sps:$4 sm:$0xff]   ;;  %v3501_v14 = vmul.f32 0.2, %v9738_v18 }
 0x650   :  { %6424 = vmatpush1.bf16.msra.mxu0 %v8303_v15  ;;  %6588 = vmatpush1.bf16.msra.mxu1 %v8306_v47  ;;  %v3504_v15 = vmul.f32 0.2, %v9740_v35  ;;  %v8375_v47 = vld [vmem:[#allocation22 + $0x6c8] ss:$28 sps:$4 sm:$0xff]  }
 0x651   :  { %6425 = vmatprep.subr.bf16.mxu0 %v8311_v60  ;;  %6589 = vmatprep.subr.bf16.mxu1 %v8314_v22  ;;  %v8378_v60 = vld [vmem:[#allocation22 + $0x6d0] ss:$28 sps:$4 sm:$0xff]   ;;  %v3509_v22 = vmax.f32 %v9738_v18, %v3501_v14  ;;  %v8387_v18 = vld [vmem:[#allocation22 + $0x738] ss:$28 sps:$4 sm:$0xff]  }
 0x652   :  { %v8444_v14 = vld [vmem:[#allocation22 + $0x938] ss:$28 sps:$4 sm:$0xff]  }
 0x654   :  { %6426 = vmatpush1.bf16.msra.mxu0 %v8309_v29  ;;  %6590 = vmatpush1.bf16.msra.mxu1 %v8312_v57  ;;  %v8383_v29 = vld [vmem:[#allocation22 + $0x704] ss:$28 sps:$4 sm:$0xff]   ;;  %v8386_v57 = vld [vmem:[#allocation22 + $0x70c] ss:$28 sps:$4 sm:$0xff]  }
 0x655   :  { %6427 = vmatprep.subr.bf16.mxu0 %v8317_v32  ;;  %6591 = vmatprep.subr.bf16.mxu1 %v8320_v30  ;;  %v3512_v32 = vmax.f32 %v9740_v35, %v3504_v15  ;;  %v8381_v30 = vld [vmem:[#allocation22 + $0x700] ss:$28 sps:$4 sm:$0xff]   ;;  %v8449_v15 = vld [vmem:[#allocation22 + $0x96c] ss:$28 sps:$4 sm:$0xff]  }
 0x656   :  { %v8390_v35 = vld [vmem:[#allocation22 + $0x740] ss:$28 sps:$4 sm:$0xff]  }
 0x658   :  { %6428 = vmatpush1.bf16.msra.mxu0 %v8315_v39  ;;  %6592 = vmatpush1.bf16.msra.mxu1 %v8318_v41  ;;  %v9762_v39 = vpack.c.bf16 %v3509_v22, %v3509_v22  ;;  %v8384_v41 = vld [vmem:[#allocation22 + $0x708] ss:$28 sps:$4 sm:$0xff]   ;;  %v8450_v22 = vld [vmem:[#allocation22 + $0x970] ss:$28 sps:$4 sm:$0xff]  }
 0x659   :  { %6429 = vmatprep.subr.bf16.mxu0 %v8323_v27  ;;  %6593 = vmatprep.subr.bf16.mxu1 %v8326_v24  ;;  %v9764_v27 = vpack.c.bf16 %v3512_v32, %v3512_v32  ;;  %v8389_v24 = vld [vmem:[#allocation22 + $0x73c] ss:$28 sps:$4 sm:$0xff]  }
 0x65a   :  { %v8453_v32 = vld [vmem:[#allocation22 + $0x9a0] ss:$28 sps:$4 sm:$0xff]  }
 0x65c   :  { %6430 = vmatpush1.bf16.msra.mxu0 %v8321_v45  ;;  %6594 = vmatpush1.bf16.msra.mxu1 %v8324_v62  ;;  %v8392_v45 = vld [vmem:[#allocation22 + $0x744] ss:$28 sps:$4 sm:$0xff]   ;;  %v8395_v62 = vld [vmem:[#allocation22 + $0x774] ss:$28 sps:$4 sm:$0xff]  }
 0x65d   :  { %6431 = vmatprep.subr.bf16.mxu0 %v8329_v31  ;;  %6595 = vmatprep.subr.bf16.mxu1 %v8332_v25  ;;  %v8398_v31 = vld [vmem:[#allocation22 + $0x77c] ss:$28 sps:$4 sm:$0xff]   ;;  %v8393_v25 = vld [vmem:[#allocation22 + $0x770] ss:$28 sps:$4 sm:$0xff]  }
 0x660   :  { %6432 = vmatpush1.bf16.msra.mxu0 %v8327_v63  ;;  %6596 = vmatpush1.bf16.msra.mxu1 %v8330_v4  ;;  %v8396_v63 = vld [vmem:[#allocation22 + $0x778] ss:$28 sps:$4 sm:$0xff]   ;;  %v8401_v4 = vld [vmem:[#allocation22 + $0x7ac] ss:$28 sps:$4 sm:$0xff]  }
 0x661   :  { %6433 = vmatprep.subr.bf16.mxu0 %v8335_v5  ;;  %6597 = vmatprep.subr.bf16.mxu1 %v8338_v20  ;;  %v8404_v5 = vld [vmem:[#allocation22 + $0x7b4] ss:$28 sps:$4 sm:$0xff]   ;;  %v8399_v20 = vld [vmem:[#allocation22 + $0x7a8] ss:$28 sps:$4 sm:$0xff]  }
 0x664   :  { %6434 = vmatpush1.bf16.msra.mxu0 %v8333_v6  ;;  %6598 = vmatpush1.bf16.msra.mxu1 %v8336_v0  ;;  %v8402_v6 = vld [vmem:[#allocation22 + $0x7b0] ss:$28 sps:$4 sm:$0xff]   ;;  %v8407_v0 = vld [vmem:[#allocation22 + $0x7e4] ss:$28 sps:$4 sm:$0xff]  }
 0x665   :  { %6435 = vmatprep.subr.bf16.mxu0 %v8341_v7  ;;  %6599 = vmatprep.subr.bf16.mxu1 %v8344_v8  ;;  %v8410_v7 = vld [vmem:[#allocation22 + $0x7ec] ss:$28 sps:$4 sm:$0xff]   ;;  %v8405_v8 = vld [vmem:[#allocation22 + $0x7e0] ss:$28 sps:$4 sm:$0xff]  }
 0x668   :  { %6436 = vmatpush1.bf16.msra.mxu0 %v8339_v33  ;;  %6600 = vmatpush1.bf16.msra.mxu1 %v8342_v53  ;;  %v8408_v33 = vld [vmem:[#allocation22 + $0x7e8] ss:$28 sps:$4 sm:$0xff]   ;;  %v8413_v53 = vld [vmem:[#allocation22 + $0x81c] ss:$28 sps:$4 sm:$0xff]  }
 0x669   :  { %6437 = vmatprep.subr.bf16.mxu0 %v8347_v11  ;;  %6601 = vmatprep.subr.bf16.mxu1 %v8350_v12  ;;  %v8416_v11 = vld [vmem:[#allocation22 + $0x824] ss:$28 sps:$4 sm:$0xff]   ;;  %v8411_v12 = vld [vmem:[#allocation22 + $0x818] ss:$28 sps:$4 sm:$0xff]  }
 0x66c   :  { %6438 = vmatpush1.bf16.msra.mxu0 %v8345_v52  ;;  %6602 = vmatpush1.bf16.msra.mxu1 %v8348_v16  ;;  %v8414_v52 = vld [vmem:[#allocation22 + $0x820] ss:$28 sps:$4 sm:$0xff]   ;;  %v8419_v16 = vld [vmem:[#allocation22 + $0x854] ss:$28 sps:$4 sm:$0xff]  }
 0x66d   :  { %6439 = vmatprep.subr.bf16.mxu0 %v8353_v17  ;;  %6603 = vmatprep.subr.bf16.mxu1 %v8356_v28  ;;  %v8422_v17 = vld [vmem:[#allocation22 + $0x85c] ss:$28 sps:$4 sm:$0xff]   ;;  %v8417_v28 = vld [vmem:[#allocation22 + $0x850] ss:$28 sps:$4 sm:$0xff]  }
 0x670   :  { %6440 = vmatpush1.bf16.msra.mxu0 %v8351_v34  ;;  %6604 = vmatpush1.bf16.msra.mxu1 %v8354_v37  ;;  %v8420_v34 = vld [vmem:[#allocation22 + $0x858] ss:$28 sps:$4 sm:$0xff]   ;;  %v8425_v37 = vld [vmem:[#allocation22 + $0x88c] ss:$28 sps:$4 sm:$0xff]  }
 0x671   :  { %6441 = vmatprep.subr.bf16.mxu0 %v8359_v23  ;;  %6605 = vmatprep.subr.bf16.mxu1 %v8362_v26  ;;  %v8428_v23 = vld [vmem:[#allocation22 + $0x894] ss:$28 sps:$4 sm:$0xff]   ;;  %v8423_v26 = vld [vmem:[#allocation22 + $0x888] ss:$28 sps:$4 sm:$0xff]  }
 0x674   :  { %6442 = vmatpush1.bf16.msra.mxu0 %v8357_v36  ;;  %6606 = vmatpush1.bf16.msra.mxu1 %v8360_v40  ;;  %v8426_v36 = vld [vmem:[#allocation22 + $0x890] ss:$28 sps:$4 sm:$0xff]   ;;  %v8431_v40 = vld [vmem:[#allocation22 + $0x8c4] ss:$28 sps:$4 sm:$0xff]  }
 0x675   :  { %6443 = vmatprep.subr.bf16.mxu0 %v8365_v42  ;;  %6607 = vmatprep.subr.bf16.mxu1 %v8368_v44  ;;  %v8434_v42 = vld [vmem:[#allocation22 + $0x8cc] ss:$28 sps:$4 sm:$0xff]   ;;  %v8429_v44 = vld [vmem:[#allocation22 + $0x8c0] ss:$28 sps:$4 sm:$0xff]  }
 0x678   :  { %6444 = vmatpush1.bf16.msra.mxu0 %v8363_v50  ;;  %6608 = vmatpush1.bf16.msra.mxu1 %v8366_v54  ;;  %v8432_v50 = vld [vmem:[#allocation22 + $0x8c8] ss:$28 sps:$4 sm:$0xff]   ;;  %v8437_v54 = vld [vmem:[#allocation22 + $0x8fc] ss:$28 sps:$4 sm:$0xff]  }
 0x679   :  { %6445 = vmatprep.subr.bf16.mxu0 %v8371_v55  ;;  %6609 = vmatprep.subr.bf16.mxu1 %v8374_v56  ;;  %v8440_v55 = vld [vmem:[#allocation22 + $0x904] ss:$28 sps:$4 sm:$0xff]   ;;  %v8435_v56 = vld [vmem:[#allocation22 + $0x8f8] ss:$28 sps:$4 sm:$0xff]  }
 0x67c   :  { %6446 = vmatpush1.bf16.msra.mxu0 %v8369_v1  ;;  %6610 = vmatpush1.bf16.msra.mxu1 %v8372_v2  ;;  %v8438_v1 = vld [vmem:[#allocation22 + $0x900] ss:$28 sps:$4 sm:$0xff]   ;;  %v8443_v2 = vld [vmem:[#allocation22 + $0x934] ss:$28 sps:$4 sm:$0xff]  }
 0x67d   :  { %6447 = vmatprep.subr.bf16.mxu0 %v8377_v3  ;;  %6611 = vmatprep.subr.bf16.mxu1 %v8380_v10  ;;  %v8446_v3 = vld [vmem:[#allocation22 + $0x93c] ss:$28 sps:$4 sm:$0xff]   ;;  %v8441_v10 = vld [vmem:[#allocation22 + $0x930] ss:$28 sps:$4 sm:$0xff]  }
 0x680   :  { %6448 = vmatpush1.bf16.msra.mxu0 %v8375_v47  ;;  %6612 = vmatpush1.bf16.msra.mxu1 %v8378_v60  ;;  %v8452_v47 = vld [vmem:[#allocation22 + $0x974] ss:$28 sps:$4 sm:$0xff]   ;;  %v8447_v60 = vld [vmem:[#allocation22 + $0x968] ss:$28 sps:$4 sm:$0xff]  }
 0x681   :  { %6458 = vmatprep.subr.bf16.mxu0 %v8383_v29  ;;  %6622 = vmatprep.subr.bf16.mxu1 %v8386_v57  ;;  %v8455_v29 = vld [vmem:[#allocation22 + $0x9a4] ss:$28 sps:$4 sm:$0xff]   ;;  %v8458_v57 = vld [vmem:[#allocation22 + $0x9ac] ss:$28 sps:$4 sm:$0xff]  }
 0x683   :  { %6450 = vmatmul.mubr.bf16.vlgmr.msra.gmra.mrb[12].mxu0 %v9762_v39  ;;  %6614 = vmatmul.mubr.bf16.vlgmr.msra.gmra.mrb[20].mxu1 %v9762_v39 }
 0x684   :  { %6459 = vmatpush1.bf16.msra.mxu0 %v8381_v30  ;;  %6490 = vmatprep.mubr.bf16.mxu0 %v9764_v27  ;;  %v8456_v30 = vld [vmem:[#allocation22 + $0x9a8] ss:$28 sps:$4 sm:$0xff]  }
 0x685   :  { %6623 = vmatpush1.bf16.msra.mxu1 %v8384_v41  ;;  %6654 = vmatprep.mubr.bf16.mxu1 %v9764_v27  ;;  %v8461_v41 = vld [vmem:[#allocation22 + $0x9dc] ss:$28 sps:$4 sm:$0xff]  }
 0x686   :  { %6460 = vmatprep.subr.bf16.mxu0 %v8389_v24  ;;  %6624 = vmatprep.subr.bf16.mxu1 %v8392_v45  ;;  %v8464_v24 = vld [vmem:[#allocation22 + $0x9e4] ss:$28 sps:$4 sm:$0xff]   ;;  %v8459_v45 = vld [vmem:[#allocation22 + $0x9d8] ss:$28 sps:$4 sm:$0xff]  }
 0x688   :  { %6461 = vmatpush1.bf16.msra.mxu0 %v8387_v18  ;;  %v8462_v18 = vld [vmem:[#allocation22 + $0x9e0] ss:$28 sps:$4 sm:$0xff]  }
 0x689   :  { %6625 = vmatpush1.bf16.msra.mxu1 %v8390_v35  ;;  %6462 = vmatprep.subr.bf16.mxu0 %v8395_v62  ;;  %v8467_v35 = vld [vmem:[#allocation22 + $0xa14] ss:$28 sps:$4 sm:$0xff]   ;;  %v8470_v62 = vld [vmem:[#allocation22 + $0xa1c] ss:$28 sps:$4 sm:$0xff]  }
 0x68a   :  { %6626 = vmatprep.subr.bf16.mxu1 %v8398_v31  ;;  %v8465_v31 = vld [vmem:[#allocation22 + $0xa10] ss:$28 sps:$4 sm:$0xff]  }
 0x68c   :  { %6463 = vmatpush1.bf16.msra.mxu0 %v8393_v25  ;;  %v8468_v25 = vld [vmem:[#allocation22 + $0xa18] ss:$28 sps:$4 sm:$0xff]  }
 0x68d   :  { %6627 = vmatpush1.bf16.msra.mxu1 %v8396_v63  ;;  %6464 = vmatprep.subr.bf16.mxu0 %v8401_v4  ;;  %v8473_v63 = vld [vmem:[#allocation22 + $0xa4c] ss:$28 sps:$4 sm:$0xff]   ;;  %v3503_v4 = vmul.f32 0.2, %v9742_v9 }
 0x68e   :  { %6628 = vmatprep.subr.bf16.mxu1 %v8404_v5  ;;  %v8476_v5 = vld [vmem:[#allocation22 + $0xa54] ss:$28 sps:$4 sm:$0xff]  }
 0x690   :  { %6465 = vmatpush1.bf16.msra.mxu0 %v8399_v20  ;;  %v3506_v20 = vmul.f32 0.2, %v9736_v13 }
 0x691   :  { %6629 = vmatpush1.bf16.msra.mxu1 %v8402_v6  ;;  %6466 = vmatprep.subr.bf16.mxu0 %v8407_v0  ;;  %v8471_v6 = vld [vmem:[#allocation22 + $0xa48] ss:$28 sps:$4 sm:$0xff]   ;;  %v8474_v0 = vld [vmem:[#allocation22 + $0xa50] ss:$28 sps:$4 sm:$0xff]  }
 0x692   :  { %6630 = vmatprep.subr.bf16.mxu1 %v8410_v7  ;;  %v3511_v7 = vmax.f32 %v9742_v9, %v3503_v4  ;;  %v8483_v9 = vld [vmem:[#allocation22 + $0xab8] ss:$28 sps:$4 sm:$0xff]   ;;  %v8537_v4 = vld [vmem:[#allocation22 + $0xcb0] ss:$28 sps:$4 sm:$0xff]  }
 0x694   :  { %6467 = vmatpush1.bf16.msra.mxu0 %v8405_v8  ;;  %v8479_v8 = vld [vmem:[#allocation22 + $0xa84] ss:$28 sps:$4 sm:$0xff]  }
 0x695   :  { %6631 = vmatpush1.bf16.msra.mxu1 %v8408_v33  ;;  %6468 = vmatprep.subr.bf16.mxu0 %v8413_v53  ;;  %v8482_v33 = vld [vmem:[#allocation22 + $0xa8c] ss:$28 sps:$4 sm:$0xff]   ;;  %v3514_v53 = vmax.f32 %v9736_v13, %v3506_v20  ;;  %v8486_v13 = vld [vmem:[#allocation22 + $0xac0] ss:$28 sps:$4 sm:$0xff]  }
 0x696   :  { %6632 = vmatprep.subr.bf16.mxu1 %v8416_v11  ;;  %v8477_v11 = vld [vmem:[#allocation22 + $0xa80] ss:$28 sps:$4 sm:$0xff]   ;;  %v8545_v20 = vld [vmem:[#allocation22 + $0xcec] ss:$28 sps:$4 sm:$0xff]  }
 0x698   :  { %6469 = vmatpush1.bf16.msra.mxu0 %v8411_v12  ;;  %v9774_v12 = vpack.c.bf16 %v3511_v7, %v3511_v7  ;;  %v8546_v7 = vld [vmem:[#allocation22 + $0xcf0] ss:$28 sps:$4 sm:$0xff]  }
 0x699   :  { %6633 = vmatpush1.bf16.msra.mxu1 %v8414_v52  ;;  %6470 = vmatprep.subr.bf16.mxu0 %v8419_v16  ;;  %v8480_v52 = vld [vmem:[#allocation22 + $0xa88] ss:$28 sps:$4 sm:$0xff]   ;;  %v8485_v16 = vld [vmem:[#allocation22 + $0xabc] ss:$28 sps:$4 sm:$0xff]  }
 0x69a   :  { %6634 = vmatprep.subr.bf16.mxu1 %v8422_v17  ;;  %v9777_v17 = vpack.c.bf16 %v3514_v53, %v3514_v53  ;;  %v8549_v53 = vld [vmem:[#allocation22 + $0xd20] ss:$28 sps:$4 sm:$0xff]  }
 0x69c   :  { %6471 = vmatpush1.bf16.msra.mxu0 %v8417_v28  ;;  %v8488_v28 = vld [vmem:[#allocation22 + $0xac4] ss:$28 sps:$4 sm:$0xff]  }
 0x69d   :  { %6635 = vmatpush1.bf16.msra.mxu1 %v8420_v34  ;;  %6472 = vmatprep.subr.bf16.mxu0 %v8425_v37  ;;  %v8491_v34 = vld [vmem:[#allocation22 + $0xaf4] ss:$28 sps:$4 sm:$0xff]   ;;  %v8494_v37 = vld [vmem:[#allocation22 + $0xafc] ss:$28 sps:$4 sm:$0xff]  }
 0x69e   :  { %6636 = vmatprep.subr.bf16.mxu1 %v8428_v23  ;;  %v8489_v23 = vld [vmem:[#allocation22 + $0xaf0] ss:$28 sps:$4 sm:$0xff]  }
 0x6a0   :  { %6473 = vmatpush1.bf16.msra.mxu0 %v8423_v26  ;;  %v8492_v26 = vld [vmem:[#allocation22 + $0xaf8] ss:$28 sps:$4 sm:$0xff]  }
 0x6a1   :  { %6637 = vmatpush1.bf16.msra.mxu1 %v8426_v36  ;;  %6474 = vmatprep.subr.bf16.mxu0 %v8431_v40  ;;  %v8497_v36 = vld [vmem:[#allocation22 + $0xb2c] ss:$28 sps:$4 sm:$0xff]   ;;  %v8500_v40 = vld [vmem:[#allocation22 + $0xb34] ss:$28 sps:$4 sm:$0xff]  }
 0x6a2   :  { %6638 = vmatprep.subr.bf16.mxu1 %v8434_v42  ;;  %v8495_v42 = vld [vmem:[#allocation22 + $0xb28] ss:$28 sps:$4 sm:$0xff]  }
 0x6a4   :  { %6475 = vmatpush1.bf16.msra.mxu0 %v8429_v44  ;;  %v8498_v44 = vld [vmem:[#allocation22 + $0xb30] ss:$28 sps:$4 sm:$0xff]  }
 0x6a5   :  { %6639 = vmatpush1.bf16.msra.mxu1 %v8432_v50  ;;  %6476 = vmatprep.subr.bf16.mxu0 %v8437_v54  ;;  %v8503_v50 = vld [vmem:[#allocation22 + $0xb64] ss:$28 sps:$4 sm:$0xff]   ;;  %v8506_v54 = vld [vmem:[#allocation22 + $0xb6c] ss:$28 sps:$4 sm:$0xff]  }
 0x6a6   :  { %6640 = vmatprep.subr.bf16.mxu1 %v8440_v55  ;;  %v8501_v55 = vld [vmem:[#allocation22 + $0xb60] ss:$28 sps:$4 sm:$0xff]  }
 0x6a8   :  { %6477 = vmatpush1.bf16.msra.mxu0 %v8435_v56  ;;  %v8504_v56 = vld [vmem:[#allocation22 + $0xb68] ss:$28 sps:$4 sm:$0xff]  }
 0x6a9   :  { %6641 = vmatpush1.bf16.msra.mxu1 %v8438_v1  ;;  %6478 = vmatprep.subr.bf16.mxu0 %v8443_v2  ;;  %v8509_v1 = vld [vmem:[#allocation22 + $0xb9c] ss:$28 sps:$4 sm:$0xff]   ;;  %v8512_v2 = vld [vmem:[#allocation22 + $0xba4] ss:$28 sps:$4 sm:$0xff]  }
 0x6aa   :  { %6642 = vmatprep.subr.bf16.mxu1 %v8446_v3  ;;  %v8507_v3 = vld [vmem:[#allocation22 + $0xb98] ss:$28 sps:$4 sm:$0xff]  }
 0x6ac   :  { %6479 = vmatpush1.bf16.msra.mxu0 %v8441_v10  ;;  %v8510_v10 = vld [vmem:[#allocation22 + $0xba0] ss:$28 sps:$4 sm:$0xff]  }
 0x6ad   :  { %6643 = vmatpush1.bf16.msra.mxu1 %v8444_v14  ;;  %6480 = vmatprep.subr.bf16.mxu0 %v8449_v15  ;;  %v8515_v14 = vld [vmem:[#allocation22 + $0xbd4] ss:$28 sps:$4 sm:$0xff]   ;;  %v8518_v15 = vld [vmem:[#allocation22 + $0xbdc] ss:$28 sps:$4 sm:$0xff]  }
 0x6ae   :  { %6644 = vmatprep.subr.bf16.mxu1 %v8452_v47  ;;  %v8513_v47 = vld [vmem:[#allocation22 + $0xbd0] ss:$28 sps:$4 sm:$0xff]  }
 0x6b0   :  { %6481 = vmatpush1.bf16.msra.mxu0 %v8447_v60  ;;  %v8516_v60 = vld [vmem:[#allocation22 + $0xbd8] ss:$28 sps:$4 sm:$0xff]  }
 0x6b1   :  { %6645 = vmatpush1.bf16.msra.mxu1 %v8450_v22  ;;  %6482 = vmatprep.subr.bf16.mxu0 %v8455_v29  ;;  %v8521_v22 = vld [vmem:[#allocation22 + $0xc0c] ss:$28 sps:$4 sm:$0xff]   ;;  %v8524_v29 = vld [vmem:[#allocation22 + $0xc14] ss:$28 sps:$4 sm:$0xff]  }
 0x6b2   :  { %6646 = vmatprep.subr.bf16.mxu1 %v8458_v57  ;;  %v8519_v57 = vld [vmem:[#allocation22 + $0xc08] ss:$28 sps:$4 sm:$0xff]  }
 0x6b4   :  { %6483 = vmatpush1.bf16.msra.mxu0 %v8453_v32  ;;  %v8522_v32 = vld [vmem:[#allocation22 + $0xc10] ss:$28 sps:$4 sm:$0xff]  }
 0x6b5   :  { %6647 = vmatpush1.bf16.msra.mxu1 %v8456_v30  ;;  %6484 = vmatprep.subr.bf16.mxu0 %v8461_v41  ;;  %v8527_v30 = vld [vmem:[#allocation22 + $0xc44] ss:$28 sps:$4 sm:$0xff]   ;;  %v8530_v41 = vld [vmem:[#allocation22 + $0xc4c] ss:$28 sps:$4 sm:$0xff]  }
 0x6b6   :  { %6648 = vmatprep.subr.bf16.mxu1 %v8464_v24  ;;  %v8525_v24 = vld [vmem:[#allocation22 + $0xc40] ss:$28 sps:$4 sm:$0xff]  }
 0x6b8   :  { %6485 = vmatpush1.bf16.msra.mxu0 %v8459_v45  ;;  %v8528_v45 = vld [vmem:[#allocation22 + $0xc48] ss:$28 sps:$4 sm:$0xff]  }
 0x6b9   :  { %6649 = vmatpush1.bf16.msra.mxu1 %v8462_v18  ;;  %6486 = vmatprep.subr.bf16.mxu0 %v8467_v35  ;;  %v8533_v18 = vld [vmem:[#allocation22 + $0xc7c] ss:$28 sps:$4 sm:$0xff]   ;;  %v8536_v35 = vld [vmem:[#allocation22 + $0xc84] ss:$28 sps:$4 sm:$0xff]  }
 0x6ba   :  { %6650 = vmatprep.subr.bf16.mxu1 %v8470_v62  ;;  %v8531_v62 = vld [vmem:[#allocation22 + $0xc78] ss:$28 sps:$4 sm:$0xff]  }
 0x6bc   :  { %6487 = vmatpush1.bf16.msra.mxu0 %v8465_v31  ;;  %v8534_v31 = vld [vmem:[#allocation22 + $0xc80] ss:$28 sps:$4 sm:$0xff]  }
 0x6bd   :  { %6651 = vmatpush1.bf16.msra.mxu1 %v8468_v25  ;;  %6488 = vmatprep.subr.bf16.mxu0 %v8473_v63  ;;  %v8539_v25 = vld [vmem:[#allocation22 + $0xcb4] ss:$28 sps:$4 sm:$0xff]   ;;  %v8542_v63 = vld [vmem:[#allocation22 + $0xcbc] ss:$28 sps:$4 sm:$0xff]  }
 0x6be   :  { %6652 = vmatprep.subr.bf16.mxu1 %v8476_v5  ;;  %v8540_v5 = vld [vmem:[#allocation22 + $0xcb8] ss:$28 sps:$4 sm:$0xff]  }
 0x6c0   :  { %6489 = vmatpush1.bf16.msra.mxu0 %v8471_v6  ;;  %v8548_v6 = vld [vmem:[#allocation22 + $0xcf4] ss:$28 sps:$4 sm:$0xff]  }
 0x6c1   :  { %6653 = vmatpush1.bf16.msra.mxu1 %v8474_v0  ;;  %6499 = vmatprep.subr.bf16.mxu0 %v8479_v8  ;;  %v8543_v0 = vld [vmem:[#allocation22 + $0xce8] ss:$28 sps:$4 sm:$0xff]  }
 0x6c2   :  { %6663 = vmatprep.subr.bf16.mxu1 %v8482_v33  ;;  %v8551_v8 = vld [vmem:[#allocation22 + $0xd24] ss:$28 sps:$4 sm:$0xff]   ;;  %v8554_v33 = vld [vmem:[#allocation22 + $0xd2c] ss:$28 sps:$4 sm:$0xff]  }
 0x6c3   :  { %6491 = vmatmul.mubr.bf16.vlgmr.msra.gmra.mrb[12].mxu0 %v9774_v12 }
 0x6c4   :  { %6655 = vmatmul.mubr.bf16.vlgmr.msra.gmra.mrb[20].mxu1 %v9774_v12  ;;  %6500 = vmatpush1.bf16.msra.mxu0 %v8477_v11  ;;  %v8552_v11 = vld [vmem:[#allocation22 + $0xd28] ss:$28 sps:$4 sm:$0xff]  }
 0x6c5   :  { %6531 = vmatprep.mubr.bf16.mxu0 %v9777_v17  ;;  %6664 = vmatpush1.bf16.msra.mxu1 %v8480_v52  ;;  %v8557_v52 = vld [vmem:[#allocation22 + $0xd5c] ss:$28 sps:$4 sm:$0xff]  }
 0x6c6   :  { %6695 = vmatprep.mubr.bf16.mxu1 %v9777_v17  ;;  %6501 = vmatprep.subr.bf16.mxu0 %v8485_v16  ;;  %v8560_v16 = vld [vmem:[#allocation22 + $0xd64] ss:$28 sps:$4 sm:$0xff]  }
 0x6c7   :  { %6665 = vmatprep.subr.bf16.mxu1 %v8488_v28  ;;  %v8555_v28 = vld [vmem:[#allocation22 + $0xd58] ss:$28 sps:$4 sm:$0xff]  }
 0x6c8   :  { %6502 = vmatpush1.bf16.msra.mxu0 %v8483_v9  ;;  %v8558_v9 = vld [vmem:[#allocation22 + $0xd60] ss:$28 sps:$4 sm:$0xff]  }
 0x6c9   :  { %6666 = vmatpush1.bf16.msra.mxu1 %v8486_v13  ;;  %6503 = vmatprep.subr.bf16.mxu0 %v8491_v34  ;;  %v8563_v13 = vld [vmem:[#allocation22 + $0xd94] ss:$28 sps:$4 sm:$0xff]   ;;  %v8566_v34 = vld [vmem:[#allocation22 + $0xd9c] ss:$28 sps:$4 sm:$0xff]  }
 0x6ca   :  { %6667 = vmatprep.subr.bf16.mxu1 %v8494_v37  ;;  %v8561_v37 = vld [vmem:[#allocation22 + $0xd90] ss:$28 sps:$4 sm:$0xff]  }
 0x6cc   :  { %6504 = vmatpush1.bf16.msra.mxu0 %v8489_v23  ;;  %v8564_v23 = vld [vmem:[#allocation22 + $0xd98] ss:$28 sps:$4 sm:$0xff]  }
 0x6cd   :  { %6668 = vmatpush1.bf16.msra.mxu1 %v8492_v26  ;;  %6505 = vmatprep.subr.bf16.mxu0 %v8497_v36  ;;  %v8569_v26 = vld [vmem:[#allocation22 + $0xdcc] ss:$28 sps:$4 sm:$0xff]   ;;  %v3505_v36 = vmul.f32 0.2, %v9744_v61 }
 0x6ce   :  { %6669 = vmatprep.subr.bf16.mxu1 %v8500_v40  ;;  %v8572_v40 = vld [vmem:[#allocation22 + $0xdd4] ss:$28 sps:$4 sm:$0xff]  }
 0x6d0   :  { %6506 = vmatpush1.bf16.msra.mxu0 %v8495_v42  ;;  %v8567_v42 = vld [vmem:[#allocation22 + $0xdc8] ss:$28 sps:$4 sm:$0xff]  }
 0x6d1   :  { %6670 = vmatpush1.bf16.msra.mxu1 %v8498_v44  ;;  %6507 = vmatprep.subr.bf16.mxu0 %v8503_v50  ;;  %v8570_v44 = vld [vmem:[#allocation22 + $0xdd0] ss:$28 sps:$4 sm:$0xff]   ;;  %v3513_v50 = vmax.f32 %v9744_v61, %v3505_v36  ;;  %v8631_v36 = vld [vmem:[#allocation22 + $0x600] ss:$28 sps:$4 sm:$0xff]  }
 0x6d2   :  { %6671 = vmatprep.subr.bf16.mxu1 %v8506_v54  ;;  %v8575_v54 = vld [vmem:[#allocation22 + $0x14] ss:$28 sps:$4 sm:$0xff]  }
 0x6d3   :  { %v8582_v61 = vld [vmem:[#allocation22 + $0x50] ss:$28 sps:$4 sm:$0xff]  }
 0x6d4   :  { %6508 = vmatpush1.bf16.msra.mxu0 %v8501_v55  ;;  %v8576_v55 = vld [vmem:[#allocation22 + $0x1d8] ss:$28 sps:$4 sm:$0xff]  }
 0x6d5   :  { %6672 = vmatpush1.bf16.msra.mxu1 %v8504_v56  ;;  %6509 = vmatprep.subr.bf16.mxu0 %v8509_v1  ;;  %v8573_v56 = vld [vmem:[#allocation22 + $0x10] ss:$28 sps:$4 sm:$0xff]   ;;  %v9784_v1 = vpack.c.bf16 %v3513_v50, %v3513_v50  ;;  %v8636_v50 = vld [vmem:[#allocation22 + $0x638] ss:$28 sps:$4 sm:$0xff]  }
 0x6d6   :  { %6673 = vmatprep.subr.bf16.mxu1 %v8512_v2  ;;  %v8577_v2 = vld [vmem:[#allocation22 + $0x18] ss:$28 sps:$4 sm:$0xff]  }
 0x6d8   :  { %6510 = vmatpush1.bf16.msra.mxu0 %v8507_v3  ;;  %v8580_v3 = vld [vmem:[#allocation22 + $0x4c] ss:$28 sps:$4 sm:$0xff]  }
 0x6d9   :  { %6674 = vmatpush1.bf16.msra.mxu1 %v8510_v10  ;;  %6511 = vmatprep.subr.bf16.mxu0 %v8515_v14  ;;  %v8581_v10 = vld [vmem:[#allocation22 + $0x210] ss:$28 sps:$4 sm:$0xff]   ;;  %v8578_v14 = vld [vmem:[#allocation22 + $0x48] ss:$28 sps:$4 sm:$0xff]  }
 0x6da   :  { %6675 = vmatprep.subr.bf16.mxu1 %v8518_v15  ;;  %v8585_v15 = vld [vmem:[#allocation22 + $0x84] ss:$28 sps:$4 sm:$0xff]  }
 0x6dc   :  { %6512 = vmatpush1.bf16.msra.mxu0 %v8513_v47  ;;  %v8586_v47 = vld [vmem:[#allocation22 + $0x248] ss:$28 sps:$4 sm:$0xff]  }
 0x6dd   :  { %6676 = vmatpush1.bf16.msra.mxu1 %v8516_v60  ;;  %6513 = vmatprep.subr.bf16.mxu0 %v8521_v22  ;;  %v8583_v60 = vld [vmem:[#allocation22 + $0x80] ss:$28 sps:$4 sm:$0xff]   ;;  %v8587_v22 = vld [vmem:[#allocation22 + $0x88] ss:$28 sps:$4 sm:$0xff]  }
 0x6de   :  { %6677 = vmatprep.subr.bf16.mxu1 %v8524_v29  ;;  %v8590_v29 = vld [vmem:[#allocation22 + $0xbc] ss:$28 sps:$4 sm:$0xff]  }
 0x6e0   :  { %6514 = vmatpush1.bf16.msra.mxu0 %v8519_v57  ;;  %v8591_v57 = vld [vmem:[#allocation22 + $0x280] ss:$28 sps:$4 sm:$0xff]  }
 0x6e1   :  { %6678 = vmatpush1.bf16.msra.mxu1 %v8522_v32  ;;  %6515 = vmatprep.subr.bf16.mxu0 %v8527_v30  ;;  %v8588_v32 = vld [vmem:[#allocation22 + $0xb8] ss:$28 sps:$4 sm:$0xff]   ;;  %v8592_v30 = vld [vmem:[#allocation22 + $0xc0] ss:$28 sps:$4 sm:$0xff]  }
 0x6e2   :  { %6679 = vmatprep.subr.bf16.mxu1 %v8530_v41  ;;  %v8595_v41 = vld [vmem:[#allocation22 + $0xf4] ss:$28 sps:$4 sm:$0xff]  }
 0x6e4   :  { %6516 = vmatpush1.bf16.msra.mxu0 %v8525_v24  ;;  %v8596_v24 = vld [vmem:[#allocation22 + $0x2b8] ss:$28 sps:$4 sm:$0xff]  }
 0x6e5   :  { %6680 = vmatpush1.bf16.msra.mxu1 %v8528_v45  ;;  %6517 = vmatprep.subr.bf16.mxu0 %v8533_v18  ;;  %v8597_v45 = vld [vmem:[#allocation22 + $0xf8] ss:$28 sps:$4 sm:$0xff]   ;;  %v8600_v18 = vld [vmem:[#allocation22 + $0x12c] ss:$28 sps:$4 sm:$0xff]  }
 0x6e6   :  { %6681 = vmatprep.subr.bf16.mxu1 %v8536_v35  ;;  %v8601_v35 = vld [vmem:[#allocation22 + $0x2f0] ss:$28 sps:$4 sm:$0xff]  }
 0x6e8   :  { %6518 = vmatpush1.bf16.msra.mxu0 %v8531_v62  ;;  %v8598_v62 = vld [vmem:[#allocation22 + $0x128] ss:$28 sps:$4 sm:$0xff]  }
 0x6e9   :  { %6682 = vmatpush1.bf16.msra.mxu1 %v8534_v31  ;;  %6519 = vmatprep.subr.bf16.mxu0 %v8539_v25  ;;  %v8602_v31 = vld [vmem:[#allocation22 + $0x130] ss:$28 sps:$4 sm:$0xff]   ;;  %v8605_v25 = vld [vmem:[#allocation22 + $0x164] ss:$28 sps:$4 sm:$0xff]  }
 0x6ea   :  { %6683 = vmatprep.subr.bf16.mxu1 %v8542_v63  ;;  %v8606_v63 = vld [vmem:[#allocation22 + $0x328] ss:$28 sps:$4 sm:$0xff]  }
 0x6ec   :  { %6520 = vmatpush1.bf16.msra.mxu0 %v8537_v4  ;;  %v8603_v4 = vld [vmem:[#allocation22 + $0x160] ss:$28 sps:$4 sm:$0xff]  }
 0x6ed   :  { %6684 = vmatpush1.bf16.msra.mxu1 %v8540_v5  ;;  %6521 = vmatprep.subr.bf16.mxu0 %v8545_v20  ;;  %v8607_v5 = vld [vmem:[#allocation22 + $0x168] ss:$28 sps:$4 sm:$0xff]   ;;  %v8610_v20 = vld [vmem:[#allocation22 + $0x19c] ss:$28 sps:$4 sm:$0xff]  }
 0x6ee   :  { %6685 = vmatprep.subr.bf16.mxu1 %v8548_v6  ;;  %v8611_v6 = vld [vmem:[#allocation22 + $0x360] ss:$28 sps:$4 sm:$0xff]  }
 0x6f0   :  { %6522 = vmatpush1.bf16.msra.mxu0 %v8543_v0  ;;  %v8608_v0 = vld [vmem:[#allocation22 + $0x198] ss:$28 sps:$4 sm:$0xff]  }
 0x6f1   :  { %6686 = vmatpush1.bf16.msra.mxu1 %v8546_v7  ;;  %6523 = vmatprep.subr.bf16.mxu0 %v8551_v8  ;;  %v8612_v7 = vld [vmem:[#allocation22 + $0x1a0] ss:$28 sps:$4 sm:$0xff]   ;;  %v8615_v8 = vld [vmem:[#allocation22 + $0x1d4] ss:$28 sps:$4 sm:$0xff]  }
 0x6f2   :  { %6687 = vmatprep.subr.bf16.mxu1 %v8554_v33  ;;  %v8616_v33 = vld [vmem:[#allocation22 + $0x558] ss:$28 sps:$4 sm:$0xff]  }
 0x6f4   :  { %6524 = vmatpush1.bf16.msra.mxu0 %v8549_v53  ;;  %v8613_v53 = vld [vmem:[#allocation22 + $0x1d0] ss:$28 sps:$4 sm:$0xff]  }
 0x6f5   :  { %6688 = vmatpush1.bf16.msra.mxu1 %v8552_v11  ;;  %6525 = vmatprep.subr.bf16.mxu0 %v8557_v52  ;;  %v8617_v11 = vld [vmem:[#allocation22 + $0x398] ss:$28 sps:$4 sm:$0xff]   ;;  %v8620_v52 = vld [vmem:[#allocation22 + $0x20c] ss:$28 sps:$4 sm:$0xff]  }
 0x6f6   :  { %6689 = vmatprep.subr.bf16.mxu1 %v8560_v16  ;;  %v8621_v16 = vld [vmem:[#allocation22 + $0x590] ss:$28 sps:$4 sm:$0xff]  }
 0x6f8   :  { %6526 = vmatpush1.bf16.msra.mxu0 %v8555_v28  ;;  %v8618_v28 = vld [vmem:[#allocation22 + $0x208] ss:$28 sps:$4 sm:$0xff]  }
 0x6f9   :  { %6690 = vmatpush1.bf16.msra.mxu1 %v8558_v9  ;;  %6527 = vmatprep.subr.bf16.mxu0 %v8563_v13  ;;  %v8622_v9 = vld [vmem:[#allocation22 + $0x3d0] ss:$28 sps:$4 sm:$0xff]   ;;  %v8625_v13 = vld [vmem:[#allocation22 + $0x244] ss:$28 sps:$4 sm:$0xff]  }
 0x6fa   :  { %6691 = vmatprep.subr.bf16.mxu1 %v8566_v34  ;;  %v8626_v34 = vld [vmem:[#allocation22 + $0x5c8] ss:$28 sps:$4 sm:$0xff]  }
 0x6fc   :  { %6528 = vmatpush1.bf16.msra.mxu0 %v8561_v37  ;;  %v8623_v37 = vld [vmem:[#allocation22 + $0x240] ss:$28 sps:$4 sm:$0xff]  }
 0x6fd   :  { %6692 = vmatpush1.bf16.msra.mxu1 %v8564_v23  ;;  %6529 = vmatprep.subr.bf16.mxu0 %v8569_v26  ;;  %v8627_v23 = vld [vmem:[#allocation22 + $0x408] ss:$28 sps:$4 sm:$0xff]   ;;  %v8630_v26 = vld [vmem:[#allocation22 + $0x27c] ss:$28 sps:$4 sm:$0xff]  }
 0x6fe   :  { %6693 = vmatprep.subr.bf16.mxu1 %v8572_v40  ;;  %v8628_v40 = vld [vmem:[#allocation22 + $0x278] ss:$28 sps:$4 sm:$0xff]  }
 0x700   :  { %6530 = vmatpush1.bf16.msra.mxu0 %v8567_v42  ;;  %v8632_v42 = vld [vmem:[#allocation22 + $0x440] ss:$28 sps:$4 sm:$0xff]  }
 0x701   :  { %6694 = vmatpush1.bf16.msra.mxu1 %v8570_v44  ;;  %6704 = vmatprep.subr.bf16.mxu0 %v8575_v54  ;;  %v8635_v44 = vld [vmem:[#allocation22 + $0x2b4] ss:$28 sps:$4 sm:$0xff]  }
 0x702   :  { %7866 = vmatprep.subr.bf16.mxu1 %v8576_v55  ;;  %v8633_v54 = vld [vmem:[#allocation22 + $0x2b0] ss:$28 sps:$4 sm:$0xff]   ;;  %v8637_v55 = vld [vmem:[#allocation22 + $0x478] ss:$28 sps:$4 sm:$0xff]  }
 0x703   :  { %6532 = vmatmul.mubr.bf16.vlgmr.msra.gmra.mrb[12].mxu0 %v9784_v1 }
 0x704   :  { %6696 = vmatmul.mubr.bf16.vlgmr.msra.gmra.mrb[20].mxu1 %v9784_v1  ;;  %6705 = vmatpush1.bf16.msra.mxu0 %v8573_v56  ;;  %v8640_v56 = vld [vmem:[#allocation22 + $0x2ec] ss:$28 sps:$4 sm:$0xff]  }
 0x705   :  { %6736 = vmatprep.mubr.bf16.mxu0 %v9746_v38  ;;  %7867 = vmatpush3.bf16.msra.mxu1 %v8577_v2  ;;  %v8641_v2 = vld [vmem:[#allocation22 + $0x670] ss:$28 sps:$4 sm:$0xff]  }
 0x706   :  { %6900 = vmatprep.mubr.bf16.mxu1 %v9746_v38  ;;  %6706 = vmatprep.subr.bf16.mxu0 %v8580_v3  ;;  %v8593_v38 = vld [vmem:[#allocation22 + $0xf0] ss:$28 sps:$4 sm:$0xff]   ;;  %v8638_v3 = vld [vmem:[#allocation22 + $0x2e8] ss:$28 sps:$4 sm:$0xff]  }
 0x707   :  { %7868 = vmatprep.subr.bf16.mxu1 %v8581_v10  ;;  %v8642_v10 = vld [vmem:[#allocation22 + $0x4b0] ss:$28 sps:$4 sm:$0xff]  }
 0x708   :  { %6707 = vmatpush1.bf16.msra.mxu0 %v8578_v14  ;;  %v8645_v14 = vld [vmem:[#allocation22 + $0x324] ss:$28 sps:$4 sm:$0xff]  }
 0x709   :  { %7869 = vmatpush3.bf16.msra.mxu1 %v8582_v61  ;;  %6708 = vmatprep.subr.bf16.mxu0 %v8585_v15  ;;  %v8646_v61 = vld [vmem:[#allocation22 + $0x6a8] ss:$28 sps:$4 sm:$0xff]   ;;  %v8643_v15 = vld [vmem:[#allocation22 + $0x320] ss:$28 sps:$4 sm:$0xff]  }
 0x70a   :  { %7870 = vmatprep.subr.bf16.mxu1 %v8586_v47  ;;  %v8647_v47 = vld [vmem:[#allocation22 + $0x4e8] ss:$28 sps:$4 sm:$0xff]  }
 0x70c   :  { %6709 = vmatpush1.bf16.msra.mxu0 %v8583_v60  ;;  %v8650_v60 = vld [vmem:[#allocation22 + $0x35c] ss:$28 sps:$4 sm:$0xff]  }
 0x70d   :  { %7871 = vmatpush3.bf16.msra.mxu1 %v8587_v22  ;;  %6710 = vmatprep.subr.bf16.mxu0 %v8590_v29  ;;  %v8651_v22 = vld [vmem:[#allocation22 + $0x6e0] ss:$28 sps:$4 sm:$0xff]   ;;  %v8648_v29 = vld [vmem:[#allocation22 + $0x358] ss:$28 sps:$4 sm:$0xff]  }
 0x70e   :  { %7872 = vmatprep.subr.bf16.mxu1 %v8591_v57  ;;  %v8652_v57 = vld [vmem:[#allocation22 + $0x520] ss:$28 sps:$4 sm:$0xff]  }
 0x710   :  { %6711 = vmatpush1.bf16.msra.mxu0 %v8588_v32  ;;  %v8655_v32 = vld [vmem:[#allocation22 + $0x394] ss:$28 sps:$4 sm:$0xff]  }
 0x711   :  { %7873 = vmatpush3.bf16.msra.mxu1 %v8592_v30  ;;  %6712 = vmatprep.subr.bf16.mxu0 %v8595_v41  ;;  %v8656_v30 = vld [vmem:[#allocation22 + $0x8d8] ss:$28 sps:$4 sm:$0xff]   ;;  %v8653_v41 = vld [vmem:[#allocation22 + $0x390] ss:$28 sps:$4 sm:$0xff]  }
 0x712   :  { %7874 = vmatprep.subr.bf16.mxu1 %v8596_v24  ;;  %v8657_v24 = vld [vmem:[#allocation22 + $0x718] ss:$28 sps:$4 sm:$0xff]  }
 0x714   :  { %6713 = vmatpush1.bf16.msra.mxu0 %v8593_v38  ;;  %v8660_v38 = vld [vmem:[#allocation22 + $0x3cc] ss:$28 sps:$4 sm:$0xff]  }
 0x715   :  { %7875 = vmatpush3.bf16.msra.mxu1 %v8597_v45  ;;  %6714 = vmatprep.subr.bf16.mxu0 %v8600_v18  ;;  %v8661_v45 = vld [vmem:[#allocation22 + $0x910] ss:$28 sps:$4 sm:$0xff]   ;;  %v8658_v18 = vld [vmem:[#allocation22 + $0x3c8] ss:$28 sps:$4 sm:$0xff]  }
 0x716   :  { %7876 = vmatprep.subr.bf16.mxu1 %v8601_v35  ;;  %v8662_v35 = vld [vmem:[#allocation22 + $0x750] ss:$28 sps:$4 sm:$0xff]  }
 0x718   :  { %6715 = vmatpush1.bf16.msra.mxu0 %v8598_v62  ;;  %v8665_v62 = vld [vmem:[#allocation22 + $0x404] ss:$28 sps:$4 sm:$0xff]  }
 0x719   :  { %7877 = vmatpush3.bf16.msra.mxu1 %v8602_v31  ;;  %6716 = vmatprep.subr.bf16.mxu0 %v8605_v25  ;;  %v8666_v31 = vld [vmem:[#allocation22 + $0x948] ss:$28 sps:$4 sm:$0xff]   ;;  %v8663_v25 = vld [vmem:[#allocation22 + $0x400] ss:$28 sps:$4 sm:$0xff]  }
 0x71a   :  { %7878 = vmatprep.subr.bf16.mxu1 %v8606_v63  ;;  %v8670_v63 = vld [vmem:[#allocation22 + $0x43c] ss:$28 sps:$4 sm:$0xff]  }
 0x71c   :  { %6717 = vmatpush1.bf16.msra.mxu0 %v8603_v4  ;;  %v8671_v4 = vld [vmem:[#allocation22 + $0x980] ss:$28 sps:$4 sm:$0xff]  }
 0x71d   :  { %7879 = vmatpush3.bf16.msra.mxu1 %v8607_v5  ;;  %6718 = vmatprep.subr.bf16.mxu0 %v8610_v20  ;;  %v8668_v5 = vld [vmem:[#allocation22 + $0x438] ss:$28 sps:$4 sm:$0xff]  }
 0x71e   :  { %7880 = vmatprep.subr.bf16.mxu1 %v8611_v6  ;;  %v8675_v20 = vld [vmem:[#allocation22 + $0x474] ss:$28 sps:$4 sm:$0xff]  }
 0x71f   :  { %v8676_v6 = vld [vmem:[#allocation22 + $0x9b8] ss:$28 sps:$4 sm:$0xff]  }
 0x720   :  { %6719 = vmatpush1.bf16.msra.mxu0 %v8608_v0  ;;  %v8673_v0 = vld [vmem:[#allocation22 + $0x470] ss:$28 sps:$4 sm:$0xff]  }
 0x721   :  { %7881 = vmatpush3.bf16.msra.mxu1 %v8612_v7  ;;  %6720 = vmatprep.subr.bf16.mxu0 %v8615_v8  ;;  %v8677_v7 = vld [vmem:[#allocation22 + $0x7f8] ss:$28 sps:$4 sm:$0xff]   ;;  %v8680_v8 = vld [vmem:[#allocation22 + $0x4ac] ss:$28 sps:$4 sm:$0xff]  }
 0x722   :  { %7888 = vmatprep.subr.bf16.mxu1 %v8616_v33  ;;  %v8681_v33 = vld [vmem:[#allocation22 + $0x9f0] ss:$28 sps:$4 sm:$0xff]  }
 0x724   :  { %6901 = vmatmul.mubr.bf16.vlgmr.msra.gmra.mrb[24].mxu1 %v9748_v43  ;;  %6721 = vmatpush1.bf16.msra.mxu0 %v8613_v53  ;;  %v8678_v53 = vld [vmem:[#allocation22 + $0x4a8] ss:$28 sps:$4 sm:$0xff]  }
 0x725   :  { %7889 = vmatpush3.bf16.msra.mxu1 %v8617_v11  ;;  %6940 = vmatprep.mubr.bf16.mxu1 %v9754_v51  ;;  %v8682_v11 = vld [vmem:[#allocation22 + $0x830] ss:$28 sps:$4 sm:$0xff]  }
 0x726   :  { %6722 = vmatprep.subr.bf16.mxu0 %v8620_v52  ;;  %7890 = vmatprep.subr.bf16.mxu1 %v8621_v16  ;;  %v8685_v52 = vld [vmem:[#allocation22 + $0x4e4] ss:$28 sps:$4 sm:$0xff]  }
 0x727   :  { %v8686_v16 = vld [vmem:[#allocation22 + $0xa28] ss:$28 sps:$4 sm:$0xff]  }
 0x728   :  { %6723 = vmatpush1.bf16.msra.mxu0 %v8618_v28  ;;  %v8683_v28 = vld [vmem:[#allocation22 + $0x4e0] ss:$28 sps:$4 sm:$0xff]  }
 0x729   :  { %7891 = vmatpush3.bf16.msra.mxu1 %v8622_v9  ;;  %6724 = vmatprep.subr.bf16.mxu0 %v8625_v13  ;;  %v8687_v9 = vld [vmem:[#allocation22 + $0x868] ss:$28 sps:$4 sm:$0xff]   ;;  %v8690_v13 = vld [vmem:[#allocation22 + $0x51c] ss:$28 sps:$4 sm:$0xff]  }
 0x72a   :  { %7892 = vmatprep.subr.bf16.mxu1 %v8626_v34  ;;  %v8691_v34 = vld [vmem:[#allocation22 + $0xa60] ss:$28 sps:$4 sm:$0xff]  }
 0x72c   :  { %6725 = vmatpush1.bf16.msra.mxu0 %v8623_v37  ;;  %v8688_v37 = vld [vmem:[#allocation22 + $0x518] ss:$28 sps:$4 sm:$0xff]  }
 0x72d   :  { %7893 = vmatpush3.bf16.msra.mxu1 %v8627_v23  ;;  %6726 = vmatprep.subr.bf16.mxu0 %v8630_v26  ;;  %v8692_v23 = vld [vmem:[#allocation22 + $0x8a0] ss:$28 sps:$4 sm:$0xff]   ;;  %v8695_v26 = vld [vmem:[#allocation22 + $0x554] ss:$28 sps:$4 sm:$0xff]  }
 0x72e   :  { %7894 = vmatprep.subr.bf16.mxu1 %v8631_v36  ;;  %v8696_v36 = vld [vmem:[#allocation22 + $0xc58] ss:$28 sps:$4 sm:$0xff]  }
 0x730   :  { %6727 = vmatpush1.bf16.msra.mxu0 %v8628_v40  ;;  %v8693_v40 = vld [vmem:[#allocation22 + $0x550] ss:$28 sps:$4 sm:$0xff]  }
 0x731   :  { %7895 = vmatpush3.bf16.msra.mxu1 %v8632_v42  ;;  %6728 = vmatprep.subr.bf16.mxu0 %v8635_v44  ;;  %v8697_v42 = vld [vmem:[#allocation22 + $0xa98] ss:$28 sps:$4 sm:$0xff]   ;;  %v8700_v44 = vld [vmem:[#allocation22 + $0x58c] ss:$28 sps:$4 sm:$0xff]  }
 0x732   :  { %7896 = vmatprep.subr.bf16.mxu1 %v8636_v50  ;;  %v8701_v50 = vld [vmem:[#allocation22 + $0xc90] ss:$28 sps:$4 sm:$0xff]  }
 0x734   :  { %6729 = vmatpush1.bf16.msra.mxu0 %v8633_v54  ;;  %v8698_v54 = vld [vmem:[#allocation22 + $0x588] ss:$28 sps:$4 sm:$0xff]  }
 0x735   :  { %7897 = vmatpush3.bf16.msra.mxu1 %v8637_v55  ;;  %6730 = vmatprep.subr.bf16.mxu0 %v8640_v56  ;;  %v8702_v55 = vld [vmem:[#allocation22 + $0xad0] ss:$28 sps:$4 sm:$0xff]   ;;  %v8705_v56 = vld [vmem:[#allocation22 + $0x5c4] ss:$28 sps:$4 sm:$0xff]  }
 0x736   :  { %7898 = vmatprep.subr.bf16.mxu1 %v8641_v2  ;;  %v8706_v2 = vld [vmem:[#allocation22 + $0xcc8] ss:$28 sps:$4 sm:$0xff]  }
 0x738   :  { %6731 = vmatpush1.bf16.msra.mxu0 %v8638_v3  ;;  %v8703_v3 = vld [vmem:[#allocation22 + $0x5c0] ss:$28 sps:$4 sm:$0xff]  }
 0x739   :  { %7899 = vmatpush3.bf16.msra.mxu1 %v8642_v10  ;;  %6732 = vmatprep.subr.bf16.mxu0 %v8645_v14  ;;  %v8707_v10 = vld [vmem:[#allocation22 + $0xb08] ss:$28 sps:$4 sm:$0xff]   ;;  %v8710_v14 = vld [vmem:[#allocation22 + $0x5fc] ss:$28 sps:$4 sm:$0xff]  }
 0x73a   :  { %7900 = vmatprep.subr.bf16.mxu1 %v8646_v61  ;;  %v8711_v61 = vld [vmem:[#allocation22 + $0xd00] ss:$28 sps:$4 sm:$0xff]  }
 0x73c   :  { %6733 = vmatpush1.bf16.msra.mxu0 %v8643_v15  ;;  %v8708_v15 = vld [vmem:[#allocation22 + $0x5f8] ss:$28 sps:$4 sm:$0xff]  }
 0x73d   :  { %7901 = vmatpush3.bf16.msra.mxu1 %v8647_v47  ;;  %6734 = vmatprep.subr.bf16.mxu0 %v8650_v60  ;;  %v8712_v47 = vld [vmem:[#allocation22 + $0xb40] ss:$28 sps:$4 sm:$0xff]   ;;  %v8715_v60 = vld [vmem:[#allocation22 + $0x634] ss:$28 sps:$4 sm:$0xff]  }
 0x73e   :  { %7902 = vmatprep.subr.bf16.mxu1 %v8651_v22  ;;  %v8716_v22 = vld [vmem:[#allocation22 + $0xd38] ss:$28 sps:$4 sm:$0xff]  }
 0x740   :  { %6735 = vmatpush1.bf16.msra.mxu0 %v8648_v29  ;;  %v8713_v29 = vld [vmem:[#allocation22 + $0x630] ss:$28 sps:$4 sm:$0xff]  }
 0x741   :  { %7903 = vmatpush3.bf16.msra.mxu1 %v8652_v57  ;;  %6745 = vmatprep.subr.bf16.mxu0 %v8655_v32  ;;  %v8717_v57 = vld [vmem:[#allocation22 + $0xb78] ss:$28 sps:$4 sm:$0xff]   ;;  %v8720_v32 = vld [vmem:[#allocation22 + $0x66c] ss:$28 sps:$4 sm:$0xff]  }
 0x742   :  { %7910 = vmatprep.subr.bf16.mxu1 %v8656_v30  ;;  %v8721_v30 = vld [vmem:[#allocation22 + $0xd70] ss:$28 sps:$4 sm:$0xff]  }
 0x743   :  { %6737 = vmatmul.mubr.bf16.vlgmr.msra.gmra.mrb[16].mxu0 %v9748_v43  ;;  %v8667_v43 = vld [vmem:[#allocation22 + $0x788] ss:$28 sps:$4 sm:$0xff]  }
 0x744   :  { %6941 = vmatmul.mubr.bf16.vlgmr.msra.gmra.mrb[28].mxu1 %v9762_v39  ;;  %6746 = vmatpush1.bf16.msra.mxu0 %v8653_v41  ;;  %v8718_v41 = vld [vmem:[#allocation22 + $0x668] ss:$28 sps:$4 sm:$0xff]  }
 0x745   :  { %6777 = vmatprep.mubr.bf16.mxu0 %v9754_v51  ;;  %7911 = vmatpush3.bf16.msra.mxu1 %v8657_v24  ;;  %v8672_v51 = vld [vmem:[#allocation22 + $0x7c0] ss:$28 sps:$4 sm:$0xff]   ;;  %v8722_v24 = vld [vmem:[#allocation22 + $0xbb0] ss:$28 sps:$4 sm:$0xff]  }
 0x746   :  { %6980 = vmatprep.mubr.bf16.mxu1 %v9764_v27  ;;  %6747 = vmatprep.subr.bf16.mxu0 %v8660_v38  ;;  %v8725_v38 = vld [vmem:[#allocation22 + $0x6a4] ss:$28 sps:$4 sm:$0xff]  }
 0x747   :  { %7912 = vmatprep.subr.bf16.mxu1 %v8661_v45  ;;  %v8726_v45 = vld [vmem:[#allocation22 + $0xda8] ss:$28 sps:$4 sm:$0xff]  }
 0x748   :  { %6748 = vmatpush1.bf16.msra.mxu0 %v8658_v18  ;;  %v8723_v18 = vld [vmem:[#allocation22 + $0x6a0] ss:$28 sps:$4 sm:$0xff]  }
 0x749   :  { %7913 = vmatpush3.bf16.msra.mxu1 %v8662_v35  ;;  %6749 = vmatprep.subr.bf16.mxu0 %v8665_v62  ;;  %v8727_v35 = vld [vmem:[#allocation22 + $0xbe8] ss:$28 sps:$4 sm:$0xff]   ;;  %v8730_v62 = vld [vmem:[#allocation22 + $0x6dc] ss:$28 sps:$4 sm:$0xff]  }
 0x74a   :  { %7914 = vmatprep.subr.bf16.mxu1 %v8666_v31  ;;  %v8731_v31 = vld [vmem:[#allocation22 + $0xde0] ss:$28 sps:$4 sm:$0xff]  }
 0x74c   :  { %6750 = vmatpush1.bf16.msra.mxu0 %v8663_v25  ;;  %v8728_v25 = vld [vmem:[#allocation22 + $0x6d8] ss:$28 sps:$4 sm:$0xff]  }
 0x74d   :  { %7915 = vmatpush3.bf16.msra.mxu1 %v8667_v43  ;;  %6751 = vmatprep.subr.bf16.mxu0 %v8670_v63  ;;  %v8732_v43 = vld [vmem:[#allocation22 + $0xc20] ss:$28 sps:$4 sm:$0xff]   ;;  %v8735_v63 = vld [vmem:[#allocation22 + $0x714] ss:$28 sps:$4 sm:$0xff]  }
 0x74e   :  { %7916 = vmatprep.subr.bf16.mxu1 %v8671_v4  ;;  %v8733_v4 = vld [vmem:[#allocation22 + $0x710] ss:$28 sps:$4 sm:$0xff]  }
 0x750   :  { %6752 = vmatpush1.bf16.msra.mxu0 %v8668_v5  ;;  %v8738_v5 = vld [vmem:[#allocation22 + $0x74c] ss:$28 sps:$4 sm:$0xff]  }
 0x751   :  { %7917 = vmatpush3.bf16.msra.mxu1 %v8672_v51  ;;  %6753 = vmatprep.subr.bf16.mxu0 %v8675_v20  ;;  %v8736_v51 = vld [vmem:[#allocation22 + $0x748] ss:$28 sps:$4 sm:$0xff]  }
 0x752   :  { %7918 = vmatprep.subr.bf16.mxu1 %v8676_v6  ;;  %v8741_v20 = vld [vmem:[#allocation22 + $0x784] ss:$28 sps:$4 sm:$0xff]  }
 0x753   :  { %v8739_v6 = vld [vmem:[#allocation22 + $0x780] ss:$28 sps:$4 sm:$0xff]  }
 0x754   :  { %6754 = vmatpush1.bf16.msra.mxu0 %v8673_v0  ;;  %v8744_v0 = vld [vmem:[#allocation22 + $0x7bc] ss:$28 sps:$4 sm:$0xff]  }
 0x755   :  { %7919 = vmatpush3.bf16.msra.mxu1 %v8677_v7  ;;  %6755 = vmatprep.subr.bf16.mxu0 %v8680_v8  ;;  %v8742_v7 = vld [vmem:[#allocation22 + $0x7b8] ss:$28 sps:$4 sm:$0xff]  }
 0x756   :  { %7920 = vmatprep.subr.bf16.mxu1 %v8681_v33  ;;  %v8747_v8 = vld [vmem:[#allocation22 + $0x7f4] ss:$28 sps:$4 sm:$0xff]  }
 0x757   :  { %v8745_v33 = vld [vmem:[#allocation22 + $0x7f0] ss:$28 sps:$4 sm:$0xff]  }
 0x758   :  { %6756 = vmatpush1.bf16.msra.mxu0 %v8678_v53  ;;  %v8748_v53 = vld [vmem:[#allocation22 + $0x828] ss:$28 sps:$4 sm:$0xff]  }
 0x759   :  { %7921 = vmatpush3.bf16.msra.mxu1 %v8682_v11  ;;  %6757 = vmatprep.subr.bf16.mxu0 %v8685_v52  ;;  %v8753_v11 = vld [vmem:[#allocation22 + $0x864] ss:$28 sps:$4 sm:$0xff]   ;;  %v8756_v52 = vld [vmem:[#allocation22 + $0x89c] ss:$28 sps:$4 sm:$0xff]  }
 0x75a   :  { %7922 = vmatprep.subr.bf16.mxu1 %v8686_v16  ;;  %v8754_v16 = vld [vmem:[#allocation22 + $0x898] ss:$28 sps:$4 sm:$0xff]  }
 0x75c   :  { %6758 = vmatpush1.bf16.msra.mxu0 %v8683_v28  ;;  %v8759_v28 = vld [vmem:[#allocation22 + $0x8d4] ss:$28 sps:$4 sm:$0xff]  }
 0x75d   :  { %7923 = vmatpush3.bf16.msra.mxu1 %v8687_v9  ;;  %6759 = vmatprep.subr.bf16.mxu0 %v8690_v13  ;;  %v8757_v9 = vld [vmem:[#allocation22 + $0x8d0] ss:$28 sps:$4 sm:$0xff]  }
 0x75e   :  { %7924 = vmatprep.subr.bf16.mxu1 %v8691_v34  ;;  %v8762_v13 = vld [vmem:[#allocation22 + $0x90c] ss:$28 sps:$4 sm:$0xff]  }
 0x75f   :  { %v8760_v34 = vld [vmem:[#allocation22 + $0x908] ss:$28 sps:$4 sm:$0xff]  }
 0x760   :  { %6760 = vmatpush1.bf16.msra.mxu0 %v8688_v37  ;;  %v8765_v37 = vld [vmem:[#allocation22 + $0x944] ss:$28 sps:$4 sm:$0xff]  }
 0x761   :  { %7925 = vmatpush3.bf16.msra.mxu1 %v8692_v23  ;;  %6761 = vmatprep.subr.bf16.mxu0 %v8695_v26  ;;  %v8763_v23 = vld [vmem:[#allocation22 + $0x940] ss:$28 sps:$4 sm:$0xff]  }
 0x762   :  { %7932 = vmatprep.subr.bf16.mxu1 %v8696_v36  ;;  %v8768_v26 = vld [vmem:[#allocation22 + $0x97c] ss:$28 sps:$4 sm:$0xff]  }
 0x763   :  { %v8766_v36 = vld [vmem:[#allocation22 + $0x978] ss:$28 sps:$4 sm:$0xff]  }
 0x764   :  { %6981 = vmatmul.mubr.bf16.vlgmr.msra.gmra.mrb[32].mxu1 %v9774_v12  ;;  %6762 = vmatpush1.bf16.msra.mxu0 %v8693_v40  ;;  %v8771_v40 = vld [vmem:[#allocation22 + $0x9b4] ss:$28 sps:$4 sm:$0xff]  }
 0x765   :  { %7933 = vmatpush3.bf16.msra.mxu1 %v8697_v42  ;;  %7020 = vmatprep.mubr.bf16.mxu1 %v9777_v17  ;;  %v8769_v42 = vld [vmem:[#allocation22 + $0x9b0] ss:$28 sps:$4 sm:$0xff]  }
 0x766   :  { %6763 = vmatprep.subr.bf16.mxu0 %v8700_v44  ;;  %7934 = vmatprep.subr.bf16.mxu1 %v8701_v50  ;;  %v8774_v44 = vld [vmem:[#allocation22 + $0x9ec] ss:$28 sps:$4 sm:$0xff]  }
 0x767   :  { %v8772_v50 = vld [vmem:[#allocation22 + $0x9e8] ss:$28 sps:$4 sm:$0xff]  }
 0x768   :  { %6764 = vmatpush1.bf16.msra.mxu0 %v8698_v54  ;;  %v8777_v54 = vld [vmem:[#allocation22 + $0xa24] ss:$28 sps:$4 sm:$0xff]  }
 0x769   :  { %7935 = vmatpush3.bf16.msra.mxu1 %v8702_v55  ;;  %6765 = vmatprep.subr.bf16.mxu0 %v8705_v56  ;;  %v8775_v55 = vld [vmem:[#allocation22 + $0xa20] ss:$28 sps:$4 sm:$0xff]  }
 0x76a   :  { %7936 = vmatprep.subr.bf16.mxu1 %v8706_v2  ;;  %v8780_v56 = vld [vmem:[#allocation22 + $0xa5c] ss:$28 sps:$4 sm:$0xff]  }
 0x76b   :  { %v8778_v2 = vld [vmem:[#allocation22 + $0xa58] ss:$28 sps:$4 sm:$0xff]  }
 0x76c   :  { %6766 = vmatpush1.bf16.msra.mxu0 %v8703_v3  ;;  %v8783_v3 = vld [vmem:[#allocation22 + $0xa94] ss:$28 sps:$4 sm:$0xff]  }
 0x76d   :  { %7937 = vmatpush3.bf16.msra.mxu1 %v8707_v10  ;;  %6767 = vmatprep.subr.bf16.mxu0 %v8710_v14  ;;  %v8781_v10 = vld [vmem:[#allocation22 + $0xa90] ss:$28 sps:$4 sm:$0xff]  }
 0x76e   :  { %7938 = vmatprep.subr.bf16.mxu1 %v8711_v61  ;;  %v8786_v14 = vld [vmem:[#allocation22 + $0xacc] ss:$28 sps:$4 sm:$0xff]  }
 0x76f   :  { %v8784_v61 = vld [vmem:[#allocation22 + $0xac8] ss:$28 sps:$4 sm:$0xff]  }
 0x770   :  { %6768 = vmatpush1.bf16.msra.mxu0 %v8708_v15  ;;  %v8789_v15 = vld [vmem:[#allocation22 + $0xb04] ss:$28 sps:$4 sm:$0xff]  }
 0x771   :  { %7939 = vmatpush3.bf16.msra.mxu1 %v8712_v47  ;;  %6769 = vmatprep.subr.bf16.mxu0 %v8715_v60  ;;  %v8787_v47 = vld [vmem:[#allocation22 + $0xb00] ss:$28 sps:$4 sm:$0xff]  }
 0x772   :  { %7940 = vmatprep.subr.bf16.mxu1 %v8716_v22  ;;  %v8792_v60 = vld [vmem:[#allocation22 + $0xb3c] ss:$28 sps:$4 sm:$0xff]  }
 0x773   :  { %v8790_v22 = vld [vmem:[#allocation22 + $0xb38] ss:$28 sps:$4 sm:$0xff]  }
 0x774   :  { %6770 = vmatpush1.bf16.msra.mxu0 %v8713_v29  ;;  %v8795_v29 = vld [vmem:[#allocation22 + $0xb74] ss:$28 sps:$4 sm:$0xff]  }
 0x775   :  { %7941 = vmatpush3.bf16.msra.mxu1 %v8717_v57  ;;  %6771 = vmatprep.subr.bf16.mxu0 %v8720_v32  ;;  %v8793_v57 = vld [vmem:[#allocation22 + $0xb70] ss:$28 sps:$4 sm:$0xff]   ;;  %v9803_v32 = vld [vmem:[#allocation23] sm:$0xff] }
 0x776   :  { %7942 = vmatprep.subr.bf16.mxu1 %v8721_v30  ;;  %v4048_v30 = vrot.slane %v9803_v32, %v9560_v46 }
 0x778   :  { %6772 = vmatpush1.bf16.msra.mxu0 %v8718_v41  ;;  %v4044_v41 = vrot.slane %v9803_v32, %v9502_v59 }
 0x779   :  { %7943 = vmatpush3.bf16.msra.mxu1 %v8722_v24  ;;  %6773 = vmatprep.subr.bf16.mxu0 %v8725_v38  ;;  %v8796_v24 = vld [vmem:[#allocation22 + $0xba8] ss:$28 sps:$4 sm:$0xff]   ;;  %v4052_v38 = vrot.slane %v9803_v32, %v9563_v49 }
 0x77a   :  { %7944 = vmatprep.subr.bf16.mxu1 %v8726_v45  ;;  %v8801_v45 = vld [vmem:[#allocation22 + $0xbe4] ss:$28 sps:$4 sm:$0xff]  }
 0x77c   :  { %6774 = vmatpush1.bf16.msra.mxu0 %v8723_v18 }
 0x77d   :  { %7945 = vmatpush3.bf16.msra.mxu1 %v8727_v35  ;;  %6775 = vmatprep.subr.bf16.mxu0 %v8730_v62 }
 0x77e   :  { %7946 = vmatprep.subr.bf16.mxu1 %v8731_v31 }
 0x780   :  { %6776 = vmatpush1.bf16.msra.mxu0 %v8728_v25 }
 0x781   :  { %7947 = vmatpush3.bf16.msra.mxu1 %v8732_v43  ;;  %6786 = vmatprep.subr.bf16.mxu0 %v8735_v63 }
 0x783   :  { %6778 = vmatmul.mubr.bf16.vlgmr.msra.gmra.mrb[16].mxu0 %v9762_v39  ;;  %v8750_v39 = vld [vmem:[#allocation22 + $0x82c] ss:$28 sps:$4 sm:$0xff]  }
 0x784   :  { %7021 = vmatmul.mubr.bf16.vlgmr.msra.gmra.mrb[36].mxu1 %v9784_v1  ;;  %6787 = vmatpush1.bf16.msra.mxu0 %v8733_v4  ;;  %v8799_v4 = vld [vmem:[#allocation22 + $0xbe0] ss:$28 sps:$4 sm:$0xff]  }
 0x785   :  { %6818 = vmatprep.mubr.bf16.mxu0 %v9764_v27  ;;  %6788 = vmatprep.subr.bf16.mxu0 %v8738_v5  ;;  %v8751_v27 = vld [vmem:[#allocation22 + $0x860] ss:$28 sps:$4 sm:$0xff]  }
 0x788   :  { %6789 = vmatpush1.bf16.msra.mxu0 %v8736_v51  ;;  %v8804_v51 = vld [vmem:[#allocation22 + $0xc1c] ss:$28 sps:$4 sm:$0xff]  }
 0x789   :  { %6790 = vmatprep.subr.bf16.mxu0 %v8741_v20  ;;  %v8802_v20 = vld [vmem:[#allocation22 + $0xc18] ss:$28 sps:$4 sm:$0xff]  }
 0x78c   :  { %6791 = vmatpush1.bf16.msra.mxu0 %v8739_v6  ;;  %v8807_v6 = vld [vmem:[#allocation22 + $0xc54] ss:$28 sps:$4 sm:$0xff]  }
 0x78d   :  { %6792 = vmatprep.subr.bf16.mxu0 %v8744_v0  ;;  %v8805_v0 = vld [vmem:[#allocation22 + $0xc50] ss:$28 sps:$4 sm:$0xff]  }
 0x790   :  { %6793 = vmatpush1.bf16.msra.mxu0 %v8742_v7  ;;  %v8810_v7 = vld [vmem:[#allocation22 + $0xc8c] ss:$28 sps:$4 sm:$0xff]  }
 0x791   :  { %6794 = vmatprep.subr.bf16.mxu0 %v8747_v8 }
 0x794   :  { %6795 = vmatpush1.bf16.msra.mxu0 %v8745_v33 }
 0x795   :  { %6796 = vmatprep.subr.bf16.mxu0 %v8750_v39  ;;  %v8808_v39 = vld [vmem:[#allocation22 + $0xc88] ss:$28 sps:$4 sm:$0xff]  }
 0x798   :  { %6797 = vmatpush1.bf16.msra.mxu0 %v8748_v53 }
 0x799   :  { %6798 = vmatprep.subr.bf16.mxu0 %v8753_v11  ;;  %v8813_v11 = vld [vmem:[#allocation22 + $0xcc4] ss:$28 sps:$4 sm:$0xff]  }
 0x79c   :  { %6799 = vmatpush1.bf16.msra.mxu0 %v8751_v27 }
 0x79d   :  { %6800 = vmatprep.subr.bf16.mxu0 %v8756_v52  ;;  %v8811_v52 = vld [vmem:[#allocation22 + $0xcc0] ss:$28 sps:$4 sm:$0xff]  }
 0x7a0   :  { %6801 = vmatpush1.bf16.msra.mxu0 %v8754_v16  ;;  %v8816_v16 = vld [vmem:[#allocation22 + $0xcfc] ss:$28 sps:$4 sm:$0xff]  }
 0x7a1   :  { %6802 = vmatprep.subr.bf16.mxu0 %v8759_v28  ;;  %v8814_v28 = vld [vmem:[#allocation22 + $0xcf8] ss:$28 sps:$4 sm:$0xff]  }
 0x7a4   :  { %6803 = vmatpush1.bf16.msra.mxu0 %v8757_v9  ;;  %v8819_v9 = vld [vmem:[#allocation22 + $0xd34] ss:$28 sps:$4 sm:$0xff]  }
 0x7a5   :  { %6804 = vmatprep.subr.bf16.mxu0 %v8762_v13  ;;  %v8817_v13 = vld [vmem:[#allocation22 + $0xd30] ss:$28 sps:$4 sm:$0xff]  }
 0x7a8   :  { %6805 = vmatpush1.bf16.msra.mxu0 %v8760_v34  ;;  %v8822_v34 = vld [vmem:[#allocation22 + $0xd6c] ss:$28 sps:$4 sm:$0xff]  }
 0x7a9   :  { %6806 = vmatprep.subr.bf16.mxu0 %v8765_v37  ;;  %v8820_v37 = vld [vmem:[#allocation22 + $0xd68] ss:$28 sps:$4 sm:$0xff]  }
 0x7ac   :  { %6807 = vmatpush1.bf16.msra.mxu0 %v8763_v23  ;;  %v8825_v23 = vld [vmem:[#allocation22 + $0xda4] ss:$28 sps:$4 sm:$0xff]  }
 0x7ad   :  { %6808 = vmatprep.subr.bf16.mxu0 %v8768_v26 }
 0x7b0   :  { %6809 = vmatpush1.bf16.msra.mxu0 %v8766_v36 }
 0x7b1   :  { %6810 = vmatprep.subr.bf16.mxu0 %v8771_v40  ;;  %v8823_v40 = vld [vmem:[#allocation22 + $0xda0] ss:$28 sps:$4 sm:$0xff]  }
 0x7b4   :  { %6811 = vmatpush1.bf16.msra.mxu0 %v8769_v42 }
 0x7b5   :  { %6812 = vmatprep.subr.bf16.mxu0 %v8774_v44 }
 0x7b8   :  { %6813 = vmatpush1.bf16.msra.mxu0 %v8772_v50  ;;  %v8828_v50 = vld [vmem:[#allocation22 + $0xddc] ss:$28 sps:$4 sm:$0xff]  }
 0x7b9   :  { %6814 = vmatprep.subr.bf16.mxu0 %v8777_v54 }
 0x7bc   :  { %6815 = vmatpush1.bf16.msra.mxu0 %v8775_v55  ;;  %v8826_v55 = vld [vmem:[#allocation22 + $0xdd8] ss:$28 sps:$4 sm:$0xff]  }
 0x7bd   :  { %6816 = vmatprep.subr.bf16.mxu0 %v8780_v56  ;;  %v4064_v56 = vrot.slane %v9803_v32, %v9701_v21 }
 0x7c0   :  { %6817 = vmatpush1.bf16.msra.mxu0 %v8778_v2 }
 0x7c1   :  { %6827 = vmatprep.subr.bf16.mxu0 %v8783_v3 }
 0x7c3   :  { %6819 = vmatmul.mubr.bf16.vlgmr.msra.gmra.mrb[16].mxu0 %v9774_v12  ;;  %v8798_v12 = vld [vmem:[#allocation22 + $0xbac] ss:$28 sps:$4 sm:$0xff]  }
 0x7c4   :  { %6828 = vmatpush1.bf16.msra.mxu0 %v8781_v10  ;;  %6859 = vmatprep.mubr.bf16.mxu0 %v9777_v17  ;;  %v4040_v17 = vrot.slane %v9803_v32, %v9499_v58 }
 0x7c5   :  { %6829 = vmatprep.subr.bf16.mxu0 %v8786_v14 }
 0x7c8   :  { %6830 = vmatpush1.bf16.msra.mxu0 %v8784_v61 }
 0x7c9   :  { %6831 = vmatprep.subr.bf16.mxu0 %v8789_v15 }
 0x7cc   :  { %6832 = vmatpush1.bf16.msra.mxu0 %v8787_v47 }
 0x7cd   :  { %6833 = vmatprep.subr.bf16.mxu0 %v8792_v60 }
 0x7d0   :  { %6834 = vmatpush1.bf16.msra.mxu0 %v8790_v22 }
 0x7d1   :  { %6835 = vmatprep.subr.bf16.mxu0 %v8795_v29 }
 0x7d4   :  { %6836 = vmatpush1.bf16.msra.mxu0 %v8793_v57 }
 0x7d5   :  { %6837 = vmatprep.subr.bf16.mxu0 %v8798_v12 }
 0x7d6   :  { %v6533_v18 = vpop.f32.mrb[12].mxu0 }
 0x7d7   :  { %v7974_v35 = vadd.f32 %v6533_v18, %v4040_v17  ;;  %v6697_v62 = vpop.f32.mrb[20].mxu1  ;;  %v6535_v31 = vpop.f32.mrb[13].mxu0  ;;  %v4056_v18 = vrot.slane %v9803_v32, %v9695_v48 }
 0x7d8   :  { %v7976_v25 = vadd.f32 %v6697_v62, %v4048_v30  ;;  %v7975_v43 = vadd.f32 %v6535_v31, %v4044_v41  ;;  %v6699_v58 = vpop.f32.mrb[21].mxu1  ;;  %v6537_v63 = vpop.f32.mrb[14].mxu0  ;;  %6838 = vmatpush1.bf16.msra.mxu0 %v8796_v24 }
 0x7d9   :  { %8857 = vtanh.f32 %v7974_v35  ;;  %v7977_v46 = vadd.f32 %v6699_v58, %v4052_v38  ;;  %v6701_v5 = vpop.f32.mrb[22].mxu1  ;;  %v6538_v59 = vpop.f32.mrb[15].mxu0  ;;  %6839 = vmatprep.subr.bf16.mxu0 %v8801_v45  ;;  %v4060_v35 = vrot.slane %v9803_v32, %v9698_v19 }
 0x7da   :  { %8859 = vtanh.f32 %v7976_v25  ;;  %v6702_v49 = vpop.f32.mrb[23].mxu1 }
 0x7db   :  { %8861 = vtanh.f32 %v7975_v43 }
 0x7dc   :  { %8863 = vtanh.f32 %v7977_v46  ;;  %6840 = vmatpush1.bf16.msra.mxu0 %v8799_v4 }
 0x7dd   :  { %6841 = vmatprep.subr.bf16.mxu0 %v8804_v51 }
 0x7e0   :  { %6842 = vmatpush1.bf16.msra.mxu0 %v8802_v20 }
 0x7e1   :  { %6843 = vmatprep.subr.bf16.mxu0 %v8807_v6 }
 0x7e3   :  { %v8858_v8 = vpop.eup %8857 }
 0x7e4   :  { %v8860_v33 = vpop.eup %8859  ;;  %7035 = vst [vmem:[#allocation25] sm:$0xff] %v8858_v8  ;;  %6844 = vmatpush1.bf16.msra.mxu0 %v8805_v0 }
 0x7e5   :  { %v8862_v53 = vpop.eup %8861  ;;  %7037 = vst [vmem:[#allocation25 + $0x10] sm:$0xff] %v8860_v33  ;;  %6845 = vmatprep.subr.bf16.mxu0 %v8810_v7 }
 0x7e6   :  { %v8864_v27 = vpop.eup %8863  ;;  %7036 = vst [vmem:[#allocation25 + $0x8] sm:$0xff] %v8862_v53 }
 0x7e7   :  { %7038 = vst [vmem:[#allocation25 + $0x18] sm:$0xff] %v8864_v27 }
 0x7e8   :  { %6846 = vmatpush1.bf16.msra.mxu0 %v8808_v39 }
 0x7e9   :  { %6847 = vmatprep.subr.bf16.mxu0 %v8813_v11 }
 0x7ec   :  { %6848 = vmatpush1.bf16.msra.mxu0 %v8811_v52 }
 0x7ed   :  { %6849 = vmatprep.subr.bf16.mxu0 %v8816_v16 }
 0x7f0   :  { %6850 = vmatpush1.bf16.msra.mxu0 %v8814_v28 }
 0x7f1   :  { %6851 = vmatprep.subr.bf16.mxu0 %v8819_v9 }
 0x7f4   :  { %6852 = vmatpush1.bf16.msra.mxu0 %v8817_v13 }
 0x7f5   :  { %6853 = vmatprep.subr.bf16.mxu0 %v8822_v34 }
 0x7f7   :  { %v7882_v26 = vpop.f32.mrb[24].mxu1 }
 0x7f8   :  { %v7883_v36 = vpop.f32.mrb[25].mxu1  ;;  %6854 = vmatpush1.bf16.msra.mxu0 %v8820_v37 }
 0x7f9   :  { %v7884_v42 = vadd.f32 %v7883_v36, %v7882_v26  ;;  %v7885_v44 = vpop.f32.mrb[26].mxu1  ;;  %6855 = vmatprep.subr.bf16.mxu0 %v8825_v23 }
 0x7fa   :  { %v7886_v54 = vpop.f32.mrb[27].mxu1 }
 0x7fb   :  { %v6903_v10 = vadd.f32 %v7884_v42, %v4064_v56 }
 0x7fc   :  { %6856 = vmatpush1.bf16.msra.mxu0 %v8823_v40 }
 0x7fd   :  { %6857 = vmatprep.subr.bf16.mxu0 %v8828_v50 }
 0x800   :  { %6858 = vmatpush1.bf16.msra.mxu0 %v8826_v55 }
 0x803   :  { %6860 = vmatmul.mubr.bf16.vlgmr.msra.gmra.mrb[16].mxu0 %v9784_v1 }
 0x817   :  { %v7904_v2 = vpop.f32.mrb[28].mxu1 }
 0x818   :  { %v7905_v3 = vpop.f32.mrb[29].mxu1 }
 0x819   :  { %v7906_v14 = vadd.f32 %v7905_v3, %v7904_v2  ;;  %v7907_v61 = vpop.f32.mrb[30].mxu1 }
 0x81a   :  { %v7908_v15 = vpop.f32.mrb[31].mxu1 }
 0x81b   :  { %v6943_v47 = vadd.f32 %v7906_v14, %v6903_v10 }
 0x837   :  { %v7926_v60 = vpop.f32.mrb[32].mxu1 }
 0x838   :  { %v7927_v22 = vpop.f32.mrb[33].mxu1 }
 0x839   :  { %v7928_v29 = vadd.f32 %v7927_v22, %v7926_v60  ;;  %v7929_v57 = vpop.f32.mrb[34].mxu1 }
 0x83a   :  { %v7930_v12 = vpop.f32.mrb[35].mxu1 }
 0x83b   :  { %v6983_v17 = vadd.f32 %v7928_v29, %v6943_v47 }
 0x857   :  { %v7948_v30 = vpop.f32.mrb[36].mxu1 }
 0x858   :  { %v7949_v41 = vpop.f32.mrb[37].mxu1 }
 0x859   :  { %v7950_v24 = vadd.f32 %v7949_v41, %v7948_v30  ;;  %v7951_v1 = vpop.f32.mrb[38].mxu1 }
 0x85a   :  { %v7952_v38 = vpop.f32.mrb[39].mxu1 }
 0x85b   :  { %v7023_v45 = vadd.f32 %v7950_v24, %v6983_v17 }
 0x85d   :  { %8865 = vtanh.f32 %v7023_v45 }
 0x867   :  { %v8866_v21 = vpop.eup %8865 }
 0x868   :  { %7041 = vst [vmem:[#allocation25 + $0x30] sm:$0xff] %v8866_v21 }
 0x8d6   :  { %v6861_v62 = vpop.f32.mrb[16].mxu0 }
 0x8d7   :  { %v7978_v31 = vadd.f32 %v6861_v62, %v4056_v18  ;;  %v6863_v25 = vpop.f32.mrb[17].mxu0 }
 0x8d8   :  { %v7979_v43 = vadd.f32 %v6863_v25, %v4060_v35  ;;  %v6865_v58 = vpop.f32.mrb[18].mxu0 }
 0x8d9   :  { %8867 = vtanh.f32 %v7978_v31  ;;  %v6866_v63 = vpop.f32.mrb[19].mxu0 }
 0x8da   :  { %8869 = vtanh.f32 %v7979_v43 }
 0x8e3   :  { %v8868_v4 = vpop.eup %8867 }
 0x8e4   :  { %v8870_v46 = vpop.eup %8869  ;;  %7039 = vst [vmem:[#allocation25 + $0x20] sm:$0xff] %v8868_v4 }
 0x8e5   :  { %7040 = vst [vmem:[#allocation25 + $0x28] sm:$0xff] %v8870_v46 }
 0x8e6   :  { %9190 = shalt.err (!%p9187_p4)
}
 0x8e7   :  { %s9191_s21 = scalar_lea.hbm %s9846_s14, 896 }
 0x8e8   :  { %p9192_p5 = scmp.ne.s32.totalorder %s9846_s14, %s9191_s21  ;;  %p9195_p6 = scmp.lt.u32.totalorder %s9191_s21, %s9846_s14 }
 0x8ea   :  { %p9197_p7 = pnand %p9195_p6, %p9192_p5 }
 0x8ec   :  { %9200 = shalt.err (!%p9197_p7)
}
 0x8ed   :  { %7051 = dma.vmem_to_hbm [thread:$0]  %s7049_s8, 896, %s9846_s14, [#allocation4]  }
 0x8ee   :  { %9217 = dma.done.wait [#allocation4], 896  }
 0x8ef   :  { %9218 = vsyncadd [#allocation4], 4294966400 }
 0x8f0   :  { %7055 = vsyncpa [#allocation3], 1 }
 0x8f1   :  { %7056 = vsyncpa [#allocation6], 1 }
 0x8f2   :  { %7057 = vsyncpa [#allocation9], 1 }
 0x8f3   :  { %7058 = vsyncpa [#allocation12], 1 }
 0x8f4   :  { %7059 = vsyncpa [#allocation15], 1 }
 0x8f5   :  { %7060 = vsyncpa [#allocation18], 1 }
 0x8f6   :  { %7061 = vsyncpa [#allocation21], 1 }
 0x8f7   :  { %7062 = vsyncpa [#allocation24], 1 }
 0x8f8   :  { %7063 = vsyncpa [#allocation4], 1 }

</bundles_post_ra>
